<compile_context>
chip_gen: v7x
topology: tpu7x:2x2x1
jax: 0.10.0
libtpu: 0.0.40
codegen_flags: <defaults>
</compile_context>

<pallas_src>
import functools

import jax
import jax.numpy as jnp
from jax import lax
from jax.experimental import pallas as pl
from jax.experimental.pallas import tpu as pltpu


# ------------------------------ tiling helpers ------------------------------ #
def _round_up(n, m):
    return ((n + m - 1) // m) * m


def _pick_row_tile(n, target=1024):
    """Row tile for LN+fc1: multiple of 8, <= target; rows are padded to a multiple."""
    t = target if n >= target else _round_up(n, 8)
    return t, _round_up(n, t)


def _pick_s_tile(s, target=256):
    """S tile for the gram reduction; S is zero-padded to a multiple of the tile."""
    t = target if s >= target else _round_up(s, 8)
    return t, _round_up(s, t)


def _pick_i_tile(r, c, max_cols=512):
    """Largest proper divisor d of R with d*c a multiple of 128 and d*c <= max_cols.
    Fallback d = R (block last dim equals the full array dim, always layout-legal)."""
    for d in range(r - 1, 0, -1):
        if r % d == 0 and (d * c) % 128 == 0 and d * c <= max_cols:
            return d
    return r


# ----------------------- Kernel 1: LayerNorm + fc1 ------------------------- #
def _ln_fc1_kernel(x_ref, gamma_ref, beta_ref, w1_ref, b1_ref, h_ref):
    x = x_ref[...]                                        # [T, c_m] f32
    mean = jnp.mean(x, axis=-1, keepdims=True)
    xc = x - mean
    var = jnp.mean(xc * xc, axis=-1, keepdims=True)       # biased var (torch LayerNorm)
    normed = xc * lax.rsqrt(var + 1e-5) * gamma_ref[...] + beta_ref[...]
    # bf16 only at the MXU boundary; accumulate / bias-add in f32.
    h = jnp.dot(normed.astype(jnp.bfloat16), w1_ref[...],
                preferred_element_type=jnp.float32) + b1_ref[...]
    h_ref[...] = h.astype(jnp.bfloat16)                   # bf16 to HBM (halves traffic)


def ln_fc1(x2d, gamma, beta, w1_bf16, b1, *, tile_rows):
    n_pad, c_m = x2d.shape
    c = w1_bf16.shape[1]
    cost = pl.CostEstimate(
        flops=int(2 * n_pad * c_m * c + 8 * n_pad * c_m),
        transcendentals=int(n_pad),
        bytes_accessed=int(n_pad * c_m * 4 + n_pad * c * 2 + c_m * c * 2),
    )
    return pl.pallas_call(
        _ln_fc1_kernel,
        out_shape=jax.ShapeDtypeStruct((n_pad, c), jnp.bfloat16),
        grid=(n_pad // tile_rows,),
        in_specs=[
            pl.BlockSpec((tile_rows, c_m), lambda i: (i, 0)),
            pl.BlockSpec((1, c_m), lambda i: (0, 0)),
            pl.BlockSpec((1, c_m), lambda i: (0, 0)),
            pl.BlockSpec((c_m, c), lambda i: (0, 0)),
            pl.BlockSpec((1, c), lambda i: (0, 0)),
        ],
        out_specs=pl.BlockSpec((tile_rows, c), lambda i: (i, 0)),
        compiler_params=pltpu.CompilerParams(dimension_semantics=("parallel",)),
        cost_estimate=cost,
    )(x2d, gamma, beta, w1_bf16, b1)


# ------------- Kernel 2: fused outer-product-mean (gram) + fc2 ------------- #
# Grid: (B, R // ti, S_pad // ts); S is the reduction axis (last, "arbitrary").
#   acc[(i_loc, p), (q, j)] += sum_s h[s, i, p] * h[s, j, q]      (bf16 MXU, f32 acc)
# Finalize (last S step), per local row i_loc:
#   out[i, j, z] = sum_q  acc[i_loc*c : +c, q*R : +R]^T  @  w2r[q*c : +c, :]  + b2
# where w2r[(q, p), z] = w2[(p, q), z] / S (reordered + prescaled at trace time).
# Both slices are contiguous, so the finalize needs no relayout and no masks.
def _gram_fc2_kernel(hi_ref, hq_ref, w2r_ref, b2_ref, o_ref, acc_ref,
                     *, R, c, c_z, TI):
    st = pl.program_id(2)

    @pl.when(st == 0)
    def _init():
        acc_ref[...] = jnp.zeros_like(acc_ref)

    hi = hi_ref[0]                                        # [ts, TI*c] bf16 (i-tile, residue-major)
    hq = hq_ref[0]                                        # [ts, c*R]  bf16 (all residues, channel-major)
    # Contraction over dim 0 of both operands (A^T B); this pattern lowered cleanly
    # (no per-step relayout) in the previous revision of this kernel.
    acc_ref[...] += lax.dot_general(hi, hq, (((0,), (0,)), ((), ())),
                                    preferred_element_type=jnp.float32)

    @pl.when(st == pl.num_programs(2) - 1)
    def _finalize():
        bias = b2_ref[...]                                # [1, c_z] f32

        def body_i(il, carry):
            out_i = jnp.zeros((R, c_z), jnp.float32)
            row0 = pl.multiple_of(il * c, c)
            for q in range(c):                            # static: c is small (<=32)
                a_blk = acc_ref[pl.ds(row0, c), pl.ds(q * R, R)]   # [c, R]  contiguous
                w_blk = w2r_ref[pl.ds(q * c, c), :]                # [c, c_z] contiguous
                out_i = out_i + lax.dot_general(
                    a_blk, w_blk, (((0,), (0,)), ((), ())),
                    preferred_element_type=jnp.float32)
            o_ref[0, pl.ds(il, 1)] = (out_i + bias)[None]
            return carry

        lax.fori_loop(0, TI, body_i, 0)


def gram_fc2(hf, hq, w2r_scaled, b2, *, R, c, c_z, ts, ti, vmem_limit):
    B, s_pad, _ = hq.shape
    n_itile = R // ti
    kernel = functools.partial(_gram_fc2_kernel, R=R, c=c, c_z=c_z, TI=ti)
    cost = pl.CostEstimate(
        flops=int(2 * B * s_pad * (R * c) * (c * R) + 2 * B * R * R * c * c * c_z),
        transcendentals=0,
        bytes_accessed=int(B * n_itile * s_pad * c * R * 2      # hq re-read per i-tile
                           + B * s_pad * R * c * 2              # hf i-tile windows
                           + B * R * R * c_z * 4                # output
                           + c * c * c_z * 4),
    )
    return pl.pallas_call(
        kernel,
        out_shape=jax.ShapeDtypeStruct((B, R, R, c_z), jnp.float32),
        grid=(B, n_itile, s_pad // ts),
        in_specs=[
            pl.BlockSpec((1, ts, ti * c), lambda b, it, st: (b, st, it)),  # i-tile only
            pl.BlockSpec((1, ts, c * R), lambda b, it, st: (b, st, 0)),    # full, channel-major
            pl.BlockSpec((c * c, c_z), lambda b, it, st: (0, 0)),
            pl.BlockSpec((1, c_z), lambda b, it, st: (0, 0)),
        ],
        out_specs=pl.BlockSpec((1, ti, R, c_z), lambda b, it, st: (b, it, 0, 0)),
        scratch_shapes=[pltpu.VMEM((ti * c, c * R), jnp.float32)],
        compiler_params=pltpu.CompilerParams(
            dimension_semantics=("parallel", "parallel", "arbitrary"),
            vmem_limit_bytes=int(vmem_limit)),
        cost_estimate=cost,
    )(hf, hq, w2r_scaled, b2)


# ------------------------------ Full forward -------------------------------- #
@jax.jit
def outer_product_mean_forward(x, gamma, beta, w1, b1, w2, b2):
    """x: [B, S, R, c_m] -> [B, R, R, c_z]."""
    B, S, R, c_m = x.shape
    c = w1.shape[1]
    c_z = w2.shape[1]

    # Stage 1: LayerNorm + fc1 on flattened rows (h stored bf16); rows zero-padded
    # to the tile so arbitrary N works (padded rows are discarded).
    N = B * S * R
    tile_rows, n_pad = _pick_row_tile(N)
    x2d = x.reshape(N, c_m)
    if n_pad != N:
        x2d = jnp.pad(x2d, ((0, n_pad - N), (0, 0)))
    h2d = ln_fc1(x2d, gamma, beta, w1.astype(jnp.bfloat16), b1,
                 tile_rows=tile_rows)                     # [n_pad, c] bf16
    h4 = h2d[:N].reshape(B, S, R, c)

    # Two views of h (both tiny vs. the gram):
    #  * residue-major columns (i, p): metadata reshape only (i-tile gram operand).
    #  * channel-major columns (q, j): one small XLA transpose of h in HBM; it makes
    #    every per-q slice of the gram accumulator contiguous so the fc2 finalize
    #    runs at minimal FLOPs with no in-kernel relayout.
    hf = h4.reshape(B, S, R * c)
    hq = jnp.transpose(h4, (0, 1, 3, 2)).reshape(B, S, c * R)

    # Stage 2: fused gram + fc2 (the gram never leaves VMEM).
    ts, s_pad = _pick_s_tile(S)
    if s_pad != S:   # zero rows add nothing to the S-sum; 1/S below uses the true S
        hf = jnp.pad(hf, ((0, 0), (0, s_pad - S), (0, 0)))
        hq = jnp.pad(hq, ((0, 0), (0, s_pad - S), (0, 0)))
    ti = _pick_i_tile(R, c)

    # fc2 weight reordered to (q, p) rows and prescaled by 1/S at trace time.
    w2r_scaled = (w2.reshape(c, c, c_z).transpose(1, 0, 2).reshape(c * c, c_z)
                  / jnp.float32(S))

    # VMEM budget for kernel 2 (+ headroom); default scoped limits are too small
    # once R*c grows.
    vmem_need = (ti * c * c * R * 4            # f32 accumulator scratch
                 + 2 * ts * c * R * 2          # double-buffered hq blocks (bf16)
                 + 2 * ts * ti * c * 2         # double-buffered hf i-tile blocks
                 + 2 * c * c * c_z * 4         # fc2 weight
                 + 2 * ti * R * c_z * 4)       # output blocks
    vmem_limit = min(max(2 * vmem_need, 32 * 1024 * 1024), 100 * 1024 * 1024)

    return gram_fc2(hf, hq, w2r_scaled, b2, R=R, c=c, c_z=c_z,
                    ts=ts, ti=ti, vmem_limit=vmem_limit)


# ------------------------------- Reference ---------------------------------- #
def reference_forward(x, gamma, beta, w1, b1, w2, b2):
    B, S, R, c_m = x.shape
    c = w1.shape[1]
    mean = jnp.mean(x, axis=-1, keepdims=True)
    var = jnp.mean((x - mean) ** 2, axis=-1, keepdims=True)
    xn = (x - mean) * lax.rsqrt(var + 1e-5) * gamma[0] + beta[0]
    h = xn @ w1 + b1[0]                                             # [B,S,R,c]
    op = jnp.einsum('bsip,bsjq->bijpq', h, h) / S                   # [B,R,R,c,c]
    return op.reshape(B, R, R, c * c) @ w2 + b2[0]


if __name__ == "__main__":
    B, S, R = 2, 8, 8
    c_m, c, c_z = 16, 32, 16    # c=32 is the module default

    key = jax.random.PRNGKey(0)
    k_x, k_g, k_b, k_w1, k_b1, k_w2, k_b2 = jax.random.split(key, 7)

    x = jax.random.normal(k_x, (B, S, R, c_m), dtype=jnp.float32)
    gamma = 1.0 + 0.1 * jax.random.normal(k_g, (1, c_m), dtype=jnp.float32)
    beta = 0.1 * jax.random.normal(k_b, (1, c_m), dtype=jnp.float32)
    # fc1: nn.Linear(c_m, c) stored as [in, out] (= W.T)
    w1 = jax.random.normal(k_w1, (c_m, c), dtype=jnp.float32) / jnp.sqrt(c_m)
    b1 = 0.1 * jax.random.normal(k_b1, (1, c), dtype=jnp.float32)
    # fc2: nn.Linear(c*c, c_z) stored as [in, out]
    w2 = jax.random.normal(k_w2, (c * c, c_z), dtype=jnp.float32) / jnp.sqrt(c * c)
    b2 = 0.1 * jax.random.normal(k_b2, (1, c_z), dtype=jnp.float32)

    out = outer_product_mean_forward(x, gamma, beta, w1, b1, w2, b2)
    out = jax.block_until_ready(out)

    ref = reference_forward(x, gamma, beta, w1, b1, w2, b2)
    assert out.shape == (B, R, R, c_z)
    # bf16 MXU operands for h / the gram (f32 accumulation) => loose tolerance.
    assert jnp.allclose(out, ref, rtol=2.5e-2, atol=2.5e-2), (
        float(jnp.max(jnp.abs(out - ref))))

    print("KERNEL_OK")
</pallas_src>

<mosaic_0001>
module attributes {stable_mosaic.version = 11 : i64} {
  func.func @_ln_fc1_kernel(%arg0: i32, %arg1: memref<128x16xf32, #tpu.memory_space<vmem>>, %arg2: memref<1x16xf32, #tpu.memory_space<vmem>>, %arg3: memref<1x16xf32, #tpu.memory_space<vmem>>, %arg4: memref<16x32xbf16, #tpu.memory_space<vmem>>, %arg5: memref<1x32xf32, #tpu.memory_space<vmem>>, %arg6: memref<128x32xbf16, #tpu.memory_space<vmem>>) attributes {dimension_semantics = [#tpu.dimension_semantics<parallel>], iteration_bounds = array<i64: 1>, scalar_prefetch = 0 : i64, scratch_operands = 0 : i64, tpu.core_type = #tpu.core_type<tc>, window_params = [{transform_indices = @transform_0, window_bounds = array<i64: 128, 16>}, {pipeline_mode = #tpu.pipeline_mode<synchronous>, transform_indices = @transform_1, window_bounds = array<i64: 1, 16>}, {pipeline_mode = #tpu.pipeline_mode<synchronous>, transform_indices = @transform_2, window_bounds = array<i64: 1, 16>}, {pipeline_mode = #tpu.pipeline_mode<synchronous>, transform_indices = @transform_3, window_bounds = array<i64: 16, 32>}, {pipeline_mode = #tpu.pipeline_mode<synchronous>, transform_indices = @transform_4, window_bounds = array<i64: 1, 32>}, {transform_indices = @transform_5, window_bounds = array<i64: 128, 32>}]} {
    %c0 = arith.constant 0 : index
    %c0_0 = arith.constant 0 : index
    %0 = vector.load %arg1[%c0, %c0_0] : memref<128x16xf32, #tpu.memory_space<vmem>>, vector<128x16xf32>
    %cst = arith.constant dense<0.000000e+00> : vector<128xf32>
    %1 = vector.multi_reduction <add>, %0, %cst [1] : vector<128x16xf32> to vector<128xf32>
    %2 = vector.shape_cast %1 : vector<128xf32> to vector<128x1xf32>
    %cst_1 = arith.constant 1.600000e+01 : f32
    %3 = vector.broadcast %cst_1 : f32 to vector<128x1xf32>
    %4 = arith.divf %2, %3 : vector<128x1xf32>
    %5 = vector.broadcast %4 : vector<128x1xf32> to vector<128x16xf32>
    %6 = arith.subf %0, %5 : vector<128x16xf32>
    %7 = arith.mulf %6, %6 : vector<128x16xf32>
    %cst_2 = arith.constant dense<0.000000e+00> : vector<128xf32>
    %8 = vector.multi_reduction <add>, %7, %cst_2 [1] : vector<128x16xf32> to vector<128xf32>
    %9 = vector.shape_cast %8 : vector<128xf32> to vector<128x1xf32>
    %cst_3 = arith.constant 1.600000e+01 : f32
    %10 = vector.broadcast %cst_3 : f32 to vector<128x1xf32>
    %11 = arith.divf %9, %10 : vector<128x1xf32>
    %cst_4 = arith.constant 9.99999974E-6 : f32
    %12 = vector.broadcast %cst_4 : f32 to vector<128x1xf32>
    %13 = arith.addf %11, %12 : vector<128x1xf32>
    %14 = math.rsqrt %13 : vector<128x1xf32>
    %15 = vector.broadcast %14 : vector<128x1xf32> to vector<128x16xf32>
    %16 = arith.mulf %6, %15 : vector<128x16xf32>
    %c0_5 = arith.constant 0 : index
    %c0_6 = arith.constant 0 : index
    %17 = vector.load %arg2[%c0_5, %c0_6] : memref<1x16xf32, #tpu.memory_space<vmem>>, vector<1x16xf32>
    %18 = vector.broadcast %17 : vector<1x16xf32> to vector<128x16xf32>
    %19 = arith.mulf %16, %18 : vector<128x16xf32>
    %c0_7 = arith.constant 0 : index
    %c0_8 = arith.constant 0 : index
    %20 = vector.load %arg3[%c0_7, %c0_8] : memref<1x16xf32, #tpu.memory_space<vmem>>, vector<1x16xf32>
    %21 = vector.broadcast %20 : vector<1x16xf32> to vector<128x16xf32>
    %22 = arith.addf %19, %21 : vector<128x16xf32>
    %23 = arith.truncf %22 : vector<128x16xf32> to vector<128x16xbf16>
    %c0_9 = arith.constant 0 : index
    %c0_10 = arith.constant 0 : index
    %24 = vector.load %arg4[%c0_9, %c0_10] : memref<16x32xbf16, #tpu.memory_space<vmem>>, vector<16x32xbf16>
    %cst_11 = arith.constant dense<0.000000e+00> : vector<128x32xf32>
    %25 = tpu.matmul %23, %24, %cst_11 {dimension_numbers = #tpu.dot_dimension_numbers<[1], [0], [0], [1], [0, 0, 1, 1], [], []>} : vector<128x16xbf16>, vector<16x32xbf16>, vector<128x32xf32> -> vector<128x32xf32>
    %c0_12 = arith.constant 0 : index
    %c0_13 = arith.constant 0 : index
    %26 = vector.load %arg5[%c0_12, %c0_13] : memref<1x32xf32, #tpu.memory_space<vmem>>, vector<1x32xf32>
    %27 = vector.broadcast %26 : vector<1x32xf32> to vector<128x32xf32>
    %28 = arith.addf %25, %27 : vector<128x32xf32>
    %29 = arith.truncf %28 : vector<128x32xf32> to vector<128x32xbf16>
    %c0_14 = arith.constant 0 : index
    %c0_15 = arith.constant 0 : index
    %30 = vector.load %arg6[%c0_14, %c0_15] : memref<128x32xbf16, #tpu.memory_space<vmem>>, vector<128x32xbf16>
    tpu.vector_store %arg6[%c0_14, %c0_15], %29 {strides = array<i32>} : memref<128x32xbf16, #tpu.memory_space<vmem>>, vector<128x32xbf16>,
    return
  }
  func.func @transform_0(%arg0: i32) -> (i32, i32) {
    %c0_i32 = arith.constant 0 : i32
    %c0_i32_0 = arith.constant 0 : i32
    return %arg0, %c0_i32 : i32, i32
  }
  func.func @transform_1(%arg0: i32) -> (i32, i32) {
    %c0_i32 = arith.constant 0 : i32
    %c0_i32_0 = arith.constant 0 : i32
    %c0_i32_1 = arith.constant 0 : i32
    return %c0_i32, %c0_i32_0 : i32, i32
  }
  func.func @transform_2(%arg0: i32) -> (i32, i32) {
    %c0_i32 = arith.constant 0 : i32
    %c0_i32_0 = arith.constant 0 : i32
    %c0_i32_1 = arith.constant 0 : i32
    return %c0_i32, %c0_i32_0 : i32, i32
  }
  func.func @transform_3(%arg0: i32) -> (i32, i32) {
    %c0_i32 = arith.constant 0 : i32
    %c0_i32_0 = arith.constant 0 : i32
    %c0_i32_1 = arith.constant 0 : i32
    return %c0_i32, %c0_i32_0 : i32, i32
  }
  func.func @transform_4(%arg0: i32) -> (i32, i32) {
    %c0_i32 = arith.constant 0 : i32
    %c0_i32_0 = arith.constant 0 : i32
    %c0_i32_1 = arith.constant 0 : i32
    return %c0_i32, %c0_i32_0 : i32, i32
  }
  func.func @transform_5(%arg0: i32) -> (i32, i32) {
    %c0_i32 = arith.constant 0 : i32
    %c0_i32_0 = arith.constant 0 : i32
    return %arg0, %c0_i32 : i32, i32
  }
}

module attributes {stable_mosaic.version = 11 : i64} {
  func.func @_gram_fc2_kernel(%arg0: i32, %arg1: i32, %arg2: i32, %arg3: memref<1x8x128xbf16, #tpu.memory_space<vmem>>, %arg4: memref<1x8x256xbf16, #tpu.memory_space<vmem>>, %arg5: memref<1024x16xf32, #tpu.memory_space<vmem>>, %arg6: memref<1x16xf32, #tpu.memory_space<vmem>>, %arg7: memref<1x4x8x16xf32, #tpu.memory_space<vmem>>, %arg8: memref<128x256xf32, #tpu.memory_space<vmem>>) attributes {dimension_semantics = [#tpu.dimension_semantics<parallel>, #tpu.dimension_semantics<parallel>, #tpu.dimension_semantics<arbitrary>], iteration_bounds = array<i64: 2, 2, 1>, scalar_prefetch = 0 : i64, scratch_operands = 1 : i64, tpu.core_type = #tpu.core_type<tc>, window_params = [{transform_indices = @transform_0, window_bounds = array<i64: 1, 8, 128>}, {transform_indices = @transform_1, window_bounds = array<i64: 1, 8, 256>}, {pipeline_mode = #tpu.pipeline_mode<synchronous>, transform_indices = @transform_2, window_bounds = array<i64: 1024, 16>}, {pipeline_mode = #tpu.pipeline_mode<synchronous>, transform_indices = @transform_3, window_bounds = array<i64: 1, 16>}, {transform_indices = @transform_4, window_bounds = array<i64: 1, 4, 8, 16>}]} {
    %c0_i32 = arith.constant 0 : i32
    %0 = arith.cmpi eq, %arg2, %c0_i32 : i32
    %1 = arith.extui %0 : i1 to i32
    %c0_i32_0 = arith.constant 0 : i32
    %2 = arith.cmpi ne, %1, %c0_i32_0 : i32
    scf.if %2 {
      %cst_12 = arith.constant 0.000000e+00 : f32
      %14 = vector.broadcast %cst_12 : f32 to vector<128x256xf32>
      %c0_13 = arith.constant 0 : index
      %c0_14 = arith.constant 0 : index
      %15 = vector.load %arg8[%c0_13, %c0_14] : memref<128x256xf32, #tpu.memory_space<vmem>>, vector<128x256xf32>
      tpu.vector_store %arg8[%c0_13, %c0_14], %14 {strides = array<i32>} : memref<128x256xf32, #tpu.memory_space<vmem>>, vector<128x256xf32>,
    } else {
    }
    %c0 = arith.constant 0 : index
    %c0_1 = arith.constant 0 : index
    %c0_2 = arith.constant 0 : index
    %3 = vector.load %arg3[%c0, %c0_1, %c0_2] : memref<1x8x128xbf16, #tpu.memory_space<vmem>>, vector<1x8x128xbf16>
    %4 = vector.shape_cast %3 : vector<1x8x128xbf16> to vector<8x128xbf16>
    %c0_3 = arith.constant 0 : index
    %c0_4 = arith.constant 0 : index
    %c0_5 = arith.constant 0 : index
    %5 = vector.load %arg4[%c0_3, %c0_4, %c0_5] : memref<1x8x256xbf16, #tpu.memory_space<vmem>>, vector<1x8x256xbf16>
    %6 = vector.shape_cast %5 : vector<1x8x256xbf16> to vector<8x256xbf16>
    %c0_6 = arith.constant 0 : index
    %c0_7 = arith.constant 0 : index
    %7 = vector.load %arg8[%c0_6, %c0_7] : memref<128x256xf32, #tpu.memory_space<vmem>>, vector<128x256xf32>
    %cst = arith.constant dense<0.000000e+00> : vector<128x256xf32>
    %8 = tpu.matmul %4, %6, %cst {dimension_numbers = #tpu.dot_dimension_numbers<[0], [0], [1], [1], [0, 1, 1, 1], [], []>} : vector<8x128xbf16>, vector<8x256xbf16>, vector<128x256xf32> -> vector<128x256xf32>
    %9 = arith.addf %7, %8 : vector<128x256xf32>
    %c0_8 = arith.constant 0 : index
    %c0_9 = arith.constant 0 : index
    %10 = vector.load %arg8[%c0_8, %c0_9] : memref<128x256xf32, #tpu.memory_space<vmem>>, vector<128x256xf32>
    tpu.vector_store %arg8[%c0_8, %c0_9], %9 {strides = array<i32>} : memref<128x256xf32, #tpu.memory_space<vmem>>, vector<128x256xf32>,
    %c0_i32_10 = arith.constant 0 : i32
    %11 = arith.cmpi eq, %arg2, %c0_i32_10 : i32
    %12 = arith.extui %11 : i1 to i32
    %c0_i32_11 = arith.constant 0 : i32
    %13 = arith.cmpi ne, %12, %c0_i32_11 : i32
    scf.if %13 {
      %c0_12 = arith.constant 0 : index
      %c0_13 = arith.constant 0 : index
      %14 = vector.load %arg6[%c0_12, %c0_13] : memref<1x16xf32, #tpu.memory_space<vmem>>, vector<1x16xf32>
      %c0_i32_14 = arith.constant 0 : i32
      %c4_i32 = arith.constant 4 : i32
      %15 = arith.addi %c0_i32_14, %c4_i32 : i32
      %c1_i32 = arith.constant 1 : i32
      scf.for %arg9 = %c0_i32_14 to %15 step %c1_i32  : i32 {
        %cst_16 = arith.constant 0.000000e+00 : f32
        %16 = vector.broadcast %cst_16 : f32 to vector<8x16xf32>
        %c32_i32 = arith.constant 32 : i32
        %17 = arith.muli %arg9, %c32_i32 : i32
        %18 = tpu.assume_multiple %17, 32 : i32
        %19 = arith.index_cast %18 : i32 to index
        %c0_17 = arith.constant 0 : index
        %20 = vector.load %arg8[%19, %c0_17] : memref<128x256xf32, #tpu.memory_space<vmem>>, vector<32x8xf32>
        %c0_18 = arith.constant 0 : index
        %c0_19 = arith.constant 0 : index
        %21 = vector.load %arg5[%c0_18, %c0_19] : memref<1024x16xf32, #tpu.memory_space<vmem>>, vector<32x16xf32>
        %cst_20 = arith.constant dense<0.000000e+00> : vector<8x16xf32>
        %22 = tpu.matmul %20, %21, %cst_20 {dimension_numbers = #tpu.dot_dimension_numbers<[0], [0], [1], [1], [0, 1, 1, 1], [], []>} : vector<32x8xf32>, vector<32x16xf32>, vector<8x16xf32> -> vector<8x16xf32>
        %23 = arith.addf %16, %22 : vector<8x16xf32>
        %24 = arith.index_cast %18 : i32 to index
        %c8 = arith.constant 8 : index
        %25 = vector.load %arg8[%24, %c8] : memref<128x256xf32, #tpu.memory_space<vmem>>, vector<32x8xf32>
        %c32 = arith.constant 32 : index
        %c0_21 = arith.constant 0 : index
        %26 = vector.load %arg5[%c32, %c0_21] : memref<1024x16xf32, #tpu.memory_space<vmem>>, vector<32x16xf32>
        %cst_22 = arith.constant dense<0.000000e+00> : vector<8x16xf32>
        %27 = tpu.matmul %25, %26, %cst_22 {dimension_numbers = #tpu.dot_dimension_numbers<[0], [0], [1], [1], [0, 1, 1, 1], [], []>} : vector<32x8xf32>, vector<32x16xf32>, vector<8x16xf32> -> vector<8x16xf32>
        %28 = arith.addf %23, %27 : vector<8x16xf32>
        %29 = arith.index_cast %18 : i32 to index
        %c16 = arith.constant 16 : index
        %30 = vector.load %arg8[%29, %c16] : memref<128x256xf32, #tpu.memory_space<vmem>>, vector<32x8xf32>
        %c64 = arith.constant 64 : index
        %c0_23 = arith.constant 0 : index
        %31 = vector.load %arg5[%c64, %c0_23] : memref<1024x16xf32, #tpu.memory_space<vmem>>, vector<32x16xf32>
        %cst_24 = arith.constant dense<0.000000e+00> : vector<8x16xf32>
        %32 = tpu.matmul %30, %31, %cst_24 {dimension_numbers = #tpu.dot_dimension_numbers<[0], [0], [1], [1], [0, 1, 1, 1], [], []>} : vector<32x8xf32>, vector<32x16xf32>, vector<8x16xf32> -> vector<8x16xf32>
        %33 = arith.addf %28, %32 : vector<8x16xf32>
        %34 = arith.index_cast %18 : i32 to index
        %c24 = arith.constant 24 : index
        %35 = vector.load %arg8[%34, %c24] : memref<128x256xf32, #tpu.memory_space<vmem>>, vector<32x8xf32>
        %c96 = arith.constant 96 : index
        %c0_25 = arith.constant 0 : index
        %36 = vector.load %arg5[%c96, %c0_25] : memref<1024x16xf32, #tpu.memory_space<vmem>>, vector<32x16xf32>
        %cst_26 = arith.constant dense<0.000000e+00> : vector<8x16xf32>
        %37 = tpu.matmul %35, %36, %cst_26 {dimension_numbers = #tpu.dot_dimension_numbers<[0], [0], [1], [1], [0, 1, 1, 1], [], []>} : vector<32x8xf32>, vector<32x16xf32>, vector<8x16xf32> -> vector<8x16xf32>
        %38 = arith.addf %33, %37 : vector<8x16xf32>
        %39 = arith.index_cast %18 : i32 to index
        %c32_27 = arith.constant 32 : index
        %40 = vector.load %arg8[%39, %c32_27] : memref<128x256xf32, #tpu.memory_space<vmem>>, vector<32x8xf32>
        %c128 = arith.constant 128 : index
        %c0_28 = arith.constant 0 : index
        %41 = vector.load %arg5[%c128, %c0_28] : memref<1024x16xf32, #tpu.memory_space<vmem>>, vector<32x16xf32>
        %cst_29 = arith.constant dense<0.000000e+00> : vector<8x16xf32>
        %42 = tpu.matmul %40, %41, %cst_29 {dimension_numbers = #tpu.dot_dimension_numbers<[0], [0], [1], [1], [0, 1, 1, 1], [], []>} : vector<32x8xf32>, vector<32x16xf32>, vector<8x16xf32> -> vector<8x16xf32>
        %43 = arith.addf %38, %42 : vector<8x16xf32>
        %44 = arith.index_cast %18 : i32 to index
        %c40 = arith.constant 40 : index
        %45 = vector.load %arg8[%44, %c40] : memref<128x256xf32, #tpu.memory_space<vmem>>, vector<32x8xf32>
        %c160 = arith.constant 160 : index
        %c0_30 = arith.constant 0 : index
        %46 = vector.load %arg5[%c160, %c0_30] : memref<1024x16xf32, #tpu.memory_space<vmem>>, vector<32x16xf32>
        %cst_31 = arith.constant dense<0.000000e+00> : vector<8x16xf32>
        %47 = tpu.matmul %45, %46, %cst_31 {dimension_numbers = #tpu.dot_dimension_numbers<[0], [0], [1], [1], [0, 1, 1, 1], [], []>} : vector<32x8xf32>, vector<32x16xf32>, vector<8x16xf32> -> vector<8x16xf32>
        %48 = arith.addf %43, %47 : vector<8x16xf32>
        %49 = arith.index_cast %18 : i32 to index
        %c48 = arith.constant 48 : index
        %50 = vector.load %arg8[%49, %c48] : memref<128x256xf32, #tpu.memory_space<vmem>>, vector<32x8xf32>
        %c192 = arith.constant 192 : index
        %c0_32 = arith.constant 0 : index
        %51 = vector.load %arg5[%c192, %c0_32] : memref<1024x16xf32, #tpu.memory_space<vmem>>, vector<32x16xf32>
        %cst_33 = arith.constant dense<0.000000e+00> : vector<8x16xf32>
        %52 = tpu.matmul %50, %51, %cst_33 {dimension_numbers = #tpu.dot_dimension_numbers<[0], [0], [1], [1], [0, 1, 1, 1], [], []>} : vector<32x8xf32>, vector<32x16xf32>, vector<8x16xf32> -> vector<8x16xf32>
        %53 = arith.addf %48, %52 : vector<8x16xf32>
        %54 = arith.index_cast %18 : i32 to index
        %c56 = arith.constant 56 : index
        %55 = vector.load %arg8[%54, %c56] : memref<128x256xf32, #tpu.memory_space<vmem>>, vector<32x8xf32>
        %c224 = arith.constant 224 : index
        %c0_34 = arith.constant 0 : index
        %56 = vector.load %arg5[%c224, %c0_34] : memref<1024x16xf32, #tpu.memory_space<vmem>>, vector<32x16xf32>
        %cst_35 = arith.constant dense<0.000000e+00> : vector<8x16xf32>
        %57 = tpu.matmul %55, %56, %cst_35 {dimension_numbers = #tpu.dot_dimension_numbers<[0], [0], [1], [1], [0, 1, 1, 1], [], []>} : vector<32x8xf32>, vector<32x16xf32>, vector<8x16xf32> -> vector<8x16xf32>
        %58 = arith.addf %53, %57 : vector<8x16xf32>
        %59 = arith.index_cast %18 : i32 to index
        %c64_36 = arith.constant 64 : index
        %60 = vector.load %arg8[%59, %c64_36] : memref<128x256xf32, #tpu.memory_space<vmem>>, vector<32x8xf32>
        %c256 = arith.constant 256 : index
        %c0_37 = arith.constant 0 : index
        %61 = vector.load %arg5[%c256, %c0_37] : memref<1024x16xf32, #tpu.memory_space<vmem>>, vector<32x16xf32>
        %cst_38 = arith.constant dense<0.000000e+00> : vector<8x16xf32>
        %62 = tpu.matmul %60, %61, %cst_38 {dimension_numbers = #tpu.dot_dimension_numbers<[0], [0], [1], [1], [0, 1, 1, 1], [], []>} : vector<32x8xf32>, vector<32x16xf32>, vector<8x16xf32> -> vector<8x16xf32>
        %63 = arith.addf %58, %62 : vector<8x16xf32>
        %64 = arith.index_cast %18 : i32 to index
        %c72 = arith.constant 72 : index
        %65 = vector.load %arg8[%64, %c72] : memref<128x256xf32, #tpu.memory_space<vmem>>, vector<32x8xf32>
        %c288 = arith.constant 288 : index
        %c0_39 = arith.constant 0 : index
        %66 = vector.load %arg5[%c288, %c0_39] : memref<1024x16xf32, #tpu.memory_space<vmem>>, vector<32x16xf32>
        %cst_40 = arith.constant dense<0.000000e+00> : vector<8x16xf32>
        %67 = tpu.matmul %65, %66, %cst_40 {dimension_numbers = #tpu.dot_dimension_numbers<[0], [0], [1], [1], [0, 1, 1, 1], [], []>} : vector<32x8xf32>, vector<32x16xf32>, vector<8x16xf32> -> vector<8x16xf32>
        %68 = arith.addf %63, %67 : vector<8x16xf32>
        %69 = arith.index_cast %18 : i32 to index
        %c80 = arith.constant 80 : index
        %70 = vector.load %arg8[%69, %c80] : memref<128x256xf32, #tpu.memory_space<vmem>>, vector<32x8xf32>
        %c320 = arith.constant 320 : index
        %c0_41 = arith.constant 0 : index
        %71 = vector.load %arg5[%c320, %c0_41] : memref<1024x16xf32, #tpu.memory_space<vmem>>, vector<32x16xf32>
        %cst_42 = arith.constant dense<0.000000e+00> : vector<8x16xf32>
        %72 = tpu.matmul %70, %71, %cst_42 {dimension_numbers = #tpu.dot_dimension_numbers<[0], [0], [1], [1], [0, 1, 1, 1], [], []>} : vector<32x8xf32>, vector<32x16xf32>, vector<8x16xf32> -> vector<8x16xf32>
        %73 = arith.addf %68, %72 : vector<8x16xf32>
        %74 = arith.index_cast %18 : i32 to index
        %c88 = arith.constant 88 : index
        %75 = vector.load %arg8[%74, %c88] : memref<128x256xf32, #tpu.memory_space<vmem>>, vector<32x8xf32>
        %c352 = arith.constant 352 : index
        %c0_43 = arith.constant 0 : index
        %76 = vector.load %arg5[%c352, %c0_43] : memref<1024x16xf32, #tpu.memory_space<vmem>>, vector<32x16xf32>
        %cst_44 = arith.constant dense<0.000000e+00> : vector<8x16xf32>
        %77 = tpu.matmul %75, %76, %cst_44 {dimension_numbers = #tpu.dot_dimension_numbers<[0], [0], [1], [1], [0, 1, 1, 1], [], []>} : vector<32x8xf32>, vector<32x16xf32>, vector<8x16xf32> -> vector<8x16xf32>
        %78 = arith.addf %73, %77 : vector<8x16xf32>
        %79 = arith.index_cast %18 : i32 to index
        %c96_45 = arith.constant 96 : index
        %80 = vector.load %arg8[%79, %c96_45] : memref<128x256xf32, #tpu.memory_space<vmem>>, vector<32x8xf32>
        %c384 = arith.constant 384 : index
        %c0_46 = arith.constant 0 : index
        %81 = vector.load %arg5[%c384, %c0_46] : memref<1024x16xf32, #tpu.memory_space<vmem>>, vector<32x16xf32>
        %cst_47 = arith.constant dense<0.000000e+00> : vector<8x16xf32>
        %82 = tpu.matmul %80, %81, %cst_47 {dimension_numbers = #tpu.dot_dimension_numbers<[0], [0], [1], [1], [0, 1, 1, 1], [], []>} : vector<32x8xf32>, vector<32x16xf32>, vector<8x16xf32> -> vector<8x16xf32>
        %83 = arith.addf %78, %82 : vector<8x16xf32>
        %84 = arith.index_cast %18 : i32 to index
        %c104 = arith.constant 104 : index
        %85 = vector.load %arg8[%84, %c104] : memref<128x256xf32, #tpu.memory_space<vmem>>, vector<32x8xf32>
        %c416 = arith.constant 416 : index
        %c0_48 = arith.constant 0 : index
        %86 = vector.load %arg5[%c416, %c0_48] : memref<1024x16xf32, #tpu.memory_space<vmem>>, vector<32x16xf32>
        %cst_49 = arith.constant dense<0.000000e+00> : vector<8x16xf32>
        %87 = tpu.matmul %85, %86, %cst_49 {dimension_numbers = #tpu.dot_dimension_numbers<[0], [0], [1], [1], [0, 1, 1, 1], [], []>} : vector<32x8xf32>, vector<32x16xf32>, vector<8x16xf32> -> vector<8x16xf32>
        %88 = arith.addf %83, %87 : vector<8x16xf32>
        %89 = arith.index_cast %18 : i32 to index
        %c112 = arith.constant 112 : index
        %90 = vector.load %arg8[%89, %c112] : memref<128x256xf32, #tpu.memory_space<vmem>>, vector<32x8xf32>
        %c448 = arith.constant 448 : index
        %c0_50 = arith.constant 0 : index
        %91 = vector.load %arg5[%c448, %c0_50] : memref<1024x16xf32, #tpu.memory_space<vmem>>, vector<32x16xf32>
        %cst_51 = arith.constant dense<0.000000e+00> : vector<8x16xf32>
        %92 = tpu.matmul %90, %91, %cst_51 {dimension_numbers = #tpu.dot_dimension_numbers<[0], [0], [1], [1], [0, 1, 1, 1], [], []>} : vector<32x8xf32>, vector<32x16xf32>, vector<8x16xf32> -> vector<8x16xf32>
        %93 = arith.addf %88, %92 : vector<8x16xf32>
        %94 = arith.index_cast %18 : i32 to index
        %c120 = arith.constant 120 : index
        %95 = vector.load %arg8[%94, %c120] : memref<128x256xf32, #tpu.memory_space<vmem>>, vector<32x8xf32>
        %c480 = arith.constant 480 : index
        %c0_52 = arith.constant 0 : index
        %96 = vector.load %arg5[%c480, %c0_52] : memref<1024x16xf32, #tpu.memory_space<vmem>>, vector<32x16xf32>
        %cst_53 = arith.constant dense<0.000000e+00> : vector<8x16xf32>
        %97 = tpu.matmul %95, %96, %cst_53 {dimension_numbers = #tpu.dot_dimension_numbers<[0], [0], [1], [1], [0, 1, 1, 1], [], []>} : vector<32x8xf32>, vector<32x16xf32>, vector<8x16xf32> -> vector<8x16xf32>
        %98 = arith.addf %93, %97 : vector<8x16xf32>
        %99 = arith.index_cast %18 : i32 to index
        %c128_54 = arith.constant 128 : index
        %100 = vector.load %arg8[%99, %c128_54] : memref<128x256xf32, #tpu.memory_space<vmem>>, vector<32x8xf32>
        %c512 = arith.constant 512 : index
        %c0_55 = arith.constant 0 : index
        %101 = vector.load %arg5[%c512, %c0_55] : memref<1024x16xf32, #tpu.memory_space<vmem>>, vector<32x16xf32>
        %cst_56 = arith.constant dense<0.000000e+00> : vector<8x16xf32>
        %102 = tpu.matmul %100, %101, %cst_56 {dimension_numbers = #tpu.dot_dimension_numbers<[0], [0], [1], [1], [0, 1, 1, 1], [], []>} : vector<32x8xf32>, vector<32x16xf32>, vector<8x16xf32> -> vector<8x16xf32>
        %103 = arith.addf %98, %102 : vector<8x16xf32>
        %104 = arith.index_cast %18 : i32 to index
        %c136 = arith.constant 136 : index
        %105 = vector.load %arg8[%104, %c136] : memref<128x256xf32, #tpu.memory_space<vmem>>, vector<32x8xf32>
        %c544 = arith.constant 544 : index
        %c0_57 = arith.constant 0 : index
        %106 = vector.load %arg5[%c544, %c0_57] : memref<1024x16xf32, #tpu.memory_space<vmem>>, vector<32x16xf32>
        %cst_58 = arith.constant dense<0.000000e+00> : vector<8x16xf32>
        %107 = tpu.matmul %105, %106, %cst_58 {dimension_numbers = #tpu.dot_dimension_numbers<[0], [0], [1], [1], [0, 1, 1, 1], [], []>} : vector<32x8xf32>, vector<32x16xf32>, vector<8x16xf32> -> vector<8x16xf32>
        %108 = arith.addf %103, %107 : vector<8x16xf32>
        %109 = arith.index_cast %18 : i32 to index
        %c144 = arith.constant 144 : index
        %110 = vector.load %arg8[%109, %c144] : memref<128x256xf32, #tpu.memory_space<vmem>>, vector<32x8xf32>
        %c576 = arith.constant 576 : index
        %c0_59 = arith.constant 0 : index
        %111 = vector.load %arg5[%c576, %c0_59] : memref<1024x16xf32, #tpu.memory_space<vmem>>, vector<32x16xf32>
        %cst_60 = arith.constant dense<0.000000e+00> : vector<8x16xf32>
        %112 = tpu.matmul %110, %111, %cst_60 {dimension_numbers = #tpu.dot_dimension_numbers<[0], [0], [1], [1], [0, 1, 1, 1], [], []>} : vector<32x8xf32>, vector<32x16xf32>, vector<8x16xf32> -> vector<8x16xf32>
        %113 = arith.addf %108, %112 : vector<8x16xf32>
        %114 = arith.index_cast %18 : i32 to index
        %c152 = arith.constant 152 : index
        %115 = vector.load %arg8[%114, %c152] : memref<128x256xf32, #tpu.memory_space<vmem>>, vector<32x8xf32>
        %c608 = arith.constant 608 : index
        %c0_61 = arith.constant 0 : index
        %116 = vector.load %arg5[%c608, %c0_61] : memref<1024x16xf32, #tpu.memory_space<vmem>>, vector<32x16xf32>
        %cst_62 = arith.constant dense<0.000000e+00> : vector<8x16xf32>
        %117 = tpu.matmul %115, %116, %cst_62 {dimension_numbers = #tpu.dot_dimension_numbers<[0], [0], [1], [1], [0, 1, 1, 1], [], []>} : vector<32x8xf32>, vector<32x16xf32>, vector<8x16xf32> -> vector<8x16xf32>
        %118 = arith.addf %113, %117 : vector<8x16xf32>
        %119 = arith.index_cast %18 : i32 to index
        %c160_63 = arith.constant 160 : index
        %120 = vector.load %arg8[%119, %c160_63] : memref<128x256xf32, #tpu.memory_space<vmem>>, vector<32x8xf32>
        %c640 = arith.constant 640 : index
        %c0_64 = arith.constant 0 : index
        %121 = vector.load %arg5[%c640, %c0_64] : memref<1024x16xf32, #tpu.memory_space<vmem>>, vector<32x16xf32>
        %cst_65 = arith.constant dense<0.000000e+00> : vector<8x16xf32>
        %122 = tpu.matmul %120, %121, %cst_65 {dimension_numbers = #tpu.dot_dimension_numbers<[0], [0], [1], [1], [0, 1, 1, 1], [], []>} : vector<32x8xf32>, vector<32x16xf32>, vector<8x16xf32> -> vector<8x16xf32>
        %123 = arith.addf %118, %122 : vector<8x16xf32>
        %124 = arith.index_cast %18 : i32 to index
        %c168 = arith.constant 168 : index
        %125 = vector.load %arg8[%124, %c168] : memref<128x256xf32, #tpu.memory_space<vmem>>, vector<32x8xf32>
        %c672 = arith.constant 672 : index
        %c0_66 = arith.constant 0 : index
        %126 = vector.load %arg5[%c672, %c0_66] : memref<1024x16xf32, #tpu.memory_space<vmem>>, vector<32x16xf32>
        %cst_67 = arith.constant dense<0.000000e+00> : vector<8x16xf32>
        %127 = tpu.matmul %125, %126, %cst_67 {dimension_numbers = #tpu.dot_dimension_numbers<[0], [0], [1], [1], [0, 1, 1, 1], [], []>} : vector<32x8xf32>, vector<32x16xf32>, vector<8x16xf32> -> vector<8x16xf32>
        %128 = arith.addf %123, %127 : vector<8x16xf32>
        %129 = arith.index_cast %18 : i32 to index
        %c176 = arith.constant 176 : index
        %130 = vector.load %arg8[%129, %c176] : memref<128x256xf32, #tpu.memory_space<vmem>>, vector<32x8xf32>
        %c704 = arith.constant 704 : index
        %c0_68 = arith.constant 0 : index
        %131 = vector.load %arg5[%c704, %c0_68] : memref<1024x16xf32, #tpu.memory_space<vmem>>, vector<32x16xf32>
        %cst_69 = arith.constant dense<0.000000e+00> : vector<8x16xf32>
        %132 = tpu.matmul %130, %131, %cst_69 {dimension_numbers = #tpu.dot_dimension_numbers<[0], [0], [1], [1], [0, 1, 1, 1], [], []>} : vector<32x8xf32>, vector<32x16xf32>, vector<8x16xf32> -> vector<8x16xf32>
        %133 = arith.addf %128, %132 : vector<8x16xf32>
        %134 = arith.index_cast %18 : i32 to index
        %c184 = arith.constant 184 : index
        %135 = vector.load %arg8[%134, %c184] : memref<128x256xf32, #tpu.memory_space<vmem>>, vector<32x8xf32>
        %c736 = arith.constant 736 : index
        %c0_70 = arith.constant 0 : index
        %136 = vector.load %arg5[%c736, %c0_70] : memref<1024x16xf32, #tpu.memory_space<vmem>>, vector<32x16xf32>
        %cst_71 = arith.constant dense<0.000000e+00> : vector<8x16xf32>
        %137 = tpu.matmul %135, %136, %cst_71 {dimension_numbers = #tpu.dot_dimension_numbers<[0], [0], [1], [1], [0, 1, 1, 1], [], []>} : vector<32x8xf32>, vector<32x16xf32>, vector<8x16xf32> -> vector<8x16xf32>
        %138 = arith.addf %133, %137 : vector<8x16xf32>
        %139 = arith.index_cast %18 : i32 to index
        %c192_72 = arith.constant 192 : index
        %140 = vector.load %arg8[%139, %c192_72] : memref<128x256xf32, #tpu.memory_space<vmem>>, vector<32x8xf32>
        %c768 = arith.constant 768 : index
        %c0_73 = arith.constant 0 : index
        %141 = vector.load %arg5[%c768, %c0_73] : memref<1024x16xf32, #tpu.memory_space<vmem>>, vector<32x16xf32>
        %cst_74 = arith.constant dense<0.000000e+00> : vector<8x16xf32>
        %142 = tpu.matmul %140, %141, %cst_74 {dimension_numbers = #tpu.dot_dimension_numbers<[0], [0], [1], [1], [0, 1, 1, 1], [], []>} : vector<32x8xf32>, vector<32x16xf32>, vector<8x16xf32> -> vector<8x16xf32>
        %143 = arith.addf %138, %142 : vector<8x16xf32>
        %144 = arith.index_cast %18 : i32 to index
        %c200 = arith.constant 200 : index
        %145 = vector.load %arg8[%144, %c200] : memref<128x256xf32, #tpu.memory_space<vmem>>, vector<32x8xf32>
        %c800 = arith.constant 800 : index
        %c0_75 = arith.constant 0 : index
        %146 = vector.load %arg5[%c800, %c0_75] : memref<1024x16xf32, #tpu.memory_space<vmem>>, vector<32x16xf32>
        %cst_76 = arith.constant dense<0.000000e+00> : vector<8x16xf32>
        %147 = tpu.matmul %145, %146, %cst_76 {dimension_numbers = #tpu.dot_dimension_numbers<[0], [0], [1], [1], [0, 1, 1, 1], [], []>} : vector<32x8xf32>, vector<32x16xf32>, vector<8x16xf32> -> vector<8x16xf32>
        %148 = arith.addf %143, %147 : vector<8x16xf32>
        %149 = arith.index_cast %18 : i32 to index
        %c208 = arith.constant 208 : index
        %150 = vector.load %arg8[%149, %c208] : memref<128x256xf32, #tpu.memory_space<vmem>>, vector<32x8xf32>
        %c832 = arith.constant 832 : index
        %c0_77 = arith.constant 0 : index
        %151 = vector.load %arg5[%c832, %c0_77] : memref<1024x16xf32, #tpu.memory_space<vmem>>, vector<32x16xf32>
        %cst_78 = arith.constant dense<0.000000e+00> : vector<8x16xf32>
        %152 = tpu.matmul %150, %151, %cst_78 {dimension_numbers = #tpu.dot_dimension_numbers<[0], [0], [1], [1], [0, 1, 1, 1], [], []>} : vector<32x8xf32>, vector<32x16xf32>, vector<8x16xf32> -> vector<8x16xf32>
        %153 = arith.addf %148, %152 : vector<8x16xf32>
        %154 = arith.index_cast %18 : i32 to index
        %c216 = arith.constant 216 : index
        %155 = vector.load %arg8[%154, %c216] : memref<128x256xf32, #tpu.memory_space<vmem>>, vector<32x8xf32>
        %c864 = arith.constant 864 : index
        %c0_79 = arith.constant 0 : index
        %156 = vector.load %arg5[%c864, %c0_79] : memref<1024x16xf32, #tpu.memory_space<vmem>>, vector<32x16xf32>
        %cst_80 = arith.constant dense<0.000000e+00> : vector<8x16xf32>
        %157 = tpu.matmul %155, %156, %cst_80 {dimension_numbers = #tpu.dot_dimension_numbers<[0], [0], [1], [1], [0, 1, 1, 1], [], []>} : vector<32x8xf32>, vector<32x16xf32>, vector<8x16xf32> -> vector<8x16xf32>
        %158 = arith.addf %153, %157 : vector<8x16xf32>
        %159 = arith.index_cast %18 : i32 to index
        %c224_81 = arith.constant 224 : index
        %160 = vector.load %arg8[%159, %c224_81] : memref<128x256xf32, #tpu.memory_space<vmem>>, vector<32x8xf32>
        %c896 = arith.constant 896 : index
        %c0_82 = arith.constant 0 : index
        %161 = vector.load %arg5[%c896, %c0_82] : memref<1024x16xf32, #tpu.memory_space<vmem>>, vector<32x16xf32>
        %cst_83 = arith.constant dense<0.000000e+00> : vector<8x16xf32>
        %162 = tpu.matmul %160, %161, %cst_83 {dimension_numbers = #tpu.dot_dimension_numbers<[0], [0], [1], [1], [0, 1, 1, 1], [], []>} : vector<32x8xf32>, vector<32x16xf32>, vector<8x16xf32> -> vector<8x16xf32>
        %163 = arith.addf %158, %162 : vector<8x16xf32>
        %164 = arith.index_cast %18 : i32 to index
        %c232 = arith.constant 232 : index
        %165 = vector.load %arg8[%164, %c232] : memref<128x256xf32, #tpu.memory_space<vmem>>, vector<32x8xf32>
        %c928 = arith.constant 928 : index
        %c0_84 = arith.constant 0 : index
        %166 = vector.load %arg5[%c928, %c0_84] : memref<1024x16xf32, #tpu.memory_space<vmem>>, vector<32x16xf32>
        %cst_85 = arith.constant dense<0.000000e+00> : vector<8x16xf32>
        %167 = tpu.matmul %165, %166, %cst_85 {dimension_numbers = #tpu.dot_dimension_numbers<[0], [0], [1], [1], [0, 1, 1, 1], [], []>} : vector<32x8xf32>, vector<32x16xf32>, vector<8x16xf32> -> vector<8x16xf32>
        %168 = arith.addf %163, %167 : vector<8x16xf32>
        %169 = arith.index_cast %18 : i32 to index
        %c240 = arith.constant 240 : index
        %170 = vector.load %arg8[%169, %c240] : memref<128x256xf32, #tpu.memory_space<vmem>>, vector<32x8xf32>
        %c960 = arith.constant 960 : index
        %c0_86 = arith.constant 0 : index
        %171 = vector.load %arg5[%c960, %c0_86] : memref<1024x16xf32, #tpu.memory_space<vmem>>, vector<32x16xf32>
        %cst_87 = arith.constant dense<0.000000e+00> : vector<8x16xf32>
        %172 = tpu.matmul %170, %171, %cst_87 {dimension_numbers = #tpu.dot_dimension_numbers<[0], [0], [1], [1], [0, 1, 1, 1], [], []>} : vector<32x8xf32>, vector<32x16xf32>, vector<8x16xf32> -> vector<8x16xf32>
        %173 = arith.addf %168, %172 : vector<8x16xf32>
        %174 = arith.index_cast %18 : i32 to index
        %c248 = arith.constant 248 : index
        %175 = vector.load %arg8[%174, %c248] : memref<128x256xf32, #tpu.memory_space<vmem>>, vector<32x8xf32>
        %c992 = arith.constant 992 : index
        %c0_88 = arith.constant 0 : index
        %176 = vector.load %arg5[%c992, %c0_88] : memref<1024x16xf32, #tpu.memory_space<vmem>>, vector<32x16xf32>
        %cst_89 = arith.constant dense<0.000000e+00> : vector<8x16xf32>
        %177 = tpu.matmul %175, %176, %cst_89 {dimension_numbers = #tpu.dot_dimension_numbers<[0], [0], [1], [1], [0, 1, 1, 1], [], []>} : vector<32x8xf32>, vector<32x16xf32>, vector<8x16xf32> -> vector<8x16xf32>
        %178 = arith.addf %173, %177 : vector<8x16xf32>
        %179 = vector.broadcast %14 : vector<1x16xf32> to vector<8x16xf32>
        %180 = arith.addf %178, %179 : vector<8x16xf32>
        %181 = vector.shape_cast %180 : vector<8x16xf32> to vector<1x8x16xf32>
        %c0_90 = arith.constant 0 : index
        %182 = arith.index_cast %arg9 : i32 to index
        %c0_91 = arith.constant 0 : index
        %c0_92 = arith.constant 0 : index
        %183 = vector.load %arg7[%c0_90, %182, %c0_91, %c0_92] : memref<1x4x8x16xf32, #tpu.memory_space<vmem>>, vector<1x1x8x16xf32>
        %184 = vector.shape_cast %183 : vector<1x1x8x16xf32> to vector<1x8x16xf32>
        %185 = vector.shape_cast %181 : vector<1x8x16xf32> to vector<1x1x8x16xf32>
        tpu.vector_store %arg7[%c0_90, %182, %c0_91, %c0_92], %185 {strides = array<i32>} : memref<1x4x8x16xf32, #tpu.memory_space<vmem>>, vector<1x1x8x16xf32>,
      }
      %c4_i32_15 = arith.constant 4 : i32
    } else {
    }
    return
  }
  func.func @transform_0(%arg0: i32, %arg1: i32, %arg2: i32) -> (i32, i32, i32) {
    %c0_i32 = arith.constant 0 : i32
    return %arg0, %arg2, %arg1 : i32, i32, i32
  }
  func.func @transform_1(%arg0: i32, %arg1: i32, %arg2: i32) -> (i32, i32, i32) {
    %c0_i32 = arith.constant 0 : i32
    %c0_i32_0 = arith.constant 0 : i32
    return %arg0, %arg2, %c0_i32 : i32, i32, i32
  }
  func.func @transform_2(%arg0: i32, %arg1: i32, %arg2: i32) -> (i32, i32) {
    %c0_i32 = arith.constant 0 : i32
    %c0_i32_0 = arith.constant 0 : i32
    %c0_i32_1 = arith.constant 0 : i32
    return %c0_i32, %c0_i32_0 : i32, i32
  }
  func.func @transform_3(%arg0: i32, %arg1: i32, %arg2: i32) -> (i32, i32) {
    %c0_i32 = arith.constant 0 : i32
    %c0_i32_0 = arith.constant 0 : i32
    %c0_i32_1 = arith.constant 0 : i32
    return %c0_i32, %c0_i32_0 : i32, i32
  }
  func.func @transform_4(%arg0: i32, %arg1: i32, %arg2: i32) -> (i32, i32, i32, i32) {
    %c0_i32 = arith.constant 0 : i32
    %c0_i32_0 = arith.constant 0 : i32
    %c0_i32_1 = arith.constant 0 : i32
    return %arg0, %arg1, %c0_i32, %c0_i32_0 : i32, i32, i32, i32
  }
}

</mosaic_0001>

<bundles_post_ra>
// kernel: outer_product_mean_forward.2
= control target key start
LH: loop header
LB: loop body
LE: loop exit
PB: predicated region body
PF: predicated region fallthrough
CT: control target
= control target key end

     0   :  { %10 = vsyncpa [#allocation3], 0  ;;  %s670_s18 = smov [#allocation2]   ;;  %s987_s0 = inlined_call_operand.hbm [shape: f32[128,16], index: 0, kind: input, shape index: {}]   ;;  %s988_s1 = inlined_call_operand.vmem [shape: f32[1,16], index: 1, kind: input, shape index: {}]   ;;  %s989_s2 = inlined_call_operand.vmem [shape: f32[1,16], index: 2, kind: input, shape index: {}]   ;;  %s990_s3 = inlined_call_operand.vmem [shape: bf16[16,32], index: 3, kind: input, shape index: {}]   ;;  %s991_s4 = inlined_call_operand.vmem [shape: f32[1,32], index: 4, kind: input, shape index: {}]   ;;  %s992_s5 = inlined_call_operand.vmem [shape: bf16[128,32], index: 5, kind: output, shape index: {}]  }
   0x1   :  { %s16_s19 = sshll.u32 %s670_s18, 4  ;;  %s646_s22 = scalar_lea.hbm %s987_s0, 2048  ;;  %s17_s19 = int_to_ptr.vmem [resolvable:$true] %s16_s19 }
   0x2   :  { %p647_p0 = scmp.ne.s32.totalorder %s987_s0, %s646_s22  ;;  %p650_p1 = scmp.lt.u32.totalorder %s646_s22, %s987_s0 }
   0x4   :  { %p652_p2 = pnand %p650_p1, %p647_p0 }
   0x6   :  { %655 = shalt.err (!%p652_p2)
}
   0x7   :  { %s656_s27 = scalar_lea.vmem %s17_s19, 2048  ;;  %p661_p4 = scmp.lt.s32.totalorder %s17_s19, %s17_s19 }
   0x8   :  { %p657_p3 = scmp.ne.s32.totalorder %s17_s19, %s656_s27  ;;  %p662_p5 = scmp.lt.s32.totalorder %s656_s27, %s656_s27 }
   0xa   :  { %p663_p6 = por %p662_p5, %p661_p4 }
   0xc   :  { %p664_p7 = pnand %p663_p6, %p657_p3 }
   0xe   :  { %667 = shalt.err (!%p664_p7)
}
   0xf   :  { %s671_s28 = smov 128   ;;  %s672_s29 = smov 8  }
  0x10   :  { %22 = dma.hbm_to_vmem [thread:$0]  %s987_s0, 2048, %s17_s19, [#allocation3], %s671_s28, %s671_s28, %s672_s29  }
  0x11   :  { %668 = dma.done.wait [#allocation3], 2048  }
  0x12   :  { %669 = vsyncadd [#allocation3], 4294965248  ;;  %vm51_vm0 = vcmask 130048   ;;  %v35_v0 = vld [vmem:[#allocation2] sm:$0xff]  ;;  %v36_v2 = vld [vmem:[#allocation2 + $0x8] sm:$0xff]  ;;  %vm515_vm1 = vcmask 257024  }
  0x13   :  { %v43_v1 = vld [vmem:[#allocation2 + $0x40] sm:$0xff]  ;;  %v52_v3 = vsel %vm51_vm0, %v35_v0, 0.0  ;;  %v44_v5 = vld [vmem:[#allocation2 + $0x48] sm:$0xff]  ;;  %v55_v6 = vsel %vm51_vm0, %v36_v2, 0.0  ;;  %v37_v8 = vld [vmem:[#allocation2 + $0x10] sm:$0xff] }
  0x14   :  { %v76_v4 = vsel %vm51_vm0, %v43_v1, 0.0  ;;  %53 = vadd.xlane.f32.xlu0 %v52_v3  ;;  %v79_v7 = vsel %vm51_vm0, %v44_v5, 0.0  ;;  %v38_v9 = vld [vmem:[#allocation2 + $0x18] sm:$0xff]  ;;  %v58_v10 = vsel %vm51_vm0, %v37_v8, 0.0  ;;  %v721_v12 = vld [vmem:[#allocation2 + $0x50] sm:$0xff]  ;;  %v729_v16 = vld [vmem:[#allocation2 + $0x20] sm:$0xff] }
  0x15   :  { %77 = vadd.xlane.f32.xlu1 %v76_v4  ;;  %v61_v11 = vsel %vm51_vm0, %v38_v9, 0.0  ;;  %v723_v13 = vld [vmem:[#allocation2 + $0x58] sm:$0xff]  ;;  %v82_v14 = vsel %vm51_vm0, %v721_v12, 0.0  ;;  %v731_v17 = vld [vmem:[#allocation2 + $0x28] sm:$0xff]  ;;  %v64_v18 = vsel %vm51_vm0, %v729_v16, 0.0  ;;  %v737_v20 = vld [vmem:[#allocation2 + $0x60] sm:$0xff] }
  0x16   :  { %v85_v15 = vsel %vm51_vm0, %v723_v13, 0.0  ;;  %v67_v19 = vsel %vm51_vm0, %v731_v17, 0.0  ;;  %v739_v21 = vld [vmem:[#allocation2 + $0x68] sm:$0xff]  ;;  %v88_v22 = vsel %vm51_vm0, %v737_v20, 0.0  ;;  %v745_v24 = vld [vmem:[#allocation2 + $0x30] sm:$0xff]  ;;  %v747_v25 = vld [vmem:[#allocation2 + $0x38] sm:$0xff] }
  0x17   :  { %v91_v23 = vsel %vm51_vm0, %v739_v21, 0.0  ;;  %v70_v26 = vsel %vm51_vm0, %v745_v24, 0.0  ;;  %v73_v27 = vsel %vm51_vm0, %v747_v25, 0.0  ;;  %v753_v28 = vld [vmem:[#allocation2 + $0x70] sm:$0xff]  ;;  %v755_v29 = vld [vmem:[#allocation2 + $0x78] sm:$0xff] }
  0x18   :  { %56 = vadd.xlane.f32.xlu0 %v55_v6  ;;  %v94_v30 = vsel %vm51_vm0, %v753_v28, 0.0  ;;  %v97_v31 = vsel %vm51_vm0, %v755_v29, 0.0 }
  0x19   :  { %80 = vadd.xlane.f32.xlu1 %v79_v7 }
  0x1c   :  { %59 = vadd.xlane.f32.xlu0 %v58_v10 }
  0x1d   :  { %62 = vadd.xlane.f32.xlu1 %v61_v11 }
  0x20   :  { %83 = vadd.xlane.f32.xlu0 %v82_v14 }
  0x21   :  { %86 = vadd.xlane.f32.xlu1 %v85_v15 }
  0x24   :  { %65 = vadd.xlane.f32.xlu0 %v64_v18 }
  0x25   :  { %68 = vadd.xlane.f32.xlu1 %v67_v19 }
  0x28   :  { %89 = vadd.xlane.f32.xlu0 %v88_v22 }
  0x29   :  { %92 = vadd.xlane.f32.xlu1 %v91_v23 }
  0x2c   :  { %71 = vadd.xlane.f32.xlu0 %v70_v26 }
  0x2d   :  { %74 = vadd.xlane.f32.xlu1 %v73_v27 }
  0x30   :  { %95 = vadd.xlane.f32.xlu0 %v94_v30 }
  0x31   :  { %98 = vadd.xlane.f32.xlu1 %v97_v31 }
  0xa1   :  { %v54_v32 = vpop.xlane.xlu0 %53 }
  0xa2   :  { %v78_v33 = vpop.xlane.xlu1 %77  ;;  %v101_v34 = vmul.f32 0.0625, %v54_v32 }
  0xa3   :  { %v109_v35 = vmul.f32 0.0625, %v78_v33 }
  0xa4   :  { %v761_v36 = vsub.f32 %v35_v0, %v101_v34 }
  0xa5   :  { %v763_v37 = vsub.f32 %v43_v1, %v109_v35  ;;  %v57_v38 = vpop.xlane.xlu0 %56 }
  0xa6   :  { %v81_v39 = vpop.xlane.xlu1 %80  ;;  %v102_v40 = vmul.f32 0.0625, %v57_v38  ;;  %v133_v42 = vmul.f32 %v761_v36, %v761_v36 }
  0xa7   :  { %v110_v41 = vmul.f32 0.0625, %v81_v39  ;;  %v141_v43 = vmul.f32 %v763_v37, %v763_v37 }
  0xa8   :  { %v769_v44 = vsub.f32 %v36_v2, %v102_v40  ;;  %v149_v46 = vsel %vm51_vm0, %v133_v42, 0.0 }
  0xa9   :  { %v771_v45 = vsub.f32 %v44_v5, %v110_v41  ;;  %150 = vadd.xlane.f32.xlu0 %v149_v46  ;;  %v60_v47 = vpop.xlane.xlu0 %59  ;;  %v173_v49 = vsel %vm51_vm0, %v141_v43, 0.0 }
  0xaa   :  { %v63_v48 = vpop.xlane.xlu1 %62  ;;  %v103_v50 = vmul.f32 0.0625, %v60_v47  ;;  %v134_v52 = vmul.f32 %v769_v44, %v769_v44 }
  0xab   :  { %v104_v51 = vmul.f32 0.0625, %v63_v48  ;;  %v142_v53 = vmul.f32 %v771_v45, %v771_v45 }
  0xac   :  { %v779_v54 = vsub.f32 %v37_v8, %v103_v50  ;;  %v152_v56 = vsel %vm51_vm0, %v134_v52, 0.0 }
  0xad   :  { %v781_v55 = vsub.f32 %v38_v9, %v104_v51  ;;  %174 = vadd.xlane.f32.xlu0 %v173_v49  ;;  %153 = vadd.xlane.f32.xlu1 %v152_v56  ;;  %v84_v57 = vpop.xlane.xlu0 %83  ;;  %v176_v59 = vsel %vm51_vm0, %v142_v53, 0.0 }
  0xae   :  { %v87_v58 = vpop.xlane.xlu1 %86  ;;  %v111_v60 = vmul.f32 0.0625, %v84_v57  ;;  %v135_v62 = vmul.f32 %v779_v54, %v779_v54 }
  0xaf   :  { %v112_v61 = vmul.f32 0.0625, %v87_v58  ;;  %v136_v63 = vmul.f32 %v781_v55, %v781_v55 }
  0xb0   :  { %v790_v0 = vsub.f32 %v721_v12, %v111_v60  ;;  %v155_v2 = vsel %vm51_vm0, %v135_v62, 0.0 }
  0xb1   :  { %v793_v1 = vsub.f32 %v723_v13, %v112_v61  ;;  %177 = vadd.xlane.f32.xlu1 %v176_v59  ;;  %156 = vadd.xlane.f32.xlu0 %v155_v2  ;;  %v66_v3 = vpop.xlane.xlu0 %65  ;;  %v158_v5 = vsel %vm51_vm0, %v136_v63, 0.0 }
  0xb2   :  { %v69_v4 = vpop.xlane.xlu1 %68  ;;  %v105_v6 = vmul.f32 0.0625, %v66_v3  ;;  %v143_v8 = vmul.f32 %v790_v0, %v790_v0 }
  0xb3   :  { %v106_v7 = vmul.f32 0.0625, %v69_v4  ;;  %v144_v9 = vmul.f32 %v793_v1, %v793_v1 }
  0xb4   :  { %v802_v10 = vsub.f32 %v729_v16, %v105_v6  ;;  %v179_v12 = vsel %vm51_vm0, %v143_v8, 0.0 }
  0xb5   :  { %v805_v11 = vsub.f32 %v731_v17, %v106_v7  ;;  %159 = vadd.xlane.f32.xlu1 %v158_v5  ;;  %180 = vadd.xlane.f32.xlu0 %v179_v12  ;;  %v90_v13 = vpop.xlane.xlu0 %89  ;;  %v182_v15 = vsel %vm51_vm0, %v144_v9, 0.0 }
  0xb6   :  { %v93_v14 = vpop.xlane.xlu1 %92  ;;  %v113_v18 = vmul.f32 0.0625, %v90_v13  ;;  %v137_v22 = vmul.f32 %v802_v10, %v802_v10 }
  0xb7   :  { %v114_v19 = vmul.f32 0.0625, %v93_v14  ;;  %v138_v16 = vmul.f32 %v805_v11, %v805_v11 }
  0xb8   :  { %v814_v23 = vsub.f32 %v737_v20, %v113_v18  ;;  %v161_v26 = vsel %vm51_vm0, %v137_v22, 0.0 }
  0xb9   :  { %v817_v17 = vsub.f32 %v739_v21, %v114_v19  ;;  %183 = vadd.xlane.f32.xlu1 %v182_v15  ;;  %162 = vadd.xlane.f32.xlu0 %v161_v26  ;;  %v72_v27 = vpop.xlane.xlu0 %71  ;;  %v164_v31 = vsel %vm51_vm0, %v138_v16, 0.0 }
  0xba   :  { %v75_v30 = vpop.xlane.xlu1 %74  ;;  %v107_v32 = vmul.f32 0.0625, %v72_v27  ;;  %v145_v34 = vmul.f32 %v814_v23, %v814_v23 }
  0xbb   :  { %v108_v33 = vmul.f32 0.0625, %v75_v30  ;;  %v146_v20 = vmul.f32 %v817_v17, %v817_v17  ;;  %v858_v30 = vld [vmem:[%s988_s1] ss:$0 sm:$0xff] }
  0xbc   :  { %v826_v35 = vsub.f32 %v745_v24, %v107_v32  ;;  %v185_v38 = vsel %vm51_vm0, %v145_v34, 0.0 }
  0xbd   :  { %v829_v21 = vsub.f32 %v747_v25, %v108_v33  ;;  %165 = vadd.xlane.f32.xlu1 %v164_v31  ;;  %186 = vadd.xlane.f32.xlu0 %v185_v38  ;;  %v96_v39 = vpop.xlane.xlu0 %95  ;;  %v188_v41 = vsel %vm51_vm0, %v146_v20, 0.0 }
  0xbe   :  { %v99_v40 = vpop.xlane.xlu1 %98  ;;  %v115_v42 = vmul.f32 0.0625, %v96_v39  ;;  %v139_v46 = vmul.f32 %v826_v35, %v826_v35 }
  0xbf   :  { %v116_v43 = vmul.f32 0.0625, %v99_v40  ;;  %v140_v24 = vmul.f32 %v829_v21, %v829_v21 }
  0xc0   :  { %v838_v47 = vsub.f32 %v753_v28, %v115_v42  ;;  %v167_v48 = vsel %vm51_vm0, %v139_v46, 0.0  ;;  %v865_v42 = vld [vmem:[%s989_s2] ss:$0 sm:$0xff] }
  0xc1   :  { %v841_v25 = vsub.f32 %v755_v29, %v116_v43  ;;  %189 = vadd.xlane.f32.xlu1 %v188_v41  ;;  %168 = vadd.xlane.f32.xlu0 %v167_v48  ;;  %v170_v49 = vsel %vm51_vm0, %v140_v24, 0.0  ;;  %v613_v29 = vld [vmem:[%s990_s3] sm:$0xff]  }
  0xc2   :  { %v147_v50 = vmul.f32 %v838_v47, %v838_v47  ;;  %590 = vmatprep.subr.bf16.mxu0 %v613_v29  ;;  %608 = vmatprep.subr.bf16.mxu1 %v613_v29 }
  0xc3   :  { %v148_v51 = vmul.f32 %v841_v25, %v841_v25  ;;  %591 = vmatpush3.bf16.msra.mxu0 %v613_v29  ;;  %609 = vmatpush3.bf16.msra.mxu1 %v613_v29 }
  0xc4   :  { %v191_v52 = vsel %vm51_vm0, %v147_v50, 0.0 }
  0xc5   :  { %171 = vadd.xlane.f32.xlu1 %v170_v49  ;;  %192 = vadd.xlane.f32.xlu0 %v191_v52  ;;  %v194_v28 = vsel %vm51_vm0, %v148_v51, 0.0 }
  0xc9   :  { %195 = vadd.xlane.f32.xlu1 %v194_v28 }
 0x136   :  { %v151_v53 = vpop.xlane.xlu0 %150 }
 0x137   :  { %v197_v56 = vmul.f32 0.0625, %v151_v53 }
 0x139   :  { %v213_v57 = vadd.f32 1e-05, %v197_v56 }
 0x13a   :  { %v154_v58 = vpop.xlane.xlu1 %153  ;;  %v175_v59 = vpop.xlane.xlu0 %174 }
 0x13b   :  { %614 = vrsqrt.f32 %v213_v57  ;;  %v198_v60 = vmul.f32 0.0625, %v154_v58  ;;  %v205_v61 = vmul.f32 0.0625, %v175_v59 }
 0x13d   :  { %v214_v62 = vadd.f32 1e-05, %v198_v60  ;;  %v221_v63 = vadd.f32 1e-05, %v205_v61 }
 0x13e   :  { %v178_v2 = vpop.xlane.xlu1 %177  ;;  %v157_v3 = vpop.xlane.xlu0 %156 }
 0x13f   :  { %616 = vrsqrt.f32 %v214_v62  ;;  %v206_v4 = vmul.f32 0.0625, %v178_v2  ;;  %v199_v5 = vmul.f32 0.0625, %v157_v3 }
 0x140   :  { %618 = vrsqrt.f32 %v221_v63 }
 0x141   :  { %v222_v6 = vadd.f32 1e-05, %v206_v4  ;;  %v215_v7 = vadd.f32 1e-05, %v199_v5 }
 0x142   :  { %v160_v8 = vpop.xlane.xlu1 %159  ;;  %v181_v9 = vpop.xlane.xlu0 %180 }
 0x143   :  { %620 = vrsqrt.f32 %v222_v6  ;;  %v200_v12 = vmul.f32 0.0625, %v160_v8  ;;  %v207_v13 = vmul.f32 0.0625, %v181_v9 }
 0x144   :  { %622 = vrsqrt.f32 %v215_v7 }
 0x145   :  { %v615_v14 = vpop.eup %614  ;;  %v216_v15 = vadd.f32 1e-05, %v200_v12  ;;  %v223_v18 = vadd.f32 1e-05, %v207_v13 }
 0x146   :  { %v184_v19 = vpop.xlane.xlu1 %183  ;;  %v163_v22 = vpop.xlane.xlu0 %162  ;;  %v245_v16 = vmul.f32 %v615_v14, %v761_v36 }
 0x147   :  { %624 = vrsqrt.f32 %v216_v15  ;;  %v208_v26 = vmul.f32 0.0625, %v184_v19  ;;  %v201_v27 = vmul.f32 0.0625, %v163_v22 }
 0x148   :  { %626 = vrsqrt.f32 %v223_v18  ;;  %v268_v40 = vmul.f32 %v858_v30, %v245_v16 }
 0x149   :  { %v617_v31 = vpop.eup %616  ;;  %v224_v32 = vadd.f32 1e-05, %v208_v26  ;;  %v217_v33 = vadd.f32 1e-05, %v201_v27 }
 0x14a   :  { %v619_v34 = vpop.eup %618  ;;  %v166_v20 = vpop.xlane.xlu1 %165  ;;  %v246_v39 = vmul.f32 %v617_v31, %v769_v44  ;;  %v291_v52 = vadd.f32 %v865_v42, %v268_v40 }
 0x14b   :  { %v187_v38 = vpop.xlane.xlu0 %186  ;;  %628 = vrsqrt.f32 %v224_v32  ;;  %v202_v36 = vmul.f32 0.0625, %v166_v20  ;;  %v253_v43 = vmul.f32 %v619_v34, %v763_v37 }
 0x14c   :  { %v209_v41 = vmul.f32 0.0625, %v187_v38  ;;  %630 = vrsqrt.f32 %v217_v33  ;;  %v269_v46 = vmul.f32 %v858_v30, %v246_v39 }
 0x14d   :  { %v621_v24 = vpop.eup %620  ;;  %v218_v48 = vadd.f32 1e-05, %v202_v36  ;;  %v276_v53 = vmul.f32 %v858_v30, %v253_v43 }
 0x14e   :  { %v225_v49 = vadd.f32 1e-05, %v209_v41  ;;  %v623_v50 = vpop.eup %622  ;;  %v190_v44 = vpop.xlane.xlu1 %189  ;;  %v292_v28 = vadd.f32 %v865_v42, %v269_v46  ;;  %v254_v29 = vmul.f32 %v621_v24, %v771_v45 }
 0x14f   :  { %v169_v51 = vpop.xlane.xlu0 %168  ;;  %v247_v56 = vmul.f32 %v623_v50, %v779_v54  ;;  %632 = vrsqrt.f32 %v218_v48  ;;  %v210_v37 = vmul.f32 0.0625, %v190_v44  ;;  %v299_v4 = vadd.f32 %v865_v42, %v276_v53 }
 0x150   :  { %v203_v57 = vmul.f32 0.0625, %v169_v51  ;;  %634 = vrsqrt.f32 %v225_v49  ;;  %v307_v58 = vpack.c.bf16 %v292_v28, %v291_v52  ;;  %v277_v59 = vmul.f32 %v858_v30, %v254_v29 }
 0x151   :  { %v625_v60 = vpop.eup %624  ;;  %v226_v61 = vadd.f32 1e-05, %v210_v37  ;;  %v270_v5 = vmul.f32 %v858_v30, %v247_v56 }
 0x152   :  { %v219_v62 = vadd.f32 1e-05, %v203_v57  ;;  %v627_v63 = vpop.eup %626  ;;  %v248_v2 = vmul.f32 %v625_v60, %v781_v55  ;;  %v172_v3 = vpop.xlane.xlu1 %171  ;;  %592 = vmatprep.mubr.msk.bf16.mxu0 %vm51_vm0, %v307_v58  ;;  %v300_v54 = vadd.f32 %v865_v42, %v277_v59 }
 0x153   :  { %v193_v45 = vpop.xlane.xlu0 %192  ;;  %v255_v6 = vmul.f32 %v627_v63, %v790_v0  ;;  %636 = vrsqrt.f32 %v226_v61  ;;  %v204_v7 = vmul.f32 0.0625, %v172_v3  ;;  %v293_v22 = vadd.f32 %v865_v42, %v270_v5 }
 0x154   :  { %v211_v8 = vmul.f32 0.0625, %v193_v45  ;;  %638 = vrsqrt.f32 %v219_v62  ;;  %v311_v9 = vpack.c.bf16 %v300_v54, %v299_v4  ;;  %v271_v12 = vmul.f32 %v858_v30, %v248_v2 }
 0x155   :  { %v629_v55 = vpop.eup %628  ;;  %v220_v13 = vadd.f32 1e-05, %v204_v7  ;;  %v278_v16 = vmul.f32 %v858_v30, %v255_v6 }
 0x156   :  { %v227_v14 = vadd.f32 1e-05, %v211_v8  ;;  %v631_v15 = vpop.eup %630  ;;  %v256_v18 = vmul.f32 %v629_v55, %v793_v1  ;;  %v196_v19 = vpop.xlane.xlu1 %195  ;;  %600 = vmatprep.mubr.msk.bf16.mxu1 %vm51_vm0, %v311_v9  ;;  %v294_v0 = vadd.f32 %v865_v42, %v271_v12 }
 0x157   :  { %v249_v26 = vmul.f32 %v631_v15, %v802_v10  ;;  %640 = vrsqrt.f32 %v220_v13  ;;  %v212_v27 = vmul.f32 0.0625, %v196_v19  ;;  %v301_v38 = vadd.f32 %v865_v42, %v278_v16 }
 0x158   :  { %642 = vrsqrt.f32 %v227_v14  ;;  %v308_v31 = vpack.c.bf16 %v294_v0, %v293_v22  ;;  %v279_v32 = vmul.f32 %v858_v30, %v256_v18 }
 0x159   :  { %v633_v33 = vpop.eup %632  ;;  %v228_v34 = vadd.f32 1e-05, %v212_v27  ;;  %v272_v40 = vmul.f32 %v858_v30, %v249_v26 }
 0x15a   :  { %v635_v1 = vpop.eup %634  ;;  %v250_v20 = vmul.f32 %v633_v33, %v805_v11  ;;  %593 = vmatmul.mubr.msk.bf16.vlgmr.msra.gmra.mrb[0].mxu0 %vm51_vm0, %v308_v31  ;;  %v302_v39 = vadd.f32 %v865_v42, %v279_v32 }
 0x15b   :  { %v257_v10 = vmul.f32 %v635_v1, %v814_v23  ;;  %644 = vrsqrt.f32 %v228_v34  ;;  %v295_v11 = vadd.f32 %v865_v42, %v272_v40 }
 0x15c   :  { %v312_v36 = vpack.c.bf16 %v302_v39, %v301_v38  ;;  %v273_v41 = vmul.f32 %v858_v30, %v250_v20 }
 0x15d   :  { %v637_v43 = vpop.eup %636  ;;  %v280_v49 = vmul.f32 %v858_v30, %v257_v10 }
 0x15e   :  { %v639_v46 = vpop.eup %638  ;;  %v258_v24 = vmul.f32 %v637_v43, %v817_v17  ;;  %601 = vmatmul.mubr.msk.bf16.vlgmr.msra.gmra.mrb[0].mxu1 %vm51_vm0, %v312_v36  ;;  %v296_v48 = vadd.f32 %v865_v42, %v273_v41 }
 0x15f   :  { %v251_v50 = vmul.f32 %v639_v46, %v826_v35  ;;  %v303_v17 = vadd.f32 %v865_v42, %v280_v49 }
 0x160   :  { %v309_v44 = vpack.c.bf16 %v296_v48, %v295_v11  ;;  %v281_v23 = vmul.f32 %v858_v30, %v258_v24 }
 0x161   :  { %v641_v51 = vpop.eup %640  ;;  %v274_v53 = vmul.f32 %v858_v30, %v251_v50 }
 0x162   :  { %v643_v52 = vpop.eup %642  ;;  %v252_v28 = vmul.f32 %v641_v51, %v829_v21  ;;  %596 = vmatprep.mubr.msk.bf16.mxu0 %vm51_vm0, %v309_v44  ;;  %v304_v29 = vadd.f32 %v865_v42, %v281_v23 }
 0x163   :  { %v259_v56 = vmul.f32 %v643_v52, %v838_v47  ;;  %v297_v21 = vadd.f32 %v865_v42, %v274_v53 }
 0x164   :  { %v313_v37 = vpack.c.bf16 %v304_v29, %v303_v17  ;;  %v275_v35 = vmul.f32 %v858_v30, %v252_v28 }
 0x165   :  { %v645_v57 = vpop.eup %644  ;;  %v282_v60 = vmul.f32 %v858_v30, %v259_v56 }
 0x166   :  { %v260_v58 = vmul.f32 %v645_v57, %v841_v25  ;;  %604 = vmatprep.mubr.msk.bf16.mxu1 %vm51_vm0, %v313_v37  ;;  %v298_v59 = vadd.f32 %v865_v42, %v275_v35  ;;  %v539_v25 = vld [vmem:[%s991_s4] ss:$0 sm:$0xff] }
 0x167   :  { %v305_v47 = vadd.f32 %v865_v42, %v282_v60 }
 0x168   :  { %v310_v61 = vpack.c.bf16 %v298_v59, %v297_v21  ;;  %v283_v62 = vmul.f32 %v858_v30, %v260_v58 }
 0x16a   :  { %597 = vmatmul.mubr.msk.bf16.gmra.mrb[4].mxu0 %vm51_vm0, %v310_v61  ;;  %v306_v63 = vadd.f32 %v865_v42, %v283_v62 }
 0x16c   :  { %v314_v2 = vpack.c.bf16 %v306_v63, %v305_v47 }
 0x16e   :  { %605 = vmatmul.mubr.msk.bf16.gmra.mrb[4].mxu1 %vm51_vm0, %v314_v2 }
 0x22d   :  { %v594_v3 = vpop.f32.mrb[0].mxu0 }
 0x22e   :  { %v397_v45 = vadd.f32 %v594_v3, %v539_v25  ;;  %v388_v4 = vpop.f32.mrb[1].mxu0 }
 0x22f   :  { %v389_v54 = vadd.f32 %v539_v25, %v388_v4  ;;  %v595_v5 = vpop.f32.mrb[2].mxu0 }
 0x230   :  { %v567_v30 = vpack.c.bf16 %v397_v45, %v397_v45  ;;  %v400_v6 = vadd.f32 %v595_v5, %v539_v25  ;;  %v391_v7 = vpop.f32.mrb[3].mxu0 }
 0x231   :  { %v565_v8 = vpack.c.bf16 %v389_v54, %v389_v54  ;;  %v392_v9 = vadd.f32 %v539_v25, %v391_v7  ;;  %v602_v12 = vpop.f32.mrb[0].mxu1 }
 0x232   :  { %518 = vst.msk [vmem:[%s992_s5 + $0x8] sm:$0xf] %vm515_vm1, %v567_v30  ;;  %v568_v42 = vpack.c.bf16 %v400_v6, %v400_v6  ;;  %v429_v55 = vadd.f32 %v602_v12, %v539_v25  ;;  %v420_v13 = vpop.f32.mrb[1].mxu1 }
 0x233   :  { %516 = vst.msk [vmem:[%s992_s5] sm:$0xf] %vm515_vm1, %v565_v8  ;;  %v566_v14 = vpack.c.bf16 %v392_v9, %v392_v9  ;;  %v421_v15 = vadd.f32 %v539_v25, %v420_v13  ;;  %v603_v18 = vpop.f32.mrb[2].mxu1 }
 0x234   :  { %519 = vst.msk [vmem:[%s992_s5 + $0xc] sm:$0xf] %vm515_vm1, %v568_v42  ;;  %v575_v19 = vpack.c.bf16 %v429_v55, %v429_v55  ;;  %v432_v22 = vadd.f32 %v603_v18, %v539_v25  ;;  %v423_v0 = vpop.f32.mrb[3].mxu1 }
 0x235   :  { %517 = vst.msk [vmem:[%s992_s5 + $0x4] sm:$0xf] %vm515_vm1, %v566_v14  ;;  %v573_v16 = vpack.c.bf16 %v421_v15, %v421_v15  ;;  %v424_v26 = vadd.f32 %v539_v25, %v423_v0 }
 0x236   :  { %526 = vst.msk [vmem:[%s992_s5 + $0x28] sm:$0xf] %vm515_vm1, %v575_v19  ;;  %v576_v27 = vpack.c.bf16 %v432_v22, %v432_v22 }
 0x237   :  { %524 = vst.msk [vmem:[%s992_s5 + $0x20] sm:$0xf] %vm515_vm1, %v573_v16  ;;  %v574_v31 = vpack.c.bf16 %v424_v26, %v424_v26 }
 0x238   :  { %527 = vst.msk [vmem:[%s992_s5 + $0x2c] sm:$0xf] %vm515_vm1, %v576_v27 }
 0x239   :  { %525 = vst.msk [vmem:[%s992_s5 + $0x24] sm:$0xf] %vm515_vm1, %v574_v31 }
 0x23d   :  { %v598_v32 = vpop.f32.mrb[4].mxu0 }
 0x23e   :  { %v413_v33 = vadd.f32 %v598_v32, %v539_v25  ;;  %v404_v34 = vpop.f32.mrb[5].mxu0 }
 0x23f   :  { %v405_v1 = vadd.f32 %v539_v25, %v404_v34  ;;  %v599_v20 = vpop.f32.mrb[6].mxu0 }
 0x240   :  { %v571_v38 = vpack.c.bf16 %v413_v33, %v413_v33  ;;  %v416_v39 = vadd.f32 %v599_v20, %v539_v25  ;;  %v407_v40 = vpop.f32.mrb[7].mxu0 }
 0x241   :  { %v569_v10 = vpack.c.bf16 %v405_v1, %v405_v1  ;;  %v408_v36 = vadd.f32 %v539_v25, %v407_v40  ;;  %v606_v41 = vpop.f32.mrb[4].mxu1 }
 0x242   :  { %522 = vst.msk [vmem:[%s992_s5 + $0x18] sm:$0xf] %vm515_vm1, %v571_v38  ;;  %v572_v43 = vpack.c.bf16 %v416_v39, %v416_v39  ;;  %v445_v46 = vadd.f32 %v606_v41, %v539_v25  ;;  %v436_v24 = vpop.f32.mrb[5].mxu1 }
 0x243   :  { %520 = vst.msk [vmem:[%s992_s5 + $0x10] sm:$0xf] %vm515_vm1, %v569_v10  ;;  %v570_v11 = vpack.c.bf16 %v408_v36, %v408_v36  ;;  %v437_v48 = vadd.f32 %v539_v25, %v436_v24  ;;  %v607_v49 = vpop.f32.mrb[6].mxu1 }
 0x244   :  { %523 = vst.msk [vmem:[%s992_s5 + $0x1c] sm:$0xf] %vm515_vm1, %v572_v43  ;;  %v579_v50 = vpack.c.bf16 %v445_v46, %v445_v46  ;;  %v448_v44 = vadd.f32 %v607_v49, %v539_v25  ;;  %v439_v23 = vpop.f32.mrb[7].mxu1 }
 0x245   :  { %521 = vst.msk [vmem:[%s992_s5 + $0x14] sm:$0xf] %vm515_vm1, %v570_v11  ;;  %v577_v51 = vpack.c.bf16 %v437_v48, %v437_v48  ;;  %v440_v52 = vadd.f32 %v539_v25, %v439_v23 }
 0x246   :  { %530 = vst.msk [vmem:[%s992_s5 + $0x38] sm:$0xf] %vm515_vm1, %v579_v50  ;;  %v580_v28 = vpack.c.bf16 %v448_v44, %v448_v44 }
 0x247   :  { %528 = vst.msk [vmem:[%s992_s5 + $0x30] sm:$0xf] %vm515_vm1, %v577_v51  ;;  %v578_v17 = vpack.c.bf16 %v440_v52, %v440_v52 }
 0x248   :  { %531 = vst.msk [vmem:[%s992_s5 + $0x3c] sm:$0xf] %vm515_vm1, %v580_v28 }
 0x249   :  { %529 = vst.msk [vmem:[%s992_s5 + $0x34] sm:$0xf] %vm515_vm1, %v578_v17 }
 0x24a   :  { %536 = vsyncpa [#allocation3], 1 }

// kernel: outer_product_mean_forward.3
= control target key start
LH: loop header
LB: loop body
LE: loop exit
PB: predicated region body
PF: predicated region fallthrough
CT: control target
= control target key end

     0   :  { %9 = vsyncpa [#allocation4], 0  ;;  %s6987_s0 = inlined_call_operand.vmem [shape: bf16[2,8,256], index: 0, kind: input, shape index: {}]   ;;  %s6988_s1 = inlined_call_operand.vmem [shape: bf16[2,8,256], index: 1, kind: input, shape index: {}]   ;;  %s6989_s2 = inlined_call_operand.vmem [shape: f32[1024,16], index: 2, kind: input, shape index: {}]   ;;  %s6990_s3 = inlined_call_operand.vmem [shape: f32[1,16], index: 3, kind: input, shape index: {}]   ;;  %s6991_s4 = inlined_call_operand.hbm [shape: f32[2,8,8,16], index: 4, kind: output, shape index: {}]  }
   0x1   :  { %11 = vsyncpa [#allocation4 + $0x1], 0  ;;  %s5663_s15 = smov 0   ;;  %s5665_s16 = smov 0  }
   0x2   :  { %s5667_s17 = smov 0   ;;  %s5669_s18 = smov 0  }
   0x3   :  { %s5671_s19 = smov 0   ;;  %s5673_s20 = smov 0  }
   0x4   :  { %s5675_s21 = smov 0   ;;  %s5677_s22 = smov 0  }
   0x5 LB: > { %s4637_s23 = sadd.s32 4294967295, %s5610_s22   ;;  %s4638_s24 = sadd.s32 4294967294, %s5610_s22   ;;  %s5610_s22 = sphi %s5677_s22, %s17_s22   ;;  %s5606_s21 = sphi %s5675_s21, %s7024_s21   ;;  %s5602_s20 = sphi %s5673_s20, %s7023_s20   ;;  %s5598_s19 = sphi %s5671_s19, %s7022_s19   ;;  %s5594_s18 = sphi %s5669_s18, %s7021_s18   ;;  %s5590_s17 = sphi %s5667_s17, %s7020_s17   ;;  %s5586_s16 = sphi %s5665_s16, %s7019_s16   ;;  %s5582_s15 = sphi %s5663_s15, %s7018_s15  }
   0x6   : > { %s32_s25 = sadd.s32 1, %s5602_s20  ;;  %s36_s26 = sadd.s32 1, %s5606_s21 }
   0x7   : > { %p34_p0 = scmp.ge.s32.totalorder %s32_s25, 2  ;;  %p155_p1 = scmp.ne.s32.totalorder %s5590_s17, %s5586_s16 }
   0x8   : > { %p156_p2 = scmp.eq.s32.totalorder %s4637_s23, 3  ;;  %p161_p5 = scmp.ne.s32.totalorder %s5586_s16, %s5582_s15 }
   0x9   : > { %s7026_s25 = smov (%p34_p0, %s32_s25), 0  ;;  %s7028_s26 = smov (!%p34_p0, %s36_s26), %s5606_s21 }
   0xa   : > { %s141_s27 = ssub.s32 %s5602_s20, %s7026_s25  ;;  %p5714_p3 = por %p156_p2, %p155_p1 }
   0xb   : > { %p38_p4 = scmp.ge.s32.totalorder %s7028_s26, 2  ;;  %p162_p6 = scmp.eq.s32.totalorder %s4638_s24, 3 }
   0xc   : > { %p4641_p7 = scmp.ge.s32.totalorder %s5610_s22, 1  ;;  %p213_p9 = scmp.lt.s32.totalorder %s5610_s22, 5 }
   0xd   : > { %s7030_s26 = smov (%p38_p4, %s7028_s26), 0  ;;  %p5723_p8 = por %p162_p6, %p161_p5 }
   0xe   : > { %7001 = sst [smem:[#allocation6_spill]] %s7030_s26  ;;  %s140_s30 = ssub.s32 %s5606_s21, %s7030_s26 }
   0xf   : > { %s145_s5 = sadd.s32 1, %s5590_s17  ;;  %s142_s6 = sor.u32 %s141_s27, %s140_s30 }
  0x10   : > { %p214_p10 = pnand %p4641_p7, %p213_p9  ;;  %p143_p11 = scmp.eq.s32.totalorder %s142_s6, 0 }
  0x12   : > { %s5732_s7 = scalar_select %p143_p11, %s5590_s17, %s145_s5  }
  0x13   : > { %217 = sbr.rel (%p214_p10) target bundleno = 1276 (0x4fc), region = 36 }
  0x1a   : > { %p255_p12 = scmp.lt.s32.totalorder %s5598_s19, 1  ;;  %p259_p13 = scmp.lt.s32.totalorder %s5594_s18, 1  ;;  %v5616_v0 = vmov 0   ;;  %vm394_vm0 = vcmask 1043456   ;;  %vm369_vm1 = vcmask 64512  }
  0x1b   : > { %s6993_s8 = sand.u32 1, %s5586_s16   ;;  %433 = vmatprep.mubr.bf16.mxu0 %v5616_v0  ;;  %473 = vmatprep.mubr.bf16.mxu1 %v5616_v0  ;;  %v5760_v14 = vld [vmem:[%s6990_s3] ss:$0 sm:$0xff] }
  0x1c   : > { %s256_s9 = scalar_select %p255_p12, %s5598_s19, 1  ;;  %7003 = vst [vmem:[#allocation7_spill] sm:$0xff] %v5760_v14 }
  0x1d   : > { %s260_s10 = scalar_select %p259_p13, %s5594_s18, 1 }
  0x1e   : > { %s4643_s11 = sshll.u32 %s256_s9, 1  ;;  %s5741_s12 = sshll.u32 %s6993_s8, 5 }
  0x1f   : > { %s264_s13 = sadd.s32 %s4643_s11, %s260_s10  ;;  %s4701_s23 = sshll.u32 %s256_s9, 3 }
  0x20   : > { %s4644_s14 = sshll.u32 %s264_s13, 2  ;;  %s275_s26 = scalar_lea.vmem %s6988_s1, %s4701_s23 }
  0x21   : > { %s266_s30 = scalar_lea.vmem %s6987_s0, %s4644_s14  ;;  %v315_v2 = vld [vmem:[%s275_s26] sm:$0xff]  ;;  %s5763_s11 = smov 0  }
  0x22   : > { %v314_v1 = vld [vmem:[%s266_s30] sm:$0xf]  ;;  %v4648_v3 = vcombine.high %v315_v2, %v315_v2  ;;  %v4647_v4 = vcombine.low %v315_v2, %v315_v2 }
  0x23   : > { %348 = vxpose.xlu0.c.b16.start.end [1/1] (short) %v314_v1, 128 }
  0x24   : > { %4649 = vmatprep.subr.msk.bf16.mxu0 %vm394_vm0, %v4648_v3  ;;  %v396_v5 = vsel %vm394_vm0, %v4647_v4, 0  ;;  %5407 = vmatprep.subr.msk.bf16.mxu1 %vm394_vm0, %v4648_v3 }
  0x25   : > { %402 = vmatpush1.bf16.msra.mxu0 %v396_v5  ;;  %5408 = vmatpush1.bf16.msra.mxu1 %v396_v5 }
  0x89   : > { %v356_v6 = vpop.trf.xlu0 }
  0x8a   : > { %4650 = vmatmul.mubr.msk.bf16.vlgmr.msra.gmra.mrb[0].mxu0 %vm369_vm1, %v356_v6 }
  0x8b   : > { %443 = vmatprep.mubr.bf16.mxu0 %v5616_v0 }
  0x8d   : > { %v357_v7 = vpop.trf.xlu0 }
  0x91   : > { %v358_v8 = vpop.trf.xlu0 }
  0x92   : > { %4651 = vmatmul.mubr.msk.bf16.gmra.mrb[4].mxu0 %vm369_vm1, %v357_v7 }
  0x93   : > { %453 = vmatprep.mubr.bf16.mxu0 %v5616_v0 }
  0x95   : > { %v359_v9 = vpop.trf.xlu0 }
  0x99   : > { %v360_v10 = vpop.trf.xlu0 }
  0x9a   : > { %4652 = vmatmul.mubr.msk.bf16.gmra.mrb[8].mxu0 %vm369_vm1, %v358_v8  ;;  %4654 = vmatmul.mubr.msk.bf16.vlgmr.msra.gmra.mrb[0].mxu1 %vm369_vm1, %v360_v10 }
  0x9b   : > { %463 = vmatprep.mubr.bf16.mxu0 %v5616_v0  ;;  %483 = vmatprep.mubr.bf16.mxu1 %v5616_v0 }
  0x9d   : > { %v361_v11 = vpop.trf.xlu0 }
  0xa1   : > { %v362_v12 = vpop.trf.xlu0 }
  0xa2   : > { %4653 = vmatmul.mubr.msk.bf16.gmra.mrb[12].mxu0 %vm369_vm1, %v359_v9  ;;  %4655 = vmatmul.mubr.msk.bf16.gmra.mrb[4].mxu1 %vm369_vm1, %v361_v11 }
  0xa3   : > { %493 = vmatprep.mubr.bf16.mxu1 %v5616_v0 }
  0xa5   : > { %v363_v13 = vpop.trf.xlu0 }
  0xaa   : > { %4656 = vmatmul.mubr.msk.bf16.gmra.mrb[8].mxu1 %vm369_vm1, %v362_v12 }
  0xab   : > { %503 = vmatprep.mubr.bf16.mxu1 %v5616_v0 }
  0xb2   : > { %4657 = vmatmul.mubr.msk.bf16.gmra.mrb[12].mxu1 %vm369_vm1, %v363_v13 }
 0x15d   : > { %v435_v15 = vpop.f32.mrb[0].mxu0 }
 0x15e   : > { %v437_v16 = vpop.f32.mrb[1].mxu0  ;;  %546 = vst [vmem:[#allocation2] sm:$0xff] %v435_v15 }
 0x15f   : > { %v439_v17 = vpop.f32.mrb[2].mxu0  ;;  %547 = vst [vmem:[#allocation2 + $0x8] sm:$0xff] %v437_v16 }
 0x160   : > { %v441_v18 = vpop.f32.mrb[3].mxu0  ;;  %548 = vst [vmem:[#allocation2 + $0x10] sm:$0xff] %v439_v17 }
 0x161   : > { %549 = vst [vmem:[#allocation2 + $0x18] sm:$0xff] %v441_v18 }
 0x165   : > { %v445_v19 = vpop.f32.mrb[4].mxu0 }
 0x166   : > { %v447_v20 = vpop.f32.mrb[5].mxu0  ;;  %550 = vst [vmem:[#allocation2 + $0x20] sm:$0xff] %v445_v19 }
 0x167   : > { %v449_v21 = vpop.f32.mrb[6].mxu0  ;;  %551 = vst [vmem:[#allocation2 + $0x28] sm:$0xff] %v447_v20 }
 0x168   : > { %v451_v22 = vpop.f32.mrb[7].mxu0  ;;  %552 = vst [vmem:[#allocation2 + $0x30] sm:$0xff] %v449_v21 }
 0x169   : > { %553 = vst [vmem:[#allocation2 + $0x38] sm:$0xff] %v451_v22 }
 0x16d   : > { %v455_v23 = vpop.f32.mrb[8].mxu0  ;;  %v475_v24 = vpop.f32.mrb[0].mxu1 }
 0x16e   : > { %v457_v25 = vpop.f32.mrb[9].mxu0  ;;  %v477_v26 = vpop.f32.mrb[1].mxu1  ;;  %554 = vst [vmem:[#allocation2 + $0x40] sm:$0xff] %v455_v23  ;;  %562 = vst [vmem:[#allocation2 + $0x80] sm:$0xff] %v475_v24 }
 0x16f   : > { %v459_v27 = vpop.f32.mrb[10].mxu0  ;;  %v479_v28 = vpop.f32.mrb[2].mxu1  ;;  %555 = vst [vmem:[#allocation2 + $0x48] sm:$0xff] %v457_v25  ;;  %563 = vst [vmem:[#allocation2 + $0x88] sm:$0xff] %v477_v26 }
 0x170   : > { %v461_v29 = vpop.f32.mrb[11].mxu0  ;;  %v481_v30 = vpop.f32.mrb[3].mxu1  ;;  %556 = vst [vmem:[#allocation2 + $0x50] sm:$0xff] %v459_v27  ;;  %564 = vst [vmem:[#allocation2 + $0x90] sm:$0xff] %v479_v28 }
 0x171   : > { %557 = vst [vmem:[#allocation2 + $0x58] sm:$0xff] %v461_v29  ;;  %565 = vst [vmem:[#allocation2 + $0x98] sm:$0xff] %v481_v30 }
 0x175   : > { %v465_v31 = vpop.f32.mrb[12].mxu0  ;;  %v485_v32 = vpop.f32.mrb[4].mxu1 }
 0x176   : > { %v467_v33 = vpop.f32.mrb[13].mxu0  ;;  %v487_v34 = vpop.f32.mrb[5].mxu1  ;;  %558 = vst [vmem:[#allocation2 + $0x60] sm:$0xff] %v465_v31  ;;  %566 = vst [vmem:[#allocation2 + $0xa0] sm:$0xff] %v485_v32 }
 0x177   : > { %v469_v35 = vpop.f32.mrb[14].mxu0  ;;  %v489_v36 = vpop.f32.mrb[6].mxu1  ;;  %559 = vst [vmem:[#allocation2 + $0x68] sm:$0xff] %v467_v33  ;;  %567 = vst [vmem:[#allocation2 + $0xa8] sm:$0xff] %v487_v34 }
 0x178   : > { %v471_v37 = vpop.f32.mrb[15].mxu0  ;;  %v491_v38 = vpop.f32.mrb[7].mxu1  ;;  %560 = vst [vmem:[#allocation2 + $0x70] sm:$0xff] %v469_v35  ;;  %568 = vst [vmem:[#allocation2 + $0xb0] sm:$0xff] %v489_v36 }
 0x179   : > { %561 = vst [vmem:[#allocation2 + $0x78] sm:$0xff] %v471_v37  ;;  %569 = vst [vmem:[#allocation2 + $0xb8] sm:$0xff] %v491_v38 }
 0x17d   : > { %v495_v39 = vpop.f32.mrb[8].mxu1 }
 0x17e   : > { %v497_v40 = vpop.f32.mrb[9].mxu1  ;;  %570 = vst [vmem:[#allocation2 + $0xc0] sm:$0xff] %v495_v39 }
 0x17f   : > { %v499_v41 = vpop.f32.mrb[10].mxu1  ;;  %571 = vst [vmem:[#allocation2 + $0xc8] sm:$0xff] %v497_v40 }
 0x180   : > { %v501_v42 = vpop.f32.mrb[11].mxu1  ;;  %572 = vst [vmem:[#allocation2 + $0xd0] sm:$0xff] %v499_v41 }
 0x181   : > { %573 = vst [vmem:[#allocation2 + $0xd8] sm:$0xff] %v501_v42 }
 0x185   : > { %v505_v43 = vpop.f32.mrb[12].mxu1 }
 0x186   : > { %v507_v44 = vpop.f32.mrb[13].mxu1  ;;  %574 = vst [vmem:[#allocation2 + $0xe0] sm:$0xff] %v505_v43 }
 0x187   : > { %v509_v45 = vpop.f32.mrb[14].mxu1  ;;  %575 = vst [vmem:[#allocation2 + $0xe8] sm:$0xff] %v507_v44 }
 0x188   : > { %v511_v46 = vpop.f32.mrb[15].mxu1  ;;  %576 = vst [vmem:[#allocation2 + $0xf0] sm:$0xff] %v509_v45 }
 0x189   : > { %577 = vst [vmem:[#allocation2 + $0xf8] sm:$0xff] %v511_v46 }
 0x18a LB: >> { %s4658_s13 = sshll.u32 %s5614_s11, 5  ;;  %s5617_s27 = smov 120   ;;  %vm5633_vm2 = vmmov 0   ;;  %vm654_vm3 = vcmask 261120   ;;  %vm4498_vm4 = vcmask 130048   ;;  %s5614_s11 = sphi %s5763_s11, %s587_s11  }
 0x18b   : >> { %s589_s14 = sshra.s32 %s4658_s13, 3  ;;  %s5618_s30 = smov 112  }
 0x18c   : >> { %s4702_s23 = sshll.u32 %s589_s14, 4  ;;  %s5619_s5 = smov 104  }
 0x18d   : >> { %s5769_s24 = scalar_lea.vmem [#allocation2], %s4702_s23  ;;  %s5620_s6 = smov 96  }
 0x18e   : >> { %s5621_s26 = smov 80   ;;  %s5622_s9 = smov 88  }
 0x18f   : >> { %s6994_s13 = smov 64   ;;  %s5624_s14 = smov 48  }
 0x190   : >> { %v5772_v47 = vld [vmem:[%s5769_s24 + $0x20] sm:$0xff]  ;;  %v5782_v49 = vld [vmem:[%s5769_s24 + $0x30] sm:$0xff]  ;;  %s5625_s23 = smov 72   ;;  %s6996_s8 = smov 40   ;;  %v5876_v51 = vld [vmem:[%s5769_s24 + $0x8] sm:$0xff] }
 0x191   : >> { %v5775_v48 = vld [vmem:[%s5769_s24] sm:$0xff]  ;;  %614 = vrot.lane.b32.xlu1 %v5772_v47, %s5617_s27  ;;  %v5785_v50 = vld [vmem:[%s5769_s24 + $0x10] sm:$0xff]  ;;  %s6998_s10 = smov 56   ;;  %v5883_v52 = vld [vmem:[%s5769_s24 + $0x28] sm:$0xff] }
 0x192   : >> { %610 = vrot.lane.b32.xlu0 %v5775_v48, %s5617_s27  ;;  %v5890_v53 = vld [vmem:[%s5769_s24 + $0x38] sm:$0xff] }
 0x193   : >> { %v5901_v54 = vld [vmem:[%s5769_s24 + $0x18] sm:$0xff]  ;;  %s5631_s24 = smov 8  }
 0x195   : >> { %616 = vrot.lane.b32.xlu1 %v5782_v49, %s5617_s27 }
 0x196   : >> { %612 = vrot.lane.b32.xlu0 %v5785_v50, %s5617_s27 }
 0x199   : >> { %839 = vrot.lane.b32.xlu1 %v5785_v50, %s5618_s30 }
 0x19a   : >> { %837 = vrot.lane.b32.xlu0 %v5775_v48, %s5618_s30 }
 0x19d   : >> { %843 = vrot.lane.b32.xlu1 %v5782_v49, %s5618_s30 }
 0x19e   : >> { %841 = vrot.lane.b32.xlu0 %v5772_v47, %s5618_s30 }
 0x1a1   : >> { %959 = vrot.lane.b32.xlu1 %v5775_v48, %s5619_s5 }
 0x1a2   : >> { %1081 = vrot.lane.b32.xlu0 %v5775_v48, %s5620_s6 }
 0x1a5   : >> { %961 = vrot.lane.b32.xlu1 %v5785_v50, %s5619_s5 }
 0x1a6   : >> { %1085 = vrot.lane.b32.xlu0 %v5772_v47, %s5620_s6 }
 0x1a9   : >> { %963 = vrot.lane.b32.xlu1 %v5772_v47, %s5619_s5 }
 0x1aa   : >> { %1087 = vrot.lane.b32.xlu0 %v5782_v49, %s5620_s6 }
 0x1ad   : >> { %965 = vrot.lane.b32.xlu1 %v5782_v49, %s5619_s5 }
 0x1ae   : >> { %1325 = vrot.lane.b32.xlu0 %v5775_v48, %s5621_s26 }
 0x1b1   : >> { %1083 = vrot.lane.b32.xlu1 %v5785_v50, %s5620_s6 }
 0x1b2   : >> { %1329 = vrot.lane.b32.xlu0 %v5772_v47, %s5621_s26 }
 0x1b5   : >> { %1203 = vrot.lane.b32.xlu1 %v5775_v48, %s5622_s9 }
 0x1b6   : >> { %1331 = vrot.lane.b32.xlu0 %v5782_v49, %s5621_s26 }
 0x1b9   : >> { %1205 = vrot.lane.b32.xlu1 %v5785_v50, %s5622_s9 }
 0x1ba   : >> { %1569 = vrot.lane.b32.xlu0 %v5775_v48, %s6994_s13 }
 0x1bd   : >> { %1207 = vrot.lane.b32.xlu1 %v5772_v47, %s5622_s9 }
 0x1be   : >> { %1571 = vrot.lane.b32.xlu0 %v5785_v50, %s6994_s13 }
 0x1c1   : >> { %1209 = vrot.lane.b32.xlu1 %v5782_v49, %s5622_s9 }
 0x1c2   : >> { %1575 = vrot.lane.b32.xlu0 %v5782_v49, %s6994_s13 }
 0x1c5   : >> { %1327 = vrot.lane.b32.xlu1 %v5785_v50, %s5621_s26 }
 0x1c6   : >> { %1813 = vrot.lane.b32.xlu0 %v5775_v48, %s5624_s14 }
 0x1c9   : >> { %1447 = vrot.lane.b32.xlu1 %v5775_v48, %s5625_s23 }
 0x1ca   : >> { %1815 = vrot.lane.b32.xlu0 %v5785_v50, %s5624_s14 }
 0x1cd   : >> { %1449 = vrot.lane.b32.xlu1 %v5785_v50, %s5625_s23 }
 0x1ce   : >> { %1817 = vrot.lane.b32.xlu0 %v5772_v47, %s5624_s14 }
 0x1d1   : >> { %1451 = vrot.lane.b32.xlu1 %v5772_v47, %s5625_s23 }
 0x1d2   : >> { %1819 = vrot.lane.b32.xlu0 %v5782_v49, %s5624_s14 }
 0x1d5   : >> { %1453 = vrot.lane.b32.xlu1 %v5782_v49, %s5625_s23 }
 0x1d6   : >> { %1935 = vrot.lane.b32.xlu0 %v5775_v48, %s6996_s8 }
 0x1d9   : >> { %1573 = vrot.lane.b32.xlu1 %v5772_v47, %s6994_s13  ;;  %s5628_s13 = smov 32  }
 0x1da   : >> { %1937 = vrot.lane.b32.xlu0 %v5785_v50, %s6996_s8 }
 0x1dd   : >> { %1691 = vrot.lane.b32.xlu1 %v5775_v48, %s6998_s10 }
 0x1de   : >> { %1939 = vrot.lane.b32.xlu0 %v5772_v47, %s6996_s8 }
 0x1e1   : >> { %1693 = vrot.lane.b32.xlu1 %v5785_v50, %s6998_s10 }
 0x1e2   : >> { %1941 = vrot.lane.b32.xlu0 %v5782_v49, %s6996_s8  ;;  %s5629_s8 = smov 24  }
 0x1e5   : >> { %1695 = vrot.lane.b32.xlu1 %v5772_v47, %s6998_s10 }
 0x1e6   : >> { %2057 = vrot.lane.b32.xlu0 %v5775_v48, %s5628_s13 }
 0x1e9   : >> { %1697 = vrot.lane.b32.xlu1 %v5782_v49, %s6998_s10  ;;  %s5630_s10 = smov 16  }
 0x1ea   : >> { %2059 = vrot.lane.b32.xlu0 %v5785_v50, %s5628_s13 }
 0x1ed   : >> { %2663 = vrot.lane.b32.xlu1 %v5876_v51, %s5617_s27 }
 0x1ee   : >> { %2061 = vrot.lane.b32.xlu0 %v5772_v47, %s5628_s13 }
 0x1f1   : >> { %2667 = vrot.lane.b32.xlu1 %v5883_v52, %s5617_s27 }
 0x1f2   : >> { %2063 = vrot.lane.b32.xlu0 %v5782_v49, %s5628_s13 }
 0x1f5   : >> { %2669 = vrot.lane.b32.xlu1 %v5890_v53, %s5617_s27 }
 0x1f6   : >> { %2179 = vrot.lane.b32.xlu0 %v5775_v48, %s5629_s8 }
 0x1f9   : >> { %2907 = vrot.lane.b32.xlu1 %v5876_v51, %s5619_s5 }
 0x1fa   : >> { %2181 = vrot.lane.b32.xlu0 %v5785_v50, %s5629_s8 }
 0x1fd   : >> { %2909 = vrot.lane.b32.xlu1 %v5901_v54, %s5619_s5 }
 0x1fe   : >> { %2183 = vrot.lane.b32.xlu0 %v5772_v47, %s5629_s8 }
 0x201   : >> { %2911 = vrot.lane.b32.xlu1 %v5883_v52, %s5619_s5 }
 0x202   : >> { %2185 = vrot.lane.b32.xlu0 %v5782_v49, %s5629_s8 }
 0x203   : >> { %v5933_v60 = vpop.permute.xlu1 %614 }
 0x204   : >> { %v5911_v55 = vpop.permute.xlu0 %610 }
 0x205   : >> { %3761 = vrot.lane.b32.xlu1 %v5876_v51, %s5624_s14 }
 0x206   : >> { %2301 = vrot.lane.b32.xlu0 %v5775_v48, %s5630_s10 }
 0x207   : >> { %v5943_v62 = vpop.permute.xlu1 %616 }
 0x208   : >> { %v5916_v56 = vpop.permute.xlu0 %612 }
 0x209   : >> { %4007 = vrot.lane.b32.xlu1 %v5901_v54, %s5628_s13 }
 0x20a   : >> { %2303 = vrot.lane.b32.xlu0 %v5785_v50, %s5630_s10 }
 0x20b   : >> { %v5952_v1 = vpop.permute.xlu1 %839 }
 0x20c   : >> { %v5921_v57 = vpop.permute.xlu0 %837 }
 0x20d   : >> { %4009 = vrot.lane.b32.xlu1 %v5883_v52, %s5628_s13 }
 0x20e   : >> { %2305 = vrot.lane.b32.xlu0 %v5772_v47, %s5630_s10 }
 0x20f   : >> { %v5963_v3 = vpop.permute.xlu1 %843 }
 0x210   : >> { %v5926_v58 = vpop.permute.xlu0 %841 }
 0x211   : >> { %4011 = vrot.lane.b32.xlu1 %v5890_v53, %s5628_s13 }
 0x212   : >> { %2307 = vrot.lane.b32.xlu0 %v5782_v49, %s5630_s10 }
 0x213   : >> { %v960_v6 = vpop.permute.xlu1 %959 }
 0x214   : >> { %v5931_v59 = vpop.permute.xlu0 %1081 }
 0x215   : >> { %4249 = vrot.lane.b32.xlu1 %v5876_v51, %s5630_s10 }
 0x216   : >> { %2423 = vrot.lane.b32.xlu0 %v5775_v48, %s5631_s24 }
 0x217   : >> { %v962_v8 = vpop.permute.xlu1 %961 }
 0x218   : >> { %v5938_v61 = vpop.permute.xlu0 %1085 }
 0x219   : >> { %4251 = vrot.lane.b32.xlu1 %v5901_v54, %s5630_s10 }
 0x21a   : >> { %2425 = vrot.lane.b32.xlu0 %v5785_v50, %s5631_s24 }
 0x21b   : >> { %v964_v11 = vpop.permute.xlu1 %963 }
 0x21c   : >> { %v5945_v63 = vpop.permute.xlu0 %1087 }
 0x21d   : >> { %4253 = vrot.lane.b32.xlu1 %v5883_v52, %s5630_s10 }
 0x21e   : >> { %2427 = vrot.lane.b32.xlu0 %v5772_v47, %s5631_s24 }
 0x21f   : >> { %v966_v13 = vpop.permute.xlu1 %965 }
 0x220   : >> { %v5950_v0 = vpop.permute.xlu0 %1325 }
 0x221   : >> { %4255 = vrot.lane.b32.xlu1 %v5890_v53, %s5630_s10  ;;  %s7004_s10 = smov 64  }
 0x222   : >> { %2429 = vrot.lane.b32.xlu0 %v5782_v49, %s5631_s24 }
 0x223   : >> { %v5995_v17 = vpop.permute.xlu1 %1083 }
 0x224   : >> { %v5957_v2 = vpop.permute.xlu0 %1329 }
 0x225   : >> { %4377 = vrot.lane.b32.xlu1 %v5890_v53, %s5631_s24 }
 0x226   : >> { %2665 = vrot.lane.b32.xlu0 %v5901_v54, %s5617_s27  ;;  %s7005_s27 = smov 56  }
 0x227   : >> { %v1204_v19 = vpop.permute.xlu1 %1203 }
 0x228   : >> { %v5965_v4 = vpop.permute.xlu0 %1331 }
 0x22a   : >> { %2785 = vrot.lane.b32.xlu0 %v5876_v51, %s5618_s30 }
 0x22b   : >> { %v1206_v22 = vpop.permute.xlu1 %1205 }
 0x22c   : >> { %v5969_v5 = vpop.permute.xlu0 %1569 }
 0x22e   : >> { %2787 = vrot.lane.b32.xlu0 %v5901_v54, %s5618_s30 }
 0x22f   : >> { %v1208_v24 = vpop.permute.xlu1 %1207 }
 0x230   : >> { %v5973_v7 = vpop.permute.xlu0 %1571 }
 0x232   : >> { %2789 = vrot.lane.b32.xlu0 %v5883_v52, %s5618_s30 }
 0x233   : >> { %v1210_v27 = vpop.permute.xlu1 %1209 }
 0x234   : >> { %v5977_v9 = vpop.permute.xlu0 %1575 }
 0x236   : >> { %2791 = vrot.lane.b32.xlu0 %v5890_v53, %s5618_s30  ;;  %s7006_s30 = smov 40  }
 0x237   : >> { %v6031_v29 = vpop.permute.xlu1 %1327 }
 0x238   : >> { %v5981_v10 = vpop.permute.xlu0 %1813 }
 0x23a   : >> { %2913 = vrot.lane.b32.xlu0 %v5890_v53, %s5619_s5 }
 0x23b   : >> { %v1448_v32 = vpop.permute.xlu1 %1447 }
 0x23c   : >> { %v5985_v12 = vpop.permute.xlu0 %1815 }
 0x23e   : >> { %3029 = vrot.lane.b32.xlu0 %v5876_v51, %s5620_s6 }
 0x23f   : >> { %v1450_v34 = vpop.permute.xlu1 %1449 }
 0x240   : >> { %v5989_v15 = vpop.permute.xlu0 %1817 }
 0x242   : >> { %3031 = vrot.lane.b32.xlu0 %v5901_v54, %s5620_s6 }
 0x243   : >> { %v1452_v37 = vpop.permute.xlu1 %1451 }
 0x244   : >> { %v5993_v16 = vpop.permute.xlu0 %1819 }
 0x246   : >> { %3033 = vrot.lane.b32.xlu0 %v5883_v52, %s5620_s6 }
 0x247   : >> { %v1454_v39 = vpop.permute.xlu1 %1453 }
 0x248   : >> { %v5999_v18 = vpop.permute.xlu0 %1935 }
 0x24a   : >> { %3035 = vrot.lane.b32.xlu0 %v5890_v53, %s5620_s6 }
 0x24b   : >> { %v6063_v42 = vpop.permute.xlu1 %1573 }
 0x24c   : >> { %v6003_v20 = vpop.permute.xlu0 %1937 }
 0x24e   : >> { %3151 = vrot.lane.b32.xlu0 %v5876_v51, %s5622_s9  ;;  %728 = vxpose.xlu1.b32.start [1/4] (short) (narrow) %v5775_v48, 8 }
 0x24f   : >> { %v1692_v44 = vpop.permute.xlu1 %1691 }
 0x250   : >> { %v6008_v21 = vpop.permute.xlu0 %1939 }
 0x252   : >> { %3153 = vrot.lane.b32.xlu0 %v5901_v54, %s5622_s9  ;;  %729 = vxpose.xlu1.b32.cont [2/4] (short) (narrow) %v5785_v50, 8 }
 0x254   : >> { %v6013_v23 = vpop.permute.xlu0 %1941 }
 0x256   : >> { %3155 = vrot.lane.b32.xlu0 %v5883_v52, %s5622_s9  ;;  %730 = vxpose.xlu1.b32.cont [3/4] (short) (narrow) %v5772_v47, 8  ;;  %v1694_v47 = vpop.permute.xlu1 %1693 }
 0x258   : >> { %v6018_v25 = vpop.permute.xlu0 %2057 }
 0x25a   : >> { %3157 = vrot.lane.b32.xlu0 %v5890_v53, %s5622_s9  ;;  %731 = vxpose.xlu1.b32.end [4/4] (short) (narrow) %v5782_v49, 8  ;;  %v1696_v49 = vpop.permute.xlu1 %1695  ;;  %s4694_s9 = sshll.u32 %s5614_s11, 3  ;;  %s587_s11 = sadd.s32 1, %s5614_s11  }
 0x25b   : >> { %p584_p0 = scmp.ge.s32.totalorder %s587_s11, 4  }
 0x25c   : >> { %v6023_v26 = vpop.permute.xlu0 %2059 }
 0x25e   : >> { %3273 = vrot.lane.b32.xlu0 %v5876_v51, %s5621_s26  ;;  %971 = vxpose.xlu1.b32.start [1/4] (short) (narrow) %v960_v6, 8 }
 0x260   : >> { %v6027_v28 = vpop.permute.xlu0 %2061 }
 0x262   : >> { %3275 = vrot.lane.b32.xlu0 %v5901_v54, %s5621_s26  ;;  %972 = vxpose.xlu1.b32.cont [2/4] (short) (narrow) %v962_v8, 8  ;;  %v1698_v8 = vpop.permute.xlu1 %1697 }
 0x264   : >> { %v6033_v30 = vpop.permute.xlu0 %2063 }
 0x266   : >> { %3277 = vrot.lane.b32.xlu0 %v5883_v52, %s5621_s26  ;;  %973 = vxpose.xlu1.b32.cont [3/4] (short) (narrow) %v964_v11, 8 }
 0x268   : >> { %v6037_v31 = vpop.permute.xlu0 %2179 }
 0x26a   : >> { %3279 = vrot.lane.b32.xlu0 %v5890_v53, %s5621_s26  ;;  %974 = vxpose.xlu1.b32.end [4/4] (short) (narrow) %v966_v13, 8  ;;  %s7016_s26 = sand.u32 (%p584_p0), 1, %s5586_s16  }
 0x26c   : >> { %v6041_v33 = vpop.permute.xlu0 %2181 }
 0x26e   : >> { %3395 = vrot.lane.b32.xlu0 %v5876_v51, %s5625_s23  ;;  %1215 = vxpose.xlu1.b32.start [1/4] (short) (narrow) %v1204_v19, 8 }
 0x270   : >> { %v6045_v35 = vpop.permute.xlu0 %2183 }
 0x272   : >> { %3397 = vrot.lane.b32.xlu0 %v5901_v54, %s5625_s23  ;;  %1216 = vxpose.xlu1.b32.cont [2/4] (short) (narrow) %v1206_v22, 8 }
 0x274   : >> { %v6049_v36 = vpop.permute.xlu0 %2185 }
 0x276   : >> { %3399 = vrot.lane.b32.xlu0 %v5883_v52, %s5625_s23  ;;  %1217 = vxpose.xlu1.b32.cont [3/4] (short) (narrow) %v1208_v24, 8 }
 0x278   : >> { %v6053_v38 = vpop.permute.xlu0 %2301 }
 0x27a   : >> { %3401 = vrot.lane.b32.xlu0 %v5890_v53, %s5625_s23  ;;  %1218 = vxpose.xlu1.b32.end [4/4] (short) (narrow) %v1210_v27, 8  ;;  %s4696_s23 = sshll.u32 (%p584_p0), %s5594_s18, 2  ;;  %s5635_s18 = smov (%p584_p0), [#allocation3]  }
 0x27c   : >> { %v6057_v40 = vpop.permute.xlu0 %2303 }
 0x27e   : >> { %3517 = vrot.lane.b32.xlu0 %v5876_v51, %s7004_s10  ;;  %1459 = vxpose.xlu1.b32.start [1/4] (short) (narrow) %v1448_v32, 8 }
 0x280   : >> { %v6061_v41 = vpop.permute.xlu0 %2305 }
 0x282   : >> { %3519 = vrot.lane.b32.xlu0 %v5901_v54, %s7004_s10  ;;  %1460 = vxpose.xlu1.b32.cont [2/4] (short) (narrow) %v1450_v34, 8 }
 0x284   : >> { %v6067_v43 = vpop.permute.xlu0 %2307 }
 0x286   : >> { %3521 = vrot.lane.b32.xlu0 %v5883_v52, %s7004_s10  ;;  %1461 = vxpose.xlu1.b32.cont [3/4] (short) (narrow) %v1452_v37, 8 }
 0x288   : >> { %v6071_v45 = vpop.permute.xlu0 %2423 }
 0x28a   : >> { %3523 = vrot.lane.b32.xlu0 %v5890_v53, %s7004_s10  ;;  %1462 = vxpose.xlu1.b32.end [4/4] (short) (narrow) %v1454_v39, 8  ;;  %s7015_s10 = scalar_lea.vmem (%p584_p0), [#allocation3], %s5741_s12 }
 0x28c   : >> { %v6075_v46 = vpop.permute.xlu0 %2425 }
 0x28e   : >> { %3639 = vrot.lane.b32.xlu0 %v5876_v51, %s7005_s27  ;;  %1703 = vxpose.xlu1.b32.start [1/4] (short) (narrow) %v1692_v44, 8 }
 0x290   : >> { %v6079_v48 = vpop.permute.xlu0 %2427 }
 0x292   : >> { %3641 = vrot.lane.b32.xlu0 %v5901_v54, %s7005_s27  ;;  %1704 = vxpose.xlu1.b32.cont [2/4] (short) (narrow) %v1694_v47, 8 }
 0x294   : >> { %v6083_v50 = vpop.permute.xlu0 %2429 }
 0x296   : >> { %3643 = vrot.lane.b32.xlu0 %v5883_v52, %s7005_s27  ;;  %1705 = vxpose.xlu1.b32.cont [3/4] (short) (narrow) %v1696_v49, 8 }
 0x298   : >> { %v6087_v6 = vpop.permute.xlu0 %2665 }
 0x29a   : >> { %3645 = vrot.lane.b32.xlu0 %v5890_v53, %s7005_s27  ;;  %1706 = vxpose.xlu1.b32.end [4/4] (short) (narrow) %v1698_v8, 8  ;;  %s4516_s27 = sshll.u32 (%p584_p0), %s7015_s10, 4  ;;  %s6926_s27 = int_to_ptr.vmem [resolvable:$true] %s4516_s27 }
 0x29c   : >> { %v6091_v11 = vpop.permute.xlu0 %2785 }
 0x29e   : >> { %3763 = vrot.lane.b32.xlu0 %v5901_v54, %s5624_s14  ;;  %1825 = vxpose.xlu1.b32.start [1/4] (short) (narrow) %v5981_v10, 8 }
 0x2a0   : >> { %v6096_v13 = vpop.permute.xlu0 %2787 }
 0x2a2   : >> { %3883 = vrot.lane.b32.xlu0 %v5876_v51, %s7006_s30  ;;  %1826 = vxpose.xlu1.b32.cont [2/4] (short) (narrow) %v5985_v12, 8 }
 0x2a4   : >> { %v6101_v19 = vpop.permute.xlu0 %2789 }
 0x2a6   : >> { %3765 = vrot.lane.b32.xlu0 %v5883_v52, %s5624_s14  ;;  %1827 = vxpose.xlu1.b32.cont [3/4] (short) (narrow) %v5989_v15, 8 }
 0x2a8   : >> { %v6106_v22 = vpop.permute.xlu0 %2791 }
 0x2aa   : >> { %3885 = vrot.lane.b32.xlu0 %v5901_v54, %s7006_s30  ;;  %1828 = vxpose.xlu1.b32.end [4/4] (short) (narrow) %v5993_v16, 8  ;;  %v2664_v16 = vpop.permute.xlu1 %2663 }
 0x2ac   : >> { %v6111_v10 = vpop.permute.xlu0 %2913 }
 0x2ae   : >> { %3767 = vrot.lane.b32.xlu0 %v5890_v53, %s5624_s14  ;;  %1947 = vxpose.xlu1.b32.start [1/4] (short) (narrow) %v5999_v18, 8  ;;  %v6133_v27 = vpop.permute.xlu1 %2667 }
 0x2b0   : >> { %v6116_v12 = vpop.permute.xlu0 %3029 }
 0x2b2   : >> { %3887 = vrot.lane.b32.xlu0 %v5883_v52, %s7006_s30  ;;  %1948 = vxpose.xlu1.b32.cont [2/4] (short) (narrow) %v6003_v20, 8 }
 0x2b4   : >> { %v6121_v15 = vpop.permute.xlu0 %3031 }
 0x2b6   : >> { %3889 = vrot.lane.b32.xlu0 %v5890_v53, %s7006_s30  ;;  %1949 = vxpose.xlu1.b32.cont [3/4] (short) (narrow) %v6008_v21, 8  ;;  %v6142_v21 = vpop.permute.xlu1 %2669 }
 0x2b8   : >> { %v6126_v24 = vpop.permute.xlu0 %3033 }
 0x2ba   : >> { %4005 = vrot.lane.b32.xlu0 %v5876_v51, %s5628_s13  ;;  %1950 = vxpose.xlu1.b32.end [4/4] (short) (narrow) %v6013_v23, 8  ;;  %v6152_v34 = vpop.permute.xlu1 %2907  ;;  %s7013_s13 = scalar_lea.vmem [#allocation3], %s5741_s12 }
 0x2bb   : >> { %s4497_s14 = scalar_lea.vmem %s7013_s13, %s4694_s9 [#allocation3]  ;;  %s6935_s9 = scalar_lea.sflag (%p584_p0), [#allocation4], %s7016_s26 }
 0x2bc   : >> { %v6131_v18 = vpop.permute.xlu0 %3035  ;;  %s5512_s13 = scalar_lea.vmem (%p584_p0), %s6926_s27, 512 }
 0x2bd   : > { %p5513_p1 = scmp.ne.s32.totalorder (%p584_p0), %s6926_s27, %s5512_s13 }
 0x2be   : >> { %4127 = vrot.lane.b32.xlu0 %v5876_v51, %s5629_s8  ;;  %2069 = vxpose.xlu1.b32.start [1/4] (short) (narrow) %v6018_v25, 8 }
 0x2bf   : > { %p5514_p2 = pnand (%p584_p0), %p5513_p1, %p5714_p3 }
 0x2c0   : >> { %v6138_v20 = vpop.permute.xlu0 %3151 }
 0x2c1   : > { %p5515_p4 = pneg (%p584_p0), %p5514_p2 }
 0x2c2   : >> { %4129 = vrot.lane.b32.xlu0 %v5901_v54, %s5629_s8  ;;  %2070 = vxpose.xlu1.b32.cont [2/4] (short) (narrow) %v6023_v26, 8  ;;  %v6161_v26 = vpop.permute.xlu1 %2909 }
 0x2c4   : >> { %v6145_v32 = vpop.permute.xlu0 %3153 }
 0x2c6   : >> { %4131 = vrot.lane.b32.xlu0 %v5883_v52, %s5629_s8  ;;  %2071 = vxpose.xlu1.b32.cont [3/4] (short) (narrow) %v6027_v28, 8  ;;  %v6171_v39 = vpop.permute.xlu1 %2911 }
 0x2c8   : >> { %v6150_v23 = vpop.permute.xlu0 %3155 }
 0x2ca   : >> { %4133 = vrot.lane.b32.xlu0 %v5890_v53, %s5629_s8  ;;  %2072 = vxpose.xlu1.b32.end [4/4] (short) (narrow) %v6033_v30, 8  ;;  %v6178_v44 = vpop.permute.xlu1 %3761 }
 0x2cc   : >> { %v6157_v25 = vpop.permute.xlu0 %3157 }
 0x2ce   : >> { %4371 = vrot.lane.b32.xlu0 %v5876_v51, %s5631_s24  ;;  %2191 = vxpose.xlu1.b32.start [1/4] (short) (narrow) %v6037_v31, 8  ;;  %v6186_v47 = vpop.permute.xlu1 %4007 }
 0x2cf   : >> { %7007 = vst [vmem:[#allocation8_spill] sm:$0xff] %v6186_v47 }
 0x2d0   : >> { %v6164_v37 = vpop.permute.xlu0 %3273 }
 0x2d2   : >> { %4373 = vrot.lane.b32.xlu0 %v5901_v54, %s5631_s24  ;;  %2192 = vxpose.xlu1.b32.cont [2/4] (short) (narrow) %v6041_v33, 8  ;;  %v6191_v8 = vpop.permute.xlu1 %4009 }
 0x2d4   : >> { %v6169_v28 = vpop.permute.xlu0 %3275 }
 0x2d6   : >> { %4375 = vrot.lane.b32.xlu0 %v5883_v52, %s5631_s24  ;;  %2193 = vxpose.xlu1.b32.cont [3/4] (short) (narrow) %v6045_v35, 8  ;;  %v6199_v14 = vpop.permute.xlu1 %4011  ;;  %s4697_s24 = sshll.u32 (%p584_p0), %s5598_s19, 3  ;;  %s5516_s19 = sshll.u32 (%p584_p0), %s5635_s18, 4  ;;  %s5517_s19 = int_to_ptr.vmem [resolvable:$false] %s5516_s19 }
 0x2d7   : > { %s4513_s30 = sadd.s32 (%p584_p0), %s4697_s24, %s4696_s23  ;;  %s5518_s12 = scalar_lea.vmem (%p584_p0), %s5517_s19, 1024 }
 0x2d8   : >> { %v6176_v30 = vpop.permute.xlu0 %3277  ;;  %s4698_s8 = sshll.u32 (%p584_p0), %s4513_s30, 7  ;;  %p5519_p5 = scmp.lt.s32.totalorder (%p584_p0), %s6926_s27, %s5517_s19 }
 0x2d9   : > { %s6931_s11 = scalar_lea.hbm (%p584_p0), %s6991_s4, %s4698_s8  ;;  %p5520_p6 = scmp.lt.s32.totalorder (%p584_p0), %s5518_s12, %s5512_s13 }
 0x2da   : >> { %2194 = vxpose.xlu1.b32.end [4/4] (short) (narrow) %v6049_v36, 8  ;;  %v6204_v47 = vpop.permute.xlu1 %4249 }
 0x2db   : >> { %7008 = vst [vmem:[#allocation9_spill] sm:$0xff] %v6204_v47  ;;  %p5521_p7 = por (%p584_p0), %p5520_p6, %p5519_p5 }
 0x2dc   : >> { %v6181_v31 = vpop.permute.xlu0 %3279 }
 0x2dd   : > { %p5522_p9 = pnand (%p584_p0), %p5521_p7, %p5515_p4 }
 0x2de   : >> { %2313 = vxpose.xlu1.b32.start [1/4] (short) (narrow) %v6053_v38, 8 }
 0x2e0   : >> { %v6184_v33 = vpop.permute.xlu0 %3395 }
 0x2e2   : >> { %2314 = vxpose.xlu1.b32.cont [2/4] (short) (narrow) %v6057_v40, 8 }
 0x2e4   : >> { %v6189_v49 = vpop.permute.xlu0 %3397 }
 0x2e6   : >> { %2315 = vxpose.xlu1.b32.cont [3/4] (short) (narrow) %v6061_v41, 8 }
 0x2e8   : >> { %v6194_v35 = vpop.permute.xlu0 %3399 }
 0x2ea   : >> { %2316 = vxpose.xlu1.b32.end [4/4] (short) (narrow) %v6067_v43, 8  ;;  %v6214_v43 = vpop.permute.xlu1 %4251 }
 0x2ec   : >> { %v6197_v36 = vpop.permute.xlu0 %3401 }
 0x2ee   : >> { %2435 = vxpose.xlu1.b32.start [1/4] (short) (narrow) %v6071_v45, 8  ;;  %v6220_v47 = vpop.permute.xlu1 %4253 }
 0x2f0   : >> { %v6202_v38 = vpop.permute.xlu0 %3517 }
 0x2f2   : >> { %2436 = vxpose.xlu1.b32.cont [2/4] (short) (narrow) %v6075_v46, 8  ;;  %v6233_v46 = vpop.permute.xlu1 %4255 }
 0x2f3   : >> { %7009 = vst [vmem:[#allocation10_spill] sm:$0xff] %v6233_v46 }
 0x2f4   : >> { %622 = vxpose.xlu0.b32.start [1/4] (short) (narrow) %v5911_v55, 8  ;;  %v6208_v40 = vpop.permute.xlu0 %3519 }
 0x2f6   : >> { %2437 = vxpose.xlu1.b32.cont [3/4] (short) (narrow) %v6079_v48, 8  ;;  %v5632_v48 = vmov 0.0|0.0  }
 0x2f7   : >> { %5215 = vmatprep.subr.bf16.mxu0 %v5632_v48  ;;  %5221 = vmatprep.subr.bf16.mxu1 %v5632_v48 }
 0x2f8   : >> { %623 = vxpose.xlu0.b32.cont [2/4] (short) (narrow) %v5916_v56, 8  ;;  %v6212_v41 = vpop.permute.xlu0 %3521  ;;  %v602_v56 = vld [vmem:[%s6989_s2 + $0x20] sm:$0xff] }
 0x2fa   : >> { %2438 = vxpose.xlu1.b32.end [4/4] (short) (narrow) %v6083_v50, 8  ;;  %v599_v50 = vld [vmem:[%s6989_s2 + $0x8] sm:$0xff] }
 0x2fc   : >> { %624 = vxpose.xlu0.b32.cont [3/4] (short) (narrow) %v5933_v60, 8  ;;  %v6218_v45 = vpop.permute.xlu0 %3523  ;;  %v603_v60 = vld [vmem:[%s6989_s2 + $0x28] sm:$0xff] }
 0x2fe   : >> { %2675 = vxpose.xlu1.b32.start [1/4] (short) (narrow) %v2664_v16, 8  ;;  %v604_v16 = vld [vmem:[%s6989_s2 + $0x30] sm:$0xff] }
 0x300   : >> { %625 = vxpose.xlu0.b32.end [4/4] (short) (narrow) %v5943_v62, 8  ;;  %v6224_v55 = vpop.permute.xlu0 %3639  ;;  %v5216_v62 = vpack.c.bf16 %v603_v60, %v602_v56  ;;  %v605_v56 = vld [vmem:[%s6989_s2 + $0x38] sm:$0xff] }
 0x301   : >> { %v5219_v60 = vpack.c.bf16 %v605_v56, %v604_v16 }
 0x302   : >> { %2676 = vxpose.xlu1.b32.cont [2/4] (short) (narrow) %v6087_v6, 8  ;;  %5217 = vmatpush3.bf16.msra.mxu0 %v5216_v62  ;;  %v6261_v62 = vpop.permute.xlu1 %4377 }
 0x303   : >> { %5218 = vmatprep.subr.bf16.mxu0 %v5632_v48 }
 0x304   : >> { %849 = vxpose.xlu0.b32.start [1/4] (short) (narrow) %v5921_v57, 8  ;;  %v598_v57 = vld [vmem:[%s6989_s2] sm:$0xff]  ;;  %v6252_v46 = vpop.permute.xlu0 %3641 }
 0x305   : >> { %v5222_v6 = vpack.c.bf16 %v599_v50, %v598_v57  ;;  %v5634_v50 = vmov 0.0  }
 0x306   : >> { %2677 = vxpose.xlu1.b32.cont [3/4] (short) (narrow) %v6133_v27, 8  ;;  %v601_v27 = vld [vmem:[%s6989_s2 + $0x18] sm:$0xff]  ;;  %5220 = vmatpush3.bf16.msra.mxu0 %v5219_v60  ;;  %v957_v60 = vld [vmem:[%s6989_s2 + $0x70] sm:$0xff] }
 0x307   : >> { %5223 = vmatpush3.bf16.msra.mxu1 %v5222_v6  ;;  %5227 = vmatprep.subr.bf16.mxu0 %v5632_v48  ;;  %v744_v6 = vpop.trf.xlu1 }
 0x308   : >> { %850 = vxpose.xlu0.b32.cont [2/4] (short) (narrow) %v5952_v1, 8  ;;  %5224 = vmatprep.subr.bf16.mxu1 %v5632_v48  ;;  %v600_v1 = vld [vmem:[%s6989_s2 + $0x10] sm:$0xff]  ;;  %v6278_v56 = vpop.permute.xlu0 %3643 }
 0x309   : >> { %v5225_v57 = vpack.c.bf16 %v601_v27, %v600_v1  ;;  %4871 = vmatprep.mubr.msk.f32.mxu0 %vm5633_vm2, %v5634_v50  ;;  %4882 = vmatprep.mubr.msk.f32.mxu1 %vm5633_vm2, %v5634_v50  ;;  %v1199_v27 = vld [vmem:[%s6989_s2 + $0xa0] sm:$0xff] }
 0x30a   : >> { %2678 = vxpose.xlu1.b32.end [4/4] (short) (narrow) %v6142_v21, 8  ;;  %v955_v21 = vld [vmem:[%s6989_s2 + $0x60] sm:$0xff] }
 0x30b   : >> { %5226 = vmatpush3.bf16.msra.mxu1 %v5225_v57  ;;  %v1200_v57 = vld [vmem:[%s6989_s2 + $0xa8] sm:$0xff] }
 0x30c   : >> { %851 = vxpose.xlu0.b32.cont [3/4] (short) (narrow) %v5926_v58, 8  ;;  %5233 = vmatprep.subr.bf16.mxu1 %v5632_v48  ;;  %v956_v58 = vld [vmem:[%s6989_s2 + $0x68] sm:$0xff] }
 0x30d   : >> { %v5234_v16 = vpack.c.bf16 %v956_v58, %v955_v21  ;;  %v987_v21 = vpop.trf.xlu1 }
 0x30e   : >> { %2919 = vxpose.xlu1.b32.start [1/4] (short) (narrow) %v6152_v34, 8  ;;  %4883 = vmatmul.mubr.msk.f32.vlgmr.msra.gmra.mrb[0].mxu1 %vm654_vm3, %v744_v6  ;;  %v958_v34 = vld [vmem:[%s6989_s2 + $0x78] sm:$0xff] }
 0x30f   : >> { %5235 = vmatpush3.bf16.msra.mxu1 %v5234_v16  ;;  %4904 = vmatprep.mubr.msk.f32.mxu1 %vm5633_vm2, %v5634_v50  ;;  %v5237_v1 = vpack.c.bf16 %v958_v34, %v957_v60  ;;  %v1443_v16 = vld [vmem:[%s6989_s2 + $0xe0] sm:$0xff]  ;;  %v1444_v60 = vld [vmem:[%s6989_s2 + $0xe8] sm:$0xff]  ;;  %v1446_v34 = vld [vmem:[%s6989_s2 + $0xf8] sm:$0xff] }
 0x310   : >> { %852 = vxpose.xlu0.b32.end [4/4] (short) (narrow) %v5963_v3, 8  ;;  %5236 = vmatprep.subr.bf16.mxu1 %v5632_v48  ;;  %v6293_v3 = vpop.permute.xlu0 %3645 }
 0x311   : >> { %v1231_v6 = vpop.trf.xlu1 }
 0x312   : >> { %2920 = vxpose.xlu1.b32.cont [2/4] (short) (narrow) %v6161_v26, 8  ;;  %v5246_v26 = vpack.c.bf16 %v1200_v57, %v1199_v27  ;;  %v1687_v27 = vld [vmem:[%s6989_s2 + $0x120] sm:$0xff]  ;;  %v1688_v57 = vld [vmem:[%s6989_s2 + $0x128] sm:$0xff] }
 0x313   : >> { %5238 = vmatpush3.bf16.msra.mxu1 %v5237_v1 }
 0x314   : >> { %1093 = vxpose.xlu0.b32.start [1/4] (short) (narrow) %v5931_v59, 8  ;;  %5245 = vmatprep.subr.bf16.mxu1 %v5632_v48  ;;  %v1201_v59 = vld [vmem:[%s6989_s2 + $0xb0] sm:$0xff] }
 0x316   : >> { %2921 = vxpose.xlu1.b32.cont [3/4] (short) (narrow) %v6171_v39, 8  ;;  %4905 = vmatmul.mubr.msk.f32.vlgmr.msra.gmra.mrb[2].mxu1 %vm654_vm3, %v987_v21  ;;  %v1202_v39 = vld [vmem:[%s6989_s2 + $0xb8] sm:$0xff]  ;;  %v5270_v21 = vpack.c.bf16 %v1688_v57, %v1687_v27 }
 0x317   : >> { %5247 = vmatpush3.bf16.msra.mxu1 %v5246_v26  ;;  %4926 = vmatprep.mubr.msk.f32.mxu1 %vm5633_vm2, %v5634_v50  ;;  %v5249_v58 = vpack.c.bf16 %v1202_v39, %v1201_v59 }
 0x318   : >> { %1094 = vxpose.xlu0.b32.cont [2/4] (short) (narrow) %v5995_v17, 8  ;;  %5248 = vmatprep.subr.bf16.mxu1 %v5632_v48  ;;  %v6315_v17 = vpop.permute.xlu0 %3763 }
 0x31a   : >> { %2922 = vxpose.xlu1.b32.end [4/4] (short) (narrow) %v6111_v10, 8  ;;  %v5258_v10 = vpack.c.bf16 %v1444_v60, %v1443_v16  ;;  %v2176_v16 = vld [vmem:[%s6989_s2 + $0x1a8] sm:$0xff] }
 0x31b   : >> { %5250 = vmatpush3.bf16.msra.mxu1 %v5249_v58 }
 0x31c   : >> { %1095 = vxpose.xlu0.b32.cont [3/4] (short) (narrow) %v5938_v61, 8  ;;  %5257 = vmatprep.subr.bf16.mxu1 %v5632_v48  ;;  %v1445_v61 = vld [vmem:[%s6989_s2 + $0xf0] sm:$0xff]  ;;  %v6336_v1 = vpop.permute.xlu0 %3883 }
 0x31e   : >> { %3041 = vxpose.xlu1.b32.start [1/4] (short) (narrow) %v6116_v12, 8  ;;  %4927 = vmatmul.mubr.msk.f32.vlgmr.msra.gmra.mrb[4].mxu1 %vm654_vm3, %v1231_v6  ;;  %v5261_v12 = vpack.c.bf16 %v1446_v34, %v1445_v61  ;;  %v2419_v34 = vld [vmem:[%s6989_s2 + $0x1e0] sm:$0xff] }
 0x31f   : >> { %5259 = vmatpush3.bf16.msra.mxu1 %v5258_v10  ;;  %4948 = vmatprep.mubr.msk.f32.mxu1 %vm5633_vm2, %v5634_v50  ;;  %v2178_v10 = vld [vmem:[%s6989_s2 + $0x1b8] sm:$0xff] }
 0x320   : >> { %1096 = vxpose.xlu0.b32.end [4/4] (short) (narrow) %v5945_v63, 8  ;;  %5260 = vmatprep.subr.bf16.mxu1 %v5632_v48  ;;  %v1475_v63 = vpop.trf.xlu1  ;;  %v6349_v26 = vpop.permute.xlu0 %3765 }
 0x322   : >> { %3042 = vxpose.xlu1.b32.cont [2/4] (short) (narrow) %v6121_v15, 8  ;;  %v1690_v15 = vld [vmem:[%s6989_s2 + $0x138] sm:$0xff] }
 0x323   : >> { %5262 = vmatpush3.bf16.msra.mxu1 %v5261_v12 }
 0x324   : >> { %1337 = vxpose.xlu0.b32.start [1/4] (short) (narrow) %v5950_v0, 8  ;;  %5269 = vmatprep.subr.bf16.mxu1 %v5632_v48  ;;  %v1689_v0 = vld [vmem:[%s6989_s2 + $0x130] sm:$0xff]  ;;  %v1719_v39 = vpop.trf.xlu1 }
 0x326   : >> { %3043 = vxpose.xlu1.b32.cont [3/4] (short) (narrow) %v6126_v24, 8  ;;  %4949 = vmatmul.mubr.msk.f32.vlgmr.msra.gmra.mrb[6].mxu1 %vm654_vm3, %v1475_v63  ;;  %v5273_v24 = vpack.c.bf16 %v1690_v15, %v1689_v0  ;;  %v2906_v0 = vld [vmem:[%s6989_s2 + $0x278] sm:$0xff]  ;;  %v1077_v15 = vld [vmem:[%s6989_s2 + $0x80] sm:$0xff] }
 0x327   : >> { %5271 = vmatpush3.bf16.msra.mxu1 %v5270_v21  ;;  %4970 = vmatprep.mubr.msk.f32.mxu1 %vm5633_vm2, %v5634_v50 }
 0x328   : >> { %1338 = vxpose.xlu0.b32.cont [2/4] (short) (narrow) %v6031_v29, 8  ;;  %5272 = vmatprep.subr.bf16.mxu1 %v5632_v48  ;;  %v6364_v29 = vpop.permute.xlu0 %3885 }
 0x32a   : >> { %3044 = vxpose.xlu1.b32.end [4/4] (short) (narrow) %v6131_v18, 8  ;;  %v1932_v18 = vld [vmem:[%s6989_s2 + $0x168] sm:$0xff] }
 0x32b   : >> { %5274 = vmatpush3.bf16.msra.mxu1 %v5273_v24  ;;  %v1078_v24 = vld [vmem:[%s6989_s2 + $0x88] sm:$0xff] }
 0x32c   : >> { %1339 = vxpose.xlu0.b32.cont [3/4] (short) (narrow) %v5957_v2, 8  ;;  %5281 = vmatprep.subr.bf16.mxu1 %v5632_v48  ;;  %v6370_v59 = vpop.permute.xlu0 %3767  ;;  %v1931_v2 = vld [vmem:[%s6989_s2 + $0x160] sm:$0xff] }
 0x32e   : >> { %3163 = vxpose.xlu1.b32.start [1/4] (short) (narrow) %v6138_v20, 8  ;;  %4971 = vmatmul.mubr.msk.f32.vlgmr.msra.gmra.mrb[8].mxu1 %vm654_vm3, %v1719_v39  ;;  %v5282_v20 = vpack.c.bf16 %v1932_v18, %v1931_v2  ;;  %v5240_v39 = vpack.c.bf16 %v1078_v24, %v1077_v15  ;;  %v7010_v2 = vld [vmem:[#allocation8_spill] sm:$0xff]  ;;  %v1079_v18 = vld [vmem:[%s6989_s2 + $0x90] sm:$0xff]  ;;  %v2545_v15 = vld [vmem:[%s6989_s2 + $0x200] sm:$0xff] }
 0x32f   : >> { %4992 = vmatprep.mubr.msk.f32.mxu1 %vm5633_vm2, %v5634_v50  ;;  %v2546_v24 = vld [vmem:[%s6989_s2 + $0x208] sm:$0xff] }
 0x330   : >> { %1340 = vxpose.xlu0.b32.end [4/4] (short) (narrow) %v5965_v4, 8  ;;  %5283 = vmatpush3.bf16.msra.mxu1 %v5282_v20  ;;  %v6384_v4 = vpop.trf.xlu1  ;;  %v6393_v58 = vpop.permute.xlu0 %3887  ;;  %v1080_v20 = vld [vmem:[%s6989_s2 + $0x98] sm:$0xff] }
 0x331   : >> { %5284 = vmatprep.subr.bf16.mxu1 %v5632_v48 }
 0x332   : >> { %3164 = vxpose.xlu1.b32.cont [2/4] (short) (narrow) %v6145_v32, 8  ;;  %v1934_v32 = vld [vmem:[%s6989_s2 + $0x178] sm:$0xff] }
 0x334   : >> { %1581 = vxpose.xlu0.b32.start [1/4] (short) (narrow) %v5969_v5, 8  ;;  %v1933_v5 = vld [vmem:[%s6989_s2 + $0x170] sm:$0xff] }
 0x335   : >> { %v5285_v6 = vpack.c.bf16 %v1934_v32, %v1933_v5  ;;  %v5243_v32 = vpack.c.bf16 %v1080_v20, %v1079_v18  ;;  %v2548_v18 = vld [vmem:[%s6989_s2 + $0x218] sm:$0xff] }
 0x336   : >> { %3165 = vxpose.xlu1.b32.cont [3/4] (short) (narrow) %v6150_v23, 8  ;;  %v2175_v23 = vld [vmem:[%s6989_s2 + $0x1a0] sm:$0xff] }
 0x337   : >> { %5286 = vmatpush3.bf16.msra.mxu1 %v5285_v6  ;;  %v5294_v60 = vpack.c.bf16 %v2176_v16, %v2175_v23  ;;  %v3148_v6 = vld [vmem:[%s6989_s2 + $0x2a8] sm:$0xff]  ;;  %v3150_v23 = vld [vmem:[%s6989_s2 + $0x2b8] sm:$0xff]  ;;  %v7011_v16 = vld [vmem:[#allocation9_spill] sm:$0xff] }
 0x338   : >> { %1582 = vxpose.xlu0.b32.cont [2/4] (short) (narrow) %v5973_v7, 8  ;;  %v1963_v7 = vpop.trf.xlu1  ;;  %5293 = vmatprep.subr.bf16.mxu1 %v5632_v48 }
 0x33a   : >> { %3166 = vxpose.xlu1.b32.end [4/4] (short) (narrow) %v6157_v25, 8  ;;  %4993 = vmatmul.mubr.msk.f32.vlgmr.msra.gmra.mrb[10].mxu1 %vm654_vm3, %v1963_v7  ;;  %v6406_v25 = vpop.permute.xlu0 %3889  ;;  %v3149_v7 = vld [vmem:[%s6989_s2 + $0x2b0] sm:$0xff] }
 0x33b   : >> { %5295 = vmatpush3.bf16.msra.mxu1 %v5294_v60  ;;  %5014 = vmatprep.mubr.msk.f32.mxu1 %vm5633_vm2, %v5634_v50  ;;  %v1321_v60 = vld [vmem:[%s6989_s2 + $0xc0] sm:$0xff] }
 0x33c   : >> { %1583 = vxpose.xlu0.b32.cont [3/4] (short) (narrow) %v6063_v42, 8  ;;  %5296 = vmatprep.subr.bf16.mxu1 %v5632_v48  ;;  %v2177_v42 = vld [vmem:[%s6989_s2 + $0x1b0] sm:$0xff] }
 0x33e   : >> { %3285 = vxpose.xlu1.b32.start [1/4] (short) (narrow) %v6164_v37, 8  ;;  %v5297_v37 = vpack.c.bf16 %v2178_v10, %v2177_v42  ;;  %v6425_v61 = vpop.trf.xlu1  ;;  %v5345_v42 = vpack.c.bf16 %v3150_v23, %v3149_v7 }
 0x340   : >> { %1584 = vxpose.xlu0.b32.end [4/4] (short) (narrow) %v5977_v9, 8  ;;  %5298 = vmatpush3.bf16.msra.mxu1 %v5297_v37  ;;  %v6421_v9 = vpop.permute.xlu0 %4005  ;;  %v1323_v37 = vld [vmem:[%s6989_s2 + $0xd0] sm:$0xff] }
 0x341   : >> { %5305 = vmatprep.subr.bf16.mxu1 %v5632_v48 }
 0x342   : >> { %3286 = vxpose.xlu1.b32.cont [2/4] (short) (narrow) %v6169_v28, 8  ;;  %v2420_v28 = vld [vmem:[%s6989_s2 + $0x1e8] sm:$0xff] }
 0x343   : >> { %v5306_v12 = vpack.c.bf16 %v2420_v28, %v2419_v34 }
 0x344   : >> { %2549 = vxpose.xlu0.b32.start [1/4] (short) (narrow) %v5876_v51, 8  ;;  %v6434_v51 = vpop.permute.xlu0 %4127 }
 0x346   : >> { %3287 = vxpose.xlu1.b32.cont [3/4] (short) (narrow) %v6176_v30, 8  ;;  %v2422_v30 = vld [vmem:[%s6989_s2 + $0x1f8] sm:$0xff] }
 0x348   : >> { %2550 = vxpose.xlu0.b32.cont [2/4] (short) (narrow) %v5901_v54, 8  ;;  %v2421_v54 = vld [vmem:[%s6989_s2 + $0x1f0] sm:$0xff] }
 0x34a   : >> { %3288 = vxpose.xlu1.b32.end [4/4] (short) (narrow) %v6181_v31, 8  ;;  %v5309_v31 = vpack.c.bf16 %v2422_v30, %v2421_v54  ;;  %v1567_v54 = vld [vmem:[%s6989_s2 + $0x110] sm:$0xff]  ;;  %v1568_v30 = vld [vmem:[%s6989_s2 + $0x118] sm:$0xff] }
 0x34c   : >> { %2551 = vxpose.xlu0.b32.cont [3/4] (short) (narrow) %v5883_v52, 8  ;;  %v6448_v52 = vpop.permute.xlu0 %4129 }
 0x34e   : >> { %3407 = vxpose.xlu1.b32.start [1/4] (short) (narrow) %v6184_v33, 8  ;;  %v2207_v63 = vpop.trf.xlu1 }
 0x34f   : >> { %5015 = vmatmul.mubr.msk.f32.vlgmr.msra.gmra.mrb[12].mxu1 %vm654_vm3, %v2207_v63 }
 0x350   : >> { %2552 = vxpose.xlu0.b32.end [4/4] (short) (narrow) %v5890_v53, 8  ;;  %5307 = vmatpush3.bf16.msra.mxu1 %v5306_v12  ;;  %v6455_v53 = vpop.permute.xlu0 %4131 }
 0x351   : >> { %5036 = vmatprep.mubr.msk.f32.mxu1 %vm5633_vm2, %v5634_v50  ;;  %5308 = vmatprep.subr.bf16.mxu1 %v5632_v48 }
 0x352   : >> { %3408 = vxpose.xlu1.b32.cont [2/4] (short) (narrow) %v6189_v49, 8 }
 0x354   : >> { %2797 = vxpose.xlu0.b32.start [1/4] (short) (narrow) %v6091_v11, 8  ;;  %5310 = vmatpush3.bf16.msra.mxu1 %v5309_v31  ;;  %v6460_v33 = vpop.permute.xlu0 %4133  ;;  %v5267_v31 = vpack.c.bf16 %v1568_v30, %v1567_v54  ;;  %v3880_v54 = vld [vmem:[%s6989_s2 + $0x368] sm:$0xff] }
 0x355   : >> { %5317 = vmatprep.subr.bf16.mxu1 %v5632_v48 }
 0x356   : >> { %3409 = vxpose.xlu1.b32.cont [3/4] (short) (narrow) %v6194_v35, 8 }
 0x358   : >> { %2798 = vxpose.xlu0.b32.cont [2/4] (short) (narrow) %v6096_v13, 8  ;;  %v6465_v11 = vpop.permute.xlu0 %4371 }
 0x35a   : >> { %3410 = vxpose.xlu1.b32.end [4/4] (short) (narrow) %v6197_v36, 8  ;;  %v2657_v36 = vld [vmem:[%s6989_s2 + $0x230] sm:$0xff] }
 0x35c   : >> { %2799 = vxpose.xlu0.b32.cont [3/4] (short) (narrow) %v6101_v19, 8  ;;  %v6472_v49 = vpop.permute.xlu0 %4373  ;;  %v2655_v19 = vld [vmem:[%s6989_s2 + $0x220] sm:$0xff] }
 0x35e   : >> { %3529 = vxpose.xlu1.b32.start [1/4] (short) (narrow) %v6202_v38, 8  ;;  %v6470_v13 = vpop.trf.xlu1  ;;  %v2658_v38 = vld [vmem:[%s6989_s2 + $0x238] sm:$0xff] }
 0x360   : >> { %2800 = vxpose.xlu0.b32.end [4/4] (short) (narrow) %v6106_v22, 8  ;;  %v2656_v22 = vld [vmem:[%s6989_s2 + $0x228] sm:$0xff] }
 0x361   : >> { %v5318_v35 = vpack.c.bf16 %v2656_v22, %v2655_v19  ;;  %v1809_v19 = vld [vmem:[%s6989_s2 + $0x140] sm:$0xff]  ;;  %v1810_v22 = vld [vmem:[%s6989_s2 + $0x148] sm:$0xff] }
 0x362   : >> { %3530 = vxpose.xlu1.b32.cont [2/4] (short) (narrow) %v6208_v40, 8  ;;  %v833_v40 = vld [vmem:[%s6989_s2 + $0x40] sm:$0xff] }
 0x364   : >> { %3651 = vxpose.xlu0.b32.start [1/4] (short) (narrow) %v6224_v55, 8  ;;  %v6495_v55 = vpop.permute.xlu0 %4375 }
 0x366   : >> { %3531 = vxpose.xlu1.b32.cont [3/4] (short) (narrow) %v6212_v41, 8  ;;  %v834_v41 = vld [vmem:[%s6989_s2 + $0x48] sm:$0xff] }
 0x368   : >> { %3652 = vxpose.xlu0.b32.cont [2/4] (short) (narrow) %v6252_v46, 8  ;;  %v5321_v46 = vpack.c.bf16 %v2658_v38, %v2657_v36  ;;  %v5276_v38 = vpack.c.bf16 %v1810_v22, %v1809_v19 }
 0x36a   : >> { %3532 = vxpose.xlu1.b32.end [4/4] (short) (narrow) %v6218_v45, 8 }
 0x36c   : >> { %3653 = vxpose.xlu0.b32.cont [3/4] (short) (narrow) %v6278_v56, 8  ;;  %v835_v56 = vld [vmem:[%s6989_s2 + $0x50] sm:$0xff] }
 0x36e   : >> { %3773 = vxpose.xlu1.b32.start [1/4] (short) (narrow) %v6178_v44, 8  ;;  %v2451_v45 = vpop.trf.xlu1  ;;  %v5228_v44 = vpack.c.bf16 %v834_v41, %v833_v40  ;;  %v1811_v40 = vld [vmem:[%s6989_s2 + $0x150] sm:$0xff]  ;;  %v1812_v41 = vld [vmem:[%s6989_s2 + $0x158] sm:$0xff] }
 0x36f   : >> { %5037 = vmatmul.mubr.msk.f32.vlgmr.msra.gmra.mrb[14].mxu1 %vm654_vm3, %v2451_v45 }
 0x370   : >> { %3654 = vxpose.xlu0.b32.end [4/4] (short) (narrow) %v6293_v3, 8  ;;  %5319 = vmatpush3.bf16.msra.mxu1 %v5318_v35  ;;  %v836_v3 = vld [vmem:[%s6989_s2 + $0x58] sm:$0xff] }
 0x371   : >> { %5058 = vmatprep.mubr.msk.f32.mxu1 %vm5633_vm2, %v5634_v50  ;;  %5320 = vmatprep.subr.bf16.mxu1 %v5632_v48  ;;  %v5231_v57 = vpack.c.bf16 %v836_v3, %v835_v56  ;;  %v2055_v3 = vld [vmem:[%s6989_s2 + $0x190] sm:$0xff] }
 0x372   : >> { %3774 = vxpose.xlu1.b32.cont [2/4] (short) (narrow) %v6315_v17, 8  ;;  %v2903_v17 = vld [vmem:[%s6989_s2 + $0x260] sm:$0xff] }
 0x374   : >> { %3895 = vxpose.xlu0.b32.start [1/4] (short) (narrow) %v6336_v1, 8  ;;  %v638_v27 = vpop.trf.xlu0  ;;  %5322 = vmatpush3.bf16.msra.mxu1 %v5321_v46  ;;  %v2904_v1 = vld [vmem:[%s6989_s2 + $0x268] sm:$0xff]  ;;  %v2053_v46 = vld [vmem:[%s6989_s2 + $0x180] sm:$0xff] }
 0x375   : >> { %4872 = vmatmul.mubr.msk.f32.vlgmr.msra.gmra.mrb[0].mxu0 %vm654_vm3, %v638_v27  ;;  %5329 = vmatprep.subr.bf16.mxu1 %v5632_v48  ;;  %v5330_v21 = vpack.c.bf16 %v2904_v1, %v2903_v17  ;;  %v2056_v27 = vld [vmem:[%s6989_s2 + $0x198] sm:$0xff]  ;;  %v2297_v17 = vld [vmem:[%s6989_s2 + $0x1c0] sm:$0xff]  ;;  %v2298_v1 = vld [vmem:[%s6989_s2 + $0x1c8] sm:$0xff] }
 0x376   : >> { %5229 = vmatpush3.bf16.msra.mxu0 %v5228_v44  ;;  %4893 = vmatprep.mubr.msk.f32.mxu0 %vm5633_vm2, %v5634_v50  ;;  %v2054_v44 = vld [vmem:[%s6989_s2 + $0x188] sm:$0xff] }
 0x377   : >> { %3775 = vxpose.xlu1.b32.cont [3/4] (short) (narrow) %v6349_v26, 8  ;;  %5230 = vmatprep.subr.bf16.mxu0 %v5632_v48  ;;  %v2905_v26 = vld [vmem:[%s6989_s2 + $0x270] sm:$0xff]  ;;  %v5288_v56 = vpack.c.bf16 %v2054_v44, %v2053_v46  ;;  %v3757_v44 = vld [vmem:[%s6989_s2 + $0x340] sm:$0xff] }
 0x378   : >> { %3896 = vxpose.xlu0.b32.cont [2/4] (short) (narrow) %v6364_v29, 8 }
 0x37a   : >> { %5232 = vmatpush3.bf16.msra.mxu0 %v5231_v57  ;;  %v5291_v57 = vpack.c.bf16 %v2056_v27, %v2055_v3  ;;  %v4123_v3 = vld [vmem:[%s6989_s2 + $0x3a0] sm:$0xff]  ;;  %v4124_v27 = vld [vmem:[%s6989_s2 + $0x3a8] sm:$0xff] }
 0x37b   : >> { %3776 = vxpose.xlu1.b32.end [4/4] (short) (narrow) %v6370_v59, 8  ;;  %5239 = vmatprep.subr.bf16.mxu0 %v5632_v48  ;;  %v5333_v59 = vpack.c.bf16 %v2906_v0, %v2905_v26  ;;  %v2300_v26 = vld [vmem:[%s6989_s2 + $0x1d8] sm:$0xff] }
 0x37c   : >> { %3897 = vxpose.xlu0.b32.cont [3/4] (short) (narrow) %v6393_v58, 8  ;;  %v3147_v58 = vld [vmem:[%s6989_s2 + $0x2a0] sm:$0xff] }
 0x37e   : >> { %v2691_v29 = vpop.trf.xlu1 }
 0x37f   : >> { %4017 = vxpose.xlu1.b32.start [1/4] (short) (narrow) %v6421_v9, 8  ;;  %5059 = vmatmul.mubr.msk.f32.vlgmr.msra.gmra.mrb[16].mxu1 %vm654_vm3, %v2691_v29  ;;  %v1324_v9 = vld [vmem:[%s6989_s2 + $0xd8] sm:$0xff] }
 0x380   : >> { %3898 = vxpose.xlu0.b32.end [4/4] (short) (narrow) %v6406_v25, 8  ;;  %5331 = vmatpush3.bf16.msra.mxu1 %v5330_v21  ;;  %v5255_v28 = vpack.c.bf16 %v1324_v9, %v1323_v37  ;;  %v5300_v21 = vpack.c.bf16 %v2298_v1, %v2297_v17  ;;  %v3759_v1 = vld [vmem:[%s6989_s2 + $0x350] sm:$0xff] }
 0x381   : >> { %5080 = vmatprep.mubr.msk.f32.mxu1 %vm5633_vm2, %v5634_v50  ;;  %5332 = vmatprep.subr.bf16.mxu1 %v5632_v48 }
 0x383   : >> { %4018 = vxpose.xlu1.b32.cont [2/4] (short) (narrow) %v7010_v2, 8  ;;  %v2547_v2 = vld [vmem:[%s6989_s2 + $0x210] sm:$0xff] }
 0x384   : >> { %4139 = vxpose.xlu0.b32.start [1/4] (short) (narrow) %v6434_v51, 8  ;;  %v865_v5 = vpop.trf.xlu0  ;;  %5334 = vmatpush3.bf16.msra.mxu1 %v5333_v59  ;;  %v1565_v51 = vld [vmem:[%s6989_s2 + $0x100] sm:$0xff]  ;;  %v5312_v59 = vpack.c.bf16 %v2546_v24, %v2545_v15  ;;  %v4125_v15 = vld [vmem:[%s6989_s2 + $0x3b0] sm:$0xff]  ;;  %v4126_v24 = vld [vmem:[%s6989_s2 + $0x3b8] sm:$0xff] }
 0x385   : >> { %4894 = vmatmul.mubr.msk.f32.vlgmr.msra.gmra.mrb[2].mxu0 %vm654_vm3, %v865_v5  ;;  %5341 = vmatprep.subr.bf16.mxu1 %v5632_v48  ;;  %v5315_v5 = vpack.c.bf16 %v2548_v18, %v2547_v2  ;;  %v5393_v2 = vpack.c.bf16 %v4126_v24, %v4125_v15 }
 0x386   : >> { %5241 = vmatpush3.bf16.msra.mxu0 %v5240_v39  ;;  %4915 = vmatprep.mubr.msk.f32.mxu0 %vm5633_vm2, %v5634_v50  ;;  %v3636_v39 = vld [vmem:[%s6989_s2 + $0x328] sm:$0xff] }
 0x387   : >> { %4019 = vxpose.xlu1.b32.cont [3/4] (short) (narrow) %v6191_v8, 8  ;;  %5242 = vmatprep.subr.bf16.mxu0 %v5632_v48  ;;  %v5342_v8 = vpack.c.bf16 %v3148_v6, %v3147_v58  ;;  %v3638_v58 = vld [vmem:[%s6989_s2 + $0x338] sm:$0xff]  ;;  %v2782_v6 = vld [vmem:[%s6989_s2 + $0x248] sm:$0xff] }
 0x388   : >> { %4140 = vxpose.xlu0.b32.cont [2/4] (short) (narrow) %v6448_v52, 8  ;;  %v3391_v52 = vld [vmem:[%s6989_s2 + $0x2e0] sm:$0xff] }
 0x38a   : >> { %5244 = vmatpush3.bf16.msra.mxu0 %v5243_v32  ;;  %v3637_v32 = vld [vmem:[%s6989_s2 + $0x330] sm:$0xff] }
 0x38b   : >> { %4020 = vxpose.xlu1.b32.end [4/4] (short) (narrow) %v6199_v14, 8  ;;  %5251 = vmatprep.subr.bf16.mxu0 %v5632_v48  ;;  %v1322_v14 = vld [vmem:[%s6989_s2 + $0xc8] sm:$0xff]  ;;  %v5369_v7 = vpack.c.bf16 %v3638_v58, %v3637_v32  ;;  %v4004_v32 = vld [vmem:[%s6989_s2 + $0x398] sm:$0xff] }
 0x38c   : >> { %4141 = vxpose.xlu0.b32.cont [3/4] (short) (narrow) %v6455_v53, 8  ;;  %v5252_v10 = vpack.c.bf16 %v1322_v14, %v1321_v60  ;;  %v3392_v53 = vld [vmem:[%s6989_s2 + $0x2e8] sm:$0xff]  ;;  %v2783_v60 = vld [vmem:[%s6989_s2 + $0x250] sm:$0xff]  ;;  %v2784_v14 = vld [vmem:[%s6989_s2 + $0x258] sm:$0xff] }
 0x38e   : >> { %v2935_v25 = vpop.trf.xlu1 }
 0x38f   : >> { %4261 = vxpose.xlu1.b32.start [1/4] (short) (narrow) %v7011_v16, 8  ;;  %5081 = vmatmul.mubr.msk.f32.vlgmr.msra.gmra.mrb[18].mxu1 %vm654_vm3, %v2935_v25  ;;  %v5327_v25 = vpack.c.bf16 %v2784_v14, %v2783_v60 }
 0x390   : >> { %4142 = vxpose.xlu0.b32.end [4/4] (short) (narrow) %v6460_v33, 8  ;;  %5343 = vmatpush3.bf16.msra.mxu1 %v5342_v8  ;;  %v5354_v33 = vpack.c.bf16 %v3392_v53, %v3391_v52 }
 0x391   : >> { %5102 = vmatprep.mubr.msk.f32.mxu1 %vm5633_vm2, %v5634_v50  ;;  %5344 = vmatprep.subr.bf16.mxu1 %v5632_v48 }
 0x393   : >> { %4262 = vxpose.xlu1.b32.cont [2/4] (short) (narrow) %v6214_v43, 8  ;;  %v7012_v43 = vld [vmem:[#allocation10_spill] sm:$0xff] }
 0x394   : >> { %4383 = vxpose.xlu0.b32.start [1/4] (short) (narrow) %v6465_v11, 8  ;;  %v1109_v34 = vpop.trf.xlu0  ;;  %5346 = vmatpush3.bf16.msra.mxu1 %v5345_v42  ;;  %v3393_v11 = vld [vmem:[%s6989_s2 + $0x2f0] sm:$0xff]  ;;  %v3025_v42 = vld [vmem:[%s6989_s2 + $0x280] sm:$0xff] }
 0x395   : >> { %4916 = vmatmul.mubr.msk.f32.vlgmr.msra.gmra.mrb[4].mxu0 %vm654_vm3, %v1109_v34  ;;  %5353 = vmatprep.subr.bf16.mxu1 %v5632_v48  ;;  %v3027_v34 = vld [vmem:[%s6989_s2 + $0x290] sm:$0xff] }
 0x396   : >> { %5253 = vmatpush3.bf16.msra.mxu0 %v5252_v10  ;;  %4937 = vmatprep.mubr.msk.f32.mxu0 %vm5633_vm2, %v5634_v50  ;;  %v3026_v10 = vld [vmem:[%s6989_s2 + $0x288] sm:$0xff] }
 0x397   : >> { %4263 = vxpose.xlu1.b32.cont [3/4] (short) (narrow) %v6220_v47, 8  ;;  %5254 = vmatprep.subr.bf16.mxu0 %v5632_v48  ;;  %v1566_v47 = vld [vmem:[%s6989_s2 + $0x108] sm:$0xff]  ;;  %v5336_v9 = vpack.c.bf16 %v3026_v10, %v3025_v42  ;;  %v4248_v10 = vld [vmem:[%s6989_s2 + $0x3d8] sm:$0xff] }
 0x398   : >> { %4384 = vxpose.xlu0.b32.cont [2/4] (short) (narrow) %v6472_v49, 8  ;;  %v5264_v12 = vpack.c.bf16 %v1566_v47, %v1565_v51  ;;  %v3394_v49 = vld [vmem:[%s6989_s2 + $0x2f8] sm:$0xff]  ;;  %v3269_v51 = vld [vmem:[%s6989_s2 + $0x2c0] sm:$0xff]  ;;  %v3270_v47 = vld [vmem:[%s6989_s2 + $0x2c8] sm:$0xff] }
 0x399   : >> { %v5357_v36 = vpack.c.bf16 %v3394_v49, %v3393_v11  ;;  %v5348_v30 = vpack.c.bf16 %v3270_v47, %v3269_v51  ;;  %v3881_v11 = vld [vmem:[%s6989_s2 + $0x370] sm:$0xff]  ;;  %v3882_v49 = vld [vmem:[%s6989_s2 + $0x378] sm:$0xff] }
 0x39a   : >> { %5256 = vmatpush3.bf16.msra.mxu0 %v5255_v28  ;;  %v3028_v28 = vld [vmem:[%s6989_s2 + $0x298] sm:$0xff] }
 0x39b   : >> { %4264 = vxpose.xlu1.b32.end [4/4] (short) (narrow) %v7012_v43, 8  ;;  %5263 = vmatprep.subr.bf16.mxu0 %v5632_v48  ;;  %v5339_v43 = vpack.c.bf16 %v3028_v28, %v3027_v34 }
 0x39c   : >> { %4385 = vxpose.xlu0.b32.cont [3/4] (short) (narrow) %v6495_v55, 8  ;;  %v5279_v55 = vpack.c.bf16 %v1812_v41, %v1811_v40  ;;  %v3515_v40 = vld [vmem:[%s6989_s2 + $0x310] sm:$0xff]  ;;  %v3516_v41 = vld [vmem:[%s6989_s2 + $0x318] sm:$0xff] }
 0x39d   : >> { %v5363_v46 = vpack.c.bf16 %v3516_v41, %v3515_v40 }
 0x3a0   : >> { %4386 = vxpose.xlu0.b32.end [4/4] (short) (narrow) %v6261_v62, 8  ;;  %v6621_v62 = vpop.trf.xlu1 }
 0x3a4   : >> { %v1353_v63 = vpop.trf.xlu0 }
 0x3a5   : >> { %4938 = vmatmul.mubr.msk.f32.vlgmr.msra.gmra.mrb[6].mxu0 %vm654_vm3, %v1353_v63  ;;  %v3271_v63 = vld [vmem:[%s6989_s2 + $0x2d0] sm:$0xff] }
 0x3a6   : >> { %5265 = vmatpush3.bf16.msra.mxu0 %v5264_v12  ;;  %4959 = vmatprep.mubr.msk.f32.mxu0 %vm5633_vm2, %v5634_v50  ;;  %v3879_v12 = vld [vmem:[%s6989_s2 + $0x360] sm:$0xff] }
 0x3a7   : >> { %5266 = vmatprep.subr.bf16.mxu0 %v5632_v48  ;;  %v5378_v52 = vpack.c.bf16 %v3880_v54, %v3879_v12 }
 0x3aa   : >> { %5268 = vmatpush3.bf16.msra.mxu0 %v5267_v31  ;;  %v3272_v31 = vld [vmem:[%s6989_s2 + $0x2d8] sm:$0xff] }
 0x3ab   : >> { %5275 = vmatprep.subr.bf16.mxu0 %v5632_v48  ;;  %v5351_v22 = vpack.c.bf16 %v3272_v31, %v3271_v63 }
 0x3ae   : >> { %v3179_v35 = vpop.trf.xlu1 }
 0x3af   : >> { %5103 = vmatmul.mubr.msk.f32.vlgmr.msra.gmra.mrb[20].mxu1 %vm654_vm3, %v3179_v35  ;;  %v3513_v35 = vld [vmem:[%s6989_s2 + $0x300] sm:$0xff] }
 0x3b0   : >> { %5355 = vmatpush3.bf16.msra.mxu1 %v5354_v33  ;;  %5124 = vmatprep.mubr.msk.f32.mxu1 %vm5633_vm2, %v5634_v50 }
 0x3b1   : >> { %5356 = vmatprep.subr.bf16.mxu1 %v5632_v48 }
 0x3b4   : >> { %v1597_v45 = vpop.trf.xlu0  ;;  %5358 = vmatpush3.bf16.msra.mxu1 %v5357_v36  ;;  %v3514_v36 = vld [vmem:[%s6989_s2 + $0x308] sm:$0xff] }
 0x3b5   : >> { %4960 = vmatmul.mubr.msk.f32.vlgmr.msra.gmra.mrb[8].mxu0 %vm654_vm3, %v1597_v45  ;;  %5365 = vmatprep.subr.bf16.mxu1 %v5632_v48 }
 0x3b6   : >> { %5277 = vmatpush3.bf16.msra.mxu0 %v5276_v38  ;;  %4981 = vmatprep.mubr.msk.f32.mxu0 %vm5633_vm2, %v5634_v50  ;;  %v5381_v38 = vpack.c.bf16 %v3882_v49, %v3881_v11 }
 0x3b7   : >> { %5278 = vmatprep.subr.bf16.mxu0 %v5632_v48 }
 0x3ba   : >> { %5280 = vmatpush3.bf16.msra.mxu0 %v5279_v55 }
 0x3bb   : >> { %5287 = vmatprep.subr.bf16.mxu0 %v5632_v48 }
 0x3bd   : >> { %4982 = vmatmul.mubr.msk.f32.vlgmr.msra.gmra.mrb[10].mxu0 %vm654_vm3, %v6384_v4  ;;  %v2299_v4 = vld [vmem:[%s6989_s2 + $0x1d0] sm:$0xff] }
 0x3be   : >> { %5289 = vmatpush3.bf16.msra.mxu0 %v5288_v56  ;;  %5003 = vmatprep.mubr.msk.f32.mxu0 %vm5633_vm2, %v5634_v50  ;;  %v5303_v0 = vpack.c.bf16 %v2300_v26, %v2299_v4  ;;  %v6699_v29 = vpop.trf.xlu1  ;;  %v3758_v56 = vld [vmem:[%s6989_s2 + $0x348] sm:$0xff]  ;;  %v5390_v4 = vpack.c.bf16 %v4124_v27, %v4123_v3 }
 0x3bf   : >> { %5290 = vmatprep.subr.bf16.mxu0 %v5632_v48  ;;  %v5372_v17 = vpack.c.bf16 %v3758_v56, %v3757_v44 }
 0x3c2   : >> { %5292 = vmatpush3.bf16.msra.mxu0 %v5291_v57 }
 0x3c3   : >> { %5299 = vmatprep.subr.bf16.mxu0 %v5632_v48 }
 0x3c4   : >> { %v2565_v23 = vpop.trf.xlu0 }
 0x3c5   : >> { %5004 = vmatmul.mubr.msk.f32.vlgmr.msra.gmra.mrb[12].mxu0 %vm654_vm3, %v6425_v61  ;;  %v3635_v61 = vld [vmem:[%s6989_s2 + $0x320] sm:$0xff] }
 0x3c6   : >> { %5301 = vmatpush3.bf16.msra.mxu0 %v5300_v21  ;;  %5025 = vmatprep.mubr.msk.f32.mxu0 %vm5633_vm2, %v5634_v50  ;;  %v5366_v20 = vpack.c.bf16 %v3636_v39, %v3635_v61  ;;  %v3760_v21 = vld [vmem:[%s6989_s2 + $0x358] sm:$0xff]  ;;  %v4001_v61 = vld [vmem:[%s6989_s2 + $0x380] sm:$0xff]  ;;  %v4002_v39 = vld [vmem:[%s6989_s2 + $0x388] sm:$0xff] }
 0x3c7   : >> { %5302 = vmatprep.subr.bf16.mxu0 %v5632_v48 }
 0x3ca   : >> { %5304 = vmatpush3.bf16.msra.mxu0 %v5303_v0 }
 0x3cb   : >> { %5311 = vmatprep.subr.bf16.mxu0 %v5632_v48 }
 0x3cd   : >> { %5026 = vmatmul.mubr.msk.f32.vlgmr.msra.gmra.mrb[14].mxu0 %vm654_vm3, %v6470_v13  ;;  %v2781_v13 = vld [vmem:[%s6989_s2 + $0x240] sm:$0xff] }
 0x3ce   : >> { %5313 = vmatpush3.bf16.msra.mxu0 %v5312_v59  ;;  %5047 = vmatprep.mubr.msk.f32.mxu0 %vm5633_vm2, %v5634_v50  ;;  %v3423_v8 = vpop.trf.xlu1  ;;  %v5324_v16 = vpack.c.bf16 %v2782_v6, %v2781_v13  ;;  %v5375_v59 = vpack.c.bf16 %v3760_v21, %v3759_v1 }
 0x3cf   : >> { %5314 = vmatprep.subr.bf16.mxu0 %v5632_v48  ;;  %5125 = vmatmul.mubr.msk.f32.vlgmr.msra.gmra.mrb[22].mxu1 %vm654_vm3, %v3423_v8  ;;  %v4245_v8 = vld [vmem:[%s6989_s2 + $0x3c0] sm:$0xff] }
 0x3d0   : >> { %5367 = vmatpush3.bf16.msra.mxu1 %v5366_v20  ;;  %5146 = vmatprep.mubr.msk.f32.mxu1 %vm5633_vm2, %v5634_v50  ;;  %v5384_v20 = vpack.c.bf16 %v4002_v39, %v4001_v61 }
 0x3d1   : >> { %5368 = vmatprep.subr.bf16.mxu1 %v5632_v48 }
 0x3d2   : >> { %5316 = vmatpush3.bf16.msra.mxu0 %v5315_v5  ;;  %v4003_v5 = vld [vmem:[%s6989_s2 + $0x390] sm:$0xff] }
 0x3d3   : >> { %5323 = vmatprep.subr.bf16.mxu0 %v5632_v48  ;;  %v5387_v6 = vpack.c.bf16 %v4004_v32, %v4003_v5 }
 0x3d4   : >> { %5370 = vmatpush3.bf16.msra.mxu1 %v5369_v7  ;;  %v2813_v37 = vpop.trf.xlu0  ;;  %v4246_v7 = vld [vmem:[%s6989_s2 + $0x3c8] sm:$0xff] }
 0x3d5   : >> { %5048 = vmatmul.mubr.msk.f32.vlgmr.msra.gmra.mrb[16].mxu0 %vm654_vm3, %v2565_v23  ;;  %5377 = vmatprep.subr.bf16.mxu1 %v5632_v48  ;;  %v4367_v23 = vld [vmem:[%s6989_s2 + $0x3e0] sm:$0xff]  ;;  %v5396_v14 = vpack.c.bf16 %v4246_v7, %v4245_v8 }
 0x3d6   : >> { %5325 = vmatpush3.bf16.msra.mxu0 %v5324_v16  ;;  %5069 = vmatprep.mubr.msk.f32.mxu0 %vm5633_vm2, %v5634_v50  ;;  %v4368_v16 = vld [vmem:[%s6989_s2 + $0x3e8] sm:$0xff] }
 0x3d7   : >> { %5326 = vmatprep.subr.bf16.mxu0 %v5632_v48  ;;  %v5402_v42 = vpack.c.bf16 %v4368_v16, %v4367_v23 }
 0x3da   : >> { %5328 = vmatpush3.bf16.msra.mxu0 %v5327_v25  ;;  %v4247_v25 = vld [vmem:[%s6989_s2 + $0x3d0] sm:$0xff] }
 0x3db   : >> { %5335 = vmatprep.subr.bf16.mxu0 %v5632_v48  ;;  %v5399_v28 = vpack.c.bf16 %v4248_v10, %v4247_v25 }
 0x3dd   : >> { %5070 = vmatmul.mubr.msk.f32.vlgmr.msra.gmra.mrb[18].mxu0 %vm654_vm3, %v2813_v37  ;;  %v4369_v37 = vld [vmem:[%s6989_s2 + $0x3f0] sm:$0xff] }
 0x3de   : >> { %5337 = vmatpush3.bf16.msra.mxu0 %v5336_v9  ;;  %5091 = vmatprep.mubr.msk.f32.mxu0 %vm5633_vm2, %v5634_v50  ;;  %v3545_v57 = vpop.trf.xlu1  ;;  %v4370_v9 = vld [vmem:[%s6989_s2 + $0x3f8] sm:$0xff] }
 0x3df   : >> { %5338 = vmatprep.subr.bf16.mxu0 %v5632_v48 }
 0x3e1   : >> { %v6783_v53 = vpop.f32.mrb[0].mxu1 }
 0x3e2   : >> { %5340 = vmatpush3.bf16.msra.mxu0 %v5339_v43  ;;  %v4884_v19 = vpop.f32.mrb[1].mxu1  ;;  %v5405_v43 = vpack.c.bf16 %v4370_v9, %v4369_v37 }
 0x3e3   : >> { %5347 = vmatprep.subr.bf16.mxu0 %v5632_v48 }
 0x3e4   : >> { %v3667_v33 = vpop.trf.xlu0 }
 0x3e5   : >> { %5092 = vmatmul.mubr.msk.f32.vlgmr.msra.gmra.mrb[20].mxu0 %vm654_vm3, %v6621_v62  ;;  %5147 = vmatmul.mubr.msk.f32.vlgmr.msra.gmra.mrb[24].mxu1 %vm654_vm3, %v3667_v33  ;;  %v5360_v62 = vpack.c.bf16 %v3514_v36, %v3513_v35 }
 0x3e6   : >> { %5349 = vmatpush3.bf16.msra.mxu0 %v5348_v30  ;;  %5113 = vmatprep.mubr.msk.f32.mxu0 %vm5633_vm2, %v5634_v50 }
 0x3e7   : >> { %5350 = vmatprep.subr.bf16.mxu0 %v5632_v48  ;;  %5379 = vmatpush3.bf16.msra.mxu1 %v5378_v52 }
 0x3e8   : >> { %5380 = vmatprep.subr.bf16.mxu1 %v5632_v48  ;;  %5168 = vmatprep.mubr.msk.f32.mxu1 %vm5633_vm2, %v5634_v50 }
 0x3e9   : >> { %v6813_v45 = vpop.f32.mrb[2].mxu1 }
 0x3ea   : >> { %5352 = vmatpush3.bf16.msra.mxu0 %v5351_v22  ;;  %v4906_v55 = vpop.f32.mrb[3].mxu1 }
 0x3eb   : >> { %5359 = vmatprep.subr.bf16.mxu0 %v5632_v48  ;;  %5382 = vmatpush3.bf16.msra.mxu1 %v5381_v38 }
 0x3ec   : >> { %5389 = vmatprep.subr.bf16.mxu1 %v5632_v48 }
 0x3ed   : >> { %5114 = vmatmul.mubr.msk.f32.vlgmr.msra.gmra.mrb[22].mxu0 %vm654_vm3, %v6699_v29 }
 0x3ee   : >> { %5361 = vmatpush3.bf16.msra.mxu0 %v5360_v62  ;;  %5135 = vmatprep.mubr.msk.f32.mxu0 %vm5633_vm2, %v5634_v50 }
 0x3ef   : >> { %5362 = vmatprep.subr.bf16.mxu0 %v5632_v48  ;;  %v3789_v18 = vpop.trf.xlu1 }
 0x3f1   : >> { %v6840_v26 = vpop.f32.mrb[4].mxu1 }
 0x3f2   : >> { %5364 = vmatpush3.bf16.msra.mxu0 %v5363_v46  ;;  %v4928_v29 = vpop.f32.mrb[5].mxu1 }
 0x3f3   : >> { %5371 = vmatprep.subr.bf16.mxu0 %v5632_v48 }
 0x3f4   : >> { %v3911_v0 = vpop.trf.xlu0 }
 0x3f5   : >> { %5136 = vmatmul.mubr.msk.f32.vlgmr.msra.gmra.mrb[24].mxu0 %vm654_vm3, %v3545_v57  ;;  %5169 = vmatmul.mubr.msk.f32.vlgmr.msra.gmra.mrb[26].mxu1 %vm654_vm3, %v3911_v0 }
 0x3f6   : >> { %5373 = vmatpush3.bf16.msra.mxu0 %v5372_v17  ;;  %5157 = vmatprep.mubr.msk.f32.mxu0 %vm5633_vm2, %v5634_v50 }
 0x3f7   : >> { %5374 = vmatprep.subr.bf16.mxu0 %v5632_v48  ;;  %5391 = vmatpush3.bf16.msra.mxu1 %v5390_v4 }
 0x3f8   : >> { %5392 = vmatprep.subr.bf16.mxu1 %v5632_v48  ;;  %5190 = vmatprep.mubr.msk.f32.mxu1 %vm5633_vm2, %v5634_v50 }
 0x3f9   : >> { %v6869_v58 = vpop.f32.mrb[6].mxu1 }
 0x3fa   : >> { %5376 = vmatpush3.bf16.msra.mxu0 %v5375_v59  ;;  %v4950_v13 = vpop.f32.mrb[7].mxu1 }
 0x3fb   : >> { %5383 = vmatprep.subr.bf16.mxu0 %v5632_v48  ;;  %5394 = vmatpush3.bf16.msra.mxu1 %v5393_v2 }
 0x3fc   : >> { %5401 = vmatprep.subr.bf16.mxu1 %v5632_v48 }
 0x3fd   : >> { %5158 = vmatmul.mubr.msk.f32.vlgmr.msra.gmra.mrb[26].mxu0 %vm654_vm3, %v3789_v18 }
 0x3fe   : >> { %5385 = vmatpush3.bf16.msra.mxu0 %v5384_v20  ;;  %5179 = vmatprep.mubr.msk.f32.mxu0 %vm5633_vm2, %v5634_v50 }
 0x3ff   : >> { %5386 = vmatprep.subr.bf16.mxu0 %v5632_v48  ;;  %v4033_v60 = vpop.trf.xlu1 }
 0x401   : >> { %v1804_v51 = vpop.f32.mrb[8].mxu1 }
 0x402   : >> { %5388 = vmatpush3.bf16.msra.mxu0 %v5387_v6  ;;  %v4972_v47 = vpop.f32.mrb[9].mxu1 }
 0x403   : >> { %5395 = vmatprep.subr.bf16.mxu0 %v5632_v48 }
 0x404   : >> { %v4155_v34 = vpop.trf.xlu0 }
 0x405   : >> { %5180 = vmatmul.mubr.msk.f32.vlgmr.msra.gmra.mrb[28].mxu0 %vm654_vm3, %v4033_v60  ;;  %5191 = vmatmul.mubr.msk.f32.vlgmr.msra.gmra.mrb[28].mxu1 %vm654_vm3, %v4155_v34 }
 0x406   : >> { %5397 = vmatpush3.bf16.msra.mxu0 %v5396_v14  ;;  %5403 = vmatpush3.bf16.msra.mxu1 %v5402_v42 }
 0x407   : >> { %5398 = vmatprep.subr.bf16.mxu0 %v5632_v48  ;;  %5201 = vmatprep.mubr.msk.f32.mxu0 %vm5633_vm2, %v5634_v50 }
 0x408   : >> { %5404 = vmatprep.subr.bf16.mxu1 %v5632_v48  ;;  %5212 = vmatprep.mubr.msk.f32.mxu1 %vm5633_vm2, %v5634_v50 }
 0x40a   : >> { %5400 = vmatpush3.bf16.msra.mxu0 %v5399_v28  ;;  %5406 = vmatpush3.bf16.msra.mxu1 %v5405_v43 }
 0x40d   : >> { %v2048_v54 = vpop.f32.mrb[10].mxu1 }
 0x40e   : >> { %v4994_v30 = vpop.f32.mrb[11].mxu1 }
 0x40f   : >> { %v4277_v12 = vpop.trf.xlu1 }
 0x410   : >> { %5202 = vmatmul.mubr.msk.f32.vlgmr.msra.gmra.mrb[30].mxu0 %vm654_vm3, %v4277_v12 }
 0x414   : >> { %v4399_v63 = vpop.trf.xlu0 }
 0x415   : >> { %5213 = vmatmul.mubr.msk.f32.vlgmr.msra.gmra.mrb[30].mxu1 %vm654_vm3, %v4399_v63 }
 0x422   : >> { %v2292_v31 = vpop.f32.mrb[12].mxu1 }
 0x423   : >> { %v5016_v52 = vpop.f32.mrb[13].mxu1 }
 0x442   : >> { %v2536_v33 = vpop.f32.mrb[14].mxu1 }
 0x443   : >> { %v5038_v11 = vpop.f32.mrb[15].mxu1 }
 0x448   : >> { %v724_v48 = vpop.f32.mrb[0].mxu0 }
 0x449   : >> { %v4873_v49 = vpop.f32.mrb[1].mxu0  ;;  %v830_v50 = vadd.f32 %v6783_v53, %v724_v48 }
 0x452   : >> { %v2776_v19 = vpop.f32.mrb[16].mxu1 }
 0x453   : >> { %v5060_v22 = vpop.f32.mrb[17].mxu1 }
 0x458   : >> { %v950_v35 = vpop.f32.mrb[2].mxu0 }
 0x459   : >> { %v954_v36 = vadd.f32 %v950_v35, %v830_v50  ;;  %v4895_v38 = vpop.f32.mrb[3].mxu0 }
 0x45b   : >> { %v1076_v62 = vadd.f32 %v6813_v45, %v954_v36 }
 0x462   : >> { %v3020_v40 = vpop.f32.mrb[18].mxu1 }
 0x463   : >> { %v5082_v41 = vpop.f32.mrb[19].mxu1 }
 0x468   : >> { %v1194_v55 = vpop.f32.mrb[4].mxu0 }
 0x469   : >> { %v1198_v46 = vadd.f32 %v1194_v55, %v1076_v62  ;;  %v4917_v44 = vpop.f32.mrb[5].mxu0 }
 0x46b   : >> { %v1320_v56 = vadd.f32 %v6840_v26, %v1198_v46 }
 0x478   : >> { %v1438_v3 = vpop.f32.mrb[6].mxu0 }
 0x479   : >> { %v1442_v27 = vadd.f32 %v1438_v3, %v1320_v56  ;;  %v4939_v57 = vpop.f32.mrb[7].mxu0  ;;  %v7014_v3 = vld [vmem:[#allocation7_spill] sm:$0xff] }
 0x47b   : >> { %v1564_v17 = vadd.f32 %v6869_v58, %v1442_v27 }
 0x482   : >> { %v3264_v53 = vpop.f32.mrb[20].mxu1 }
 0x483   : >> { %v5104_v1 = vpop.f32.mrb[21].mxu1 }
 0x488   : >> { %v1682_v21 = vpop.f32.mrb[8].mxu0 }
 0x489   : >> { %v1686_v4 = vadd.f32 %v1682_v21, %v1564_v17  ;;  %v4961_v0 = vpop.f32.mrb[9].mxu0 }
 0x48b   : >> { %v1808_v15 = vadd.f32 %v1804_v51, %v1686_v4 }
 0x490   : >> { %v1926_v24 = vpop.f32.mrb[10].mxu0 }
 0x491   : >> { %v1930_v45 = vadd.f32 %v1926_v24, %v1808_v15  ;;  %v4983_v29 = vpop.f32.mrb[11].mxu0 }
 0x493   : >> { %v2052_v59 = vadd.f32 %v2048_v54, %v1930_v45 }
 0x498   : >> { %v2170_v61 = vpop.f32.mrb[12].mxu0 }
 0x499   : >> { %v2174_v39 = vadd.f32 %v2170_v61, %v2052_v59  ;;  %v5005_v2 = vpop.f32.mrb[13].mxu0 }
 0x49b   : >> { %v2296_v18 = vadd.f32 %v2292_v31, %v2174_v39 }
 0x4a0   : >> { %v2414_v26 = vpop.f32.mrb[14].mxu0 }
 0x4a1   : >> { %v2418_v20 = vadd.f32 %v2414_v26, %v2296_v18  ;;  %v5027_v5 = vpop.f32.mrb[15].mxu0 }
 0x4a2   : >> { %v3508_v13 = vpop.f32.mrb[22].mxu1 }
 0x4a3   : >> { %v2540_v32 = vadd.f32 %v2536_v33, %v2418_v20  ;;  %v5126_v58 = vpop.f32.mrb[23].mxu1 }
 0x4a8   : >> { %v2650_v6 = vpop.f32.mrb[16].mxu0 }
 0x4a9   : >> { %v2654_v8 = vadd.f32 %v2650_v6, %v2540_v32  ;;  %v5049_v7 = vpop.f32.mrb[17].mxu0 }
 0x4ab   : >> { %v2780_v23 = vadd.f32 %v2776_v19, %v2654_v8 }
 0x4b0   : >> { %v2898_v16 = vpop.f32.mrb[18].mxu0 }
 0x4b1   : >> { %v2902_v60 = vadd.f32 %v2898_v16, %v2780_v23  ;;  %v5071_v14 = vpop.f32.mrb[19].mxu0 }
 0x4b3   : >> { %v3024_v25 = vadd.f32 %v3020_v40, %v2902_v60 }
 0x4b8   : >> { %v3142_v42 = vpop.f32.mrb[20].mxu0  ;;  %v3752_v10 = vpop.f32.mrb[24].mxu1 }
 0x4b9   : >> { %v3146_v37 = vadd.f32 %v3142_v42, %v3024_v25  ;;  %v5093_v9 = vpop.f32.mrb[21].mxu0  ;;  %v5148_v34 = vpop.f32.mrb[25].mxu1 }
 0x4bb   : >> { %v3268_v28 = vadd.f32 %v3264_v53, %v3146_v37 }
 0x4c0   : >> { %v3386_v43 = vpop.f32.mrb[22].mxu0 }
 0x4c1   : >> { %v3390_v51 = vadd.f32 %v3386_v43, %v3268_v28  ;;  %v5115_v47 = vpop.f32.mrb[23].mxu0 }
 0x4c3   : >> { %v3512_v12 = vadd.f32 %v3508_v13, %v3390_v51 }
 0x4c8   : >> { %v3630_v54 = vpop.f32.mrb[24].mxu0  ;;  %v3996_v30 = vpop.f32.mrb[26].mxu1 }
 0x4c9   : >> { %v3634_v63 = vadd.f32 %v3630_v54, %v3512_v12  ;;  %v5137_v31 = vpop.f32.mrb[25].mxu0  ;;  %v5170_v52 = vpop.f32.mrb[27].mxu1 }
 0x4cb   : >> { %v3756_v33 = vadd.f32 %v3752_v10, %v3634_v63 }
 0x4d0   : >> { %v3874_v11 = vpop.f32.mrb[26].mxu0 }
 0x4d1   : >> { %v3878_v48 = vadd.f32 %v3874_v11, %v3756_v33  ;;  %v5159_v49 = vpop.f32.mrb[27].mxu0 }
 0x4d3   : >> { %v4000_v50 = vadd.f32 %v3996_v30, %v3878_v48 }
 0x4d8   : >> { %v4118_v19 = vpop.f32.mrb[28].mxu0  ;;  %v4240_v22 = vpop.f32.mrb[28].mxu1 }
 0x4d9   : >> { %v4122_v35 = vadd.f32 %v4118_v19, %v4000_v50  ;;  %v5181_v36 = vpop.f32.mrb[29].mxu0  ;;  %v5192_v38 = vpop.f32.mrb[29].mxu1 }
 0x4db   : >> { %v4244_v62 = vadd.f32 %v4240_v22, %v4122_v35 }
 0x4e3   : >> { %v4362_v40 = vpop.f32.mrb[30].mxu0 }
 0x4e4   : >> { %v4366_v41 = vadd.f32 %v4362_v40, %v4244_v62  ;;  %v5203_v55 = vpop.f32.mrb[31].mxu0 }
 0x4e7   : > { %586 = sbr.rel (!%p584_p0) target bundleno = 394 (0x18a), region = 91 }
 0x4e8   : >> { %v4484_v46 = vpop.f32.mrb[30].mxu1 }
 0x4e9   : >> { %v4488_v44 = vadd.f32 %v4484_v46, %v4366_v41  ;;  %v5214_v56 = vpop.f32.mrb[31].mxu1 }
 0x4eb   : >> { %v4495_v27 = vadd.f32 %v7014_v3, %v4488_v44 }
 0x4ed   : >> { %4499 = vst.msk [vmem:[%s4497_s14] sm:$0xff] %vm4498_vm4, %v4495_v27 }
 0x4ee   : > { %5525 = shalt.err (!%p5522_p9)
}
 0x4ef   : > { %s5526_s14 = scalar_lea.hbm %s6931_s11, 512  ;;  %s5530_s10 = scalar_lea.hbm %s6991_s4, 2048 }
 0x4f0   : > { %p5527_p10 = scmp.ne.s32.totalorder %s6931_s11, %s5526_s14  ;;  %p5531_p13 = scmp.lt.u32.totalorder %s6931_s11, %s6991_s4 }
 0x4f1   : > { %p5532_p0 = scmp.lt.u32.totalorder %s5530_s10, %s5526_s14  ;;  %p5534_p2 = scmp.lt.u32.totalorder %s5526_s14, %s6931_s11 }
 0x4f2   : > { %p5528_p11 = pnand %p5527_p10, %p5714_p3 }
 0x4f3   : > { %p5533_p1 = por %p5532_p0, %p5531_p13 }
 0x4f4   : > { %p5529_p12 = pneg %p5528_p11 }
 0x4f5   : > { %p5535_p4 = por %p5534_p2, %p5533_p1 }
 0x4f7   : > { %p5536_p5 = pnand %p5535_p4, %p5529_p12 }
 0x4f9   : > { %5539 = shalt.err (!%p5536_p5)
}
 0x4fa   : > { %s5636_s5 = smov 128   ;;  %s5637_s6 = smov 8  }
 0x4fb   : > { %5409 = dma.vmem_to_hbm [thread:$0]  (%p5714_p3), %s6926_s27, 512, %s6931_s11, %s6935_s9, %s5636_s5, %s5636_s5, %s5637_s6  }
 0x4fc PF: > { %p5415_p6 = scmp.ge.s32.totalorder %s5610_s22, 2  ;;  %s4531_s26 = sand.u32 1, %s5582_s15  }
 0x4fd   : > { %s4532_s13 = scalar_lea.sflag [#allocation4], %s4531_s26 }
 0x4fe   : > { %p5412_p7 = pnand %p5415_p6, %p5723_p8 }
 0x500   : > { %5577 = dma.done.wait (!%p5412_p7), %s4532_s13, 512  }
 0x501   : > { %5579 = vsyncadd (!%p5412_p7), %s4532_s13, 4294966784  ;;  %s17_s22 = sadd.s32 1, %s5610_s22   ;;  %s7017_s28 = sld [smem:[#allocation6_spill]] }
 0x502   : > { %p14_p9 = scmp.ge.s32.totalorder %s17_s22, 6   ;;  %s7018_s15 = smov %s5586_s16 }
 0x503   : > { %s7019_s16 = smov %s5590_s17  ;;  %s7020_s17 = smov %s5732_s7 }
 0x504   : > { %s7021_s18 = smov %s5602_s20  ;;  %s7022_s19 = smov %s5606_s21 }
 0x505   : > { %s7023_s20 = smov %s7026_s25  ;;  %16 = sbr.rel (!%p14_p9) target bundleno = 5 (0x5), region = 102 }
 0x507   : > { %s7024_s21 = smov %s7017_s28 }
 0x50c   :  { %4537 = vsyncpa [#allocation4], 1 }
 0x50d   :  { %4539 = vsyncpa [#allocation4 + $0x1], 1 }

</bundles_post_ra>
